<compile_context>
chip_gen: v7x
topology: tpu7x:2x2x1
jax: 0.10.0
libtpu: 0.0.40
codegen_flags: <defaults>
</compile_context>

<pallas_src>
import functools
import math

import jax
import jax.numpy as jnp
from jax import lax
from jax.experimental import pallas as pl
from jax.experimental.pallas import tpu as pltpu

LN_EPS = 1e-5                       # torch.nn.LayerNorm default
MATMUL_DTYPE = jnp.float32          # set to jnp.bfloat16 on v6e/v7x at production dims

_STD = (((2,), (1,)), ((0,), (0,)))   # (B, M, K) x (B, K, N) -> (B, M, N)
_QK = (((2,), (2,)), ((0,), (0,)))    # (B, M, K) x (B, N, K) -> (B, M, N)


# ------------------------------- kernel ------------------------------------ #

def _vivit_kernel(
    x_ref, pos_ref,
    eg1_ref, eb1_ref, ew_ref, ebias_ref, eg2_ref, eb2_ref,
    a1g_ref, a1b_ref, a1wq_ref, a1wk_ref, a1wv_ref, a1wo_ref, a1bo_ref,
    fg_ref, fb_ref, fw1_ref, fb1_ref, fw2_ref, fb2_ref,
    a2g_ref, a2b_ref, a2wq_ref, a2wk_ref, a2wv_ref, a2wo_ref, a2bo_ref,
    ng_ref, nb_ref,
    hg_ref, hb_ref, hw_ref, hbias_ref,
    out_ref,
    *, depth, heads, dim_head):
    """Full ViViT forward for one batch element (grid=(B,), 'parallel')."""
    H = heads
    scale = dim_head ** (-0.5)

    def ln(v, g, b):
        mu = jnp.mean(v, axis=-1, keepdims=True)
        var = jnp.mean(jnp.square(v - mu), axis=-1, keepdims=True)
        return (v - mu) * lax.rsqrt(var + LN_EPS) * g + b

    def mm(a, b):                                     # 2-D matmul, f32 accumulate
        return jnp.dot(a.astype(MATMUL_DTYPE), b.astype(MATMUL_DTYPE),
                       preferred_element_type=jnp.float32)

    def bmm(a, b, dims):                              # single-batch-dim matmul
        return lax.dot_general(a.astype(MATMUL_DTYPE), b.astype(MATMUL_DTYPE),
                               dims, preferred_element_type=jnp.float32)

    def softmax_last(s):
        s = s - jnp.max(s, axis=-1, keepdims=True)
        e = jnp.exp(s)
        # EUP reciprocal (own VLIW slot) instead of a VALU divide.
        return e * pl.reciprocal(jnp.sum(e, axis=-1, keepdims=True), approx=True)

    def attn_token0(x3, g, b, wq, wk, wv, wo, bo):
        """PreNorm(Attention)(x3)[:, 0] + x3[:, 0].

        Only token 0 of this attention is consumed downstream, so only the
        token-0 query row is computed.  x3: (S, L, D) -> (S, D).  Sequences and
        heads are folded into one dot_general batch dim (leading-dim ops only).
        """
        S, L, D = x3.shape
        SH = S * H
        y = ln(x3, g, b)
        yb = jnp.broadcast_to(y[:, None], (S, H, L, D)).reshape(SH, L, D)
        y0 = jnp.broadcast_to(y[:, None, 0:1, :], (S, H, 1, D)).reshape(SH, 1, D)

        def tile(w):  # (H, a, b) -> (S*H, a, b)
            return jnp.broadcast_to(w[None], (S,) + w.shape).reshape((SH,) + w.shape[1:])

        k = bmm(yb, tile(wk), _STD)                   # (SH, L, dh)
        v = bmm(yb, tile(wv), _STD)                   # (SH, L, dh)
        q = bmm(y0, tile(wq), _STD)                   # (SH, 1, dh)
        p = softmax_last(bmm(q, k, _QK) * scale)      # (SH, 1, L)
        o = bmm(p, v, _STD)                           # (SH, 1, dh)
        o = bmm(o, tile(wo), _STD)                    # (SH, 1, D) per-head projection
        o = jnp.sum(o.reshape(S, H, 1, D), axis=1)    # == concat-heads @ W_out
        return (o + bo)[:, 0, :] + x3[:, 0, :]        # (S, D)

    def attn_full(x2, g, b, wq, wk, wv, wo, bo):
        """PreNorm(Attention)(x2) + x2 for one sequence x2: (L, D)."""
        L, D = x2.shape
        y = ln(x2, g, b)
        yb = jnp.broadcast_to(y, (H, L, D))
        q = bmm(yb, wq, _STD)                         # (H, L, dh)
        k = bmm(yb, wk, _STD)
        v = bmm(yb, wv, _STD)
        p = softmax_last(bmm(q, k, _QK) * scale)      # (H, L, L)
        o = bmm(p, v, _STD)                           # (H, L, dh)
        o = bmm(o, wo, _STD)                          # (H, L, D)
        return jnp.sum(o, axis=0) + bo + x2           # (L, D)

    def ffn(x2, g, b, w1, b1, w2, b2):
        """PreNorm(FeedForward)(x2) + x2, x2: (tokens, D)."""
        y = ln(x2, g, b)
        h = mm(y, w1) + b1
        # Exact erf GELU == torch.nn.GELU default.
        # TODO(synk): jax.nn.gelu(approximate=True) would run on the EUP but changes
        # numerics vs. the PyTorch reference, so it is intentionally not used.
        h = 0.5 * h * (1.0 + lax.erf(h * (1.0 / math.sqrt(2.0))))
        return mm(h, w2) + b2 + x2

    # ---- ViViT.to_embedding: LN(n) -> Linear(n, dim, bias=True) -> LN(dim). ----
    xr = x_ref[0]                                     # (T, M, N_IN)
    T, M, _ = xr.shape
    ew = ew_ref[...]
    y = ln(xr, eg1_ref[...], eb1_ref[...])
    y = bmm(y, jnp.broadcast_to(ew, (T,) + ew.shape), _STD) + ebias_ref[...]
    y = ln(y, eg2_ref[...], eb2_ref[...])             # (T, M, D)

    # ---- Transformer: fused `x += pos_embedding`, then the depth layers. ------
    x3 = y + pos_ref[0]                               # (T, M, D): T sequences of M tokens
    x2 = None
    for l in range(depth):
        # s_attn slot (Attention #1): only token 0 of its output survives.
        x2 = attn_token0(x3, a1g_ref[l], a1b_ref[l], a1wq_ref[l], a1wk_ref[l],
                         a1wv_ref[l], a1wo_ref[l], a1bo_ref[l])        # (S, D)
        # t_att slot == FeedForward (quirky unpack order of the reference).
        x2 = ffn(x2, fg_ref[l], fb_ref[l], fw1_ref[l], fb1_ref[l],
                 fw2_ref[l], fb2_ref[l])
        # ff slot == Attention #2, over the current single sequence of S tokens.
        x2 = attn_full(x2, a2g_ref[l], a2b_ref[l], a2wq_ref[l], a2wk_ref[l],
                       a2wv_ref[l], a2wo_ref[l], a2bo_ref[l])
        x3 = x2[None]                                 # next layer: 1 sequence of S tokens

    x2 = ln(x2, ng_ref[...], nb_ref[...])             # Transformer.norm

    # ---- ViViT head: cls pooling, LayerNorm, Linear, softmax over classes. ----
    cls = x2[0:1, :]                                  # (1, D)
    logits = mm(ln(cls, hg_ref[...], hb_ref[...]), hw_ref[...]) + hbias_ref[...]
    logits = logits - jnp.max(logits, axis=-1, keepdims=True)
    e = jnp.exp(logits)
    out_ref[0] = (e / jnp.sum(e, axis=-1, keepdims=True)).astype(out_ref.dtype)


# --------------------------- host-side packing ------------------------------ #

def _head_major(w_block, heads, dim_head):
    """(D, heads*dim_head) -> (heads, D, dim_head); matches the '(h d)' column order."""
    d = w_block.shape[0]
    return w_block.reshape(d, heads, dim_head).transpose(1, 0, 2)


def _pack_attention(layers, slot, heads, dim_head):
    inner = heads * dim_head
    g = jnp.stack([l[slot]["ln_g"] for l in layers])                    # (depth, 1, D)
    b = jnp.stack([l[slot]["ln_b"] for l in layers])
    wq = jnp.stack([_head_major(l[slot]["w_qkv"][:, 0 * inner:1 * inner],
                                heads, dim_head) for l in layers])      # (depth, H, D, dh)
    wk = jnp.stack([_head_major(l[slot]["w_qkv"][:, 1 * inner:2 * inner],
                                heads, dim_head) for l in layers])
    wv = jnp.stack([_head_major(l[slot]["w_qkv"][:, 2 * inner:3 * inner],
                                heads, dim_head) for l in layers])
    wo = jnp.stack([l[slot]["w_out"].reshape(heads, dim_head, -1)
                    for l in layers])                                   # (depth, H, dh, D)
    bo = jnp.stack([l[slot]["b_out"] for l in layers])                  # (depth, 1, D)
    return [g, b, wq, wk, wv, wo, bo]


def _pack_feedforward(layers):
    return [jnp.stack([l[2][k] for l in layers])
            for k in ("ln_g", "ln_b", "w1", "b1", "w2", "b2")]


# ------------------------------- wrapper ------------------------------------ #

def vivit_forward(params, x, *, heads, dim_head):
    B, T, M, n_in = x.shape
    C = params["head_w"].shape[1]
    layers = params["layers"]
    depth = len(layers)

    args = [
        x, params["pos_embedding"],
        params["emb_ln1_g"], params["emb_ln1_b"], params["emb_w"], params["emb_b"],
        params["emb_ln2_g"], params["emb_ln2_b"],
        *_pack_attention(layers, 0, heads, dim_head),     # s_attn (Attention #1)
        *_pack_feedforward(layers),                       # t_att slot (FeedForward)
        *_pack_attention(layers, 1, heads, dim_head),     # ff slot (Attention #2)
        params["final_ln_g"], params["final_ln_b"],
        params["head_ln_g"], params["head_ln_b"], params["head_w"], params["head_b"],
    ]

    def const(a):  # full-array block, constant index map (weights stay VMEM-resident)
        nd = a.ndim
        return pl.BlockSpec(a.shape, lambda b: (0,) * nd)

    in_specs = [pl.BlockSpec((1, T, M, n_in), lambda b: (b, 0, 0, 0))]
    in_specs += [const(a) for a in args[1:]]

    kernel = functools.partial(_vivit_kernel, depth=depth, heads=heads,
                               dim_head=dim_head)

    out = pl.pallas_call(
        kernel,
        out_shape=jax.ShapeDtypeStruct((B, 1, C), jnp.float32),
        grid=(B,),
        in_specs=in_specs,
        out_specs=pl.BlockSpec((1, 1, C), lambda b: (b, 0, 0)),
        compiler_params=pltpu.CompilerParams(
            dimension_semantics=("parallel",),
            # TODO(synk): at production ViViT dims also pass vmem_limit_bytes and
            # single-buffer the constant-index weight specs (pl.Buffered(1)).
        ),
    )(*args)
    return out[:, 0, :]                                   # (B, num_classes)


# ------------------------------ parameters ---------------------------------- #

def init_vivit_params(key, *, m, n_in, dim, depth, heads, dim_head, mlp_dim,
                      num_frames, num_classes):
    inner = heads * dim_head
    keys = iter(jax.random.split(key, 64))

    def nrm(shape, scale=0.02):
        return scale * jax.random.normal(next(keys), shape, dtype=jnp.float32)

    params = {
        "emb_ln1_g": jnp.ones((1, n_in), jnp.float32),
        "emb_ln1_b": jnp.zeros((1, n_in), jnp.float32),
        "emb_w": nrm((n_in, dim)),
        "emb_b": nrm((1, dim)),
        "emb_ln2_g": jnp.ones((1, dim), jnp.float32),
        "emb_ln2_b": jnp.zeros((1, dim), jnp.float32),
        "pos_embedding": jax.random.normal(next(keys), (1, num_frames, m, dim),
                                           dtype=jnp.float32),
        "final_ln_g": jnp.ones((1, dim), jnp.float32),
        "final_ln_b": jnp.zeros((1, dim), jnp.float32),
        "head_ln_g": jnp.ones((1, dim), jnp.float32),
        "head_ln_b": jnp.zeros((1, dim), jnp.float32),
        "head_w": nrm((dim, num_classes)),
        "head_b": nrm((1, num_classes)),
        "layers": [],
    }
    # NOTE: temporal_token / space_token and emb dropout exist in __init__ but are
    # unused in the reference forward, so they are omitted.
    for _ in range(depth):
        def attn():
            return {
                "ln_g": jnp.ones((1, dim), jnp.float32),
                "ln_b": jnp.zeros((1, dim), jnp.float32),
                "w_qkv": nrm((dim, 3 * inner)),   # nn.Linear(dim, 3*inner, bias=False)
                "w_out": nrm((inner, dim)),
                "b_out": nrm((1, dim)),
            }
        ffw = {
            "ln_g": jnp.ones((1, dim), jnp.float32),
            "ln_b": jnp.zeros((1, dim), jnp.float32),
            "w1": nrm((dim, mlp_dim)),
            "b1": nrm((1, mlp_dim)),
            "w2": nrm((mlp_dim, dim)),
            "b2": nrm((1, dim)),
        }
        params["layers"].append((attn(), attn(), ffw))    # (Attn1, Attn2, FF)
    return params


# --------------------------------- main -------------------------------------- #

if __name__ == "__main__":
    B, T, M, N_IN = 2, 4, 8, 32          # batch, frames, tokens/frame (m), raw feat (n)
    DIM, DEPTH, HEADS, DIM_HEAD = 32, 2, 4, 8
    MLP_DIM = DIM * 4                     # scale_dim = 4
    NUM_CLASSES = 124

    key = jax.random.PRNGKey(0)
    kp, kx = jax.random.split(key)
    params = init_vivit_params(
        kp, m=M, n_in=N_IN, dim=DIM, depth=DEPTH, heads=HEADS, dim_head=DIM_HEAD,
        mlp_dim=MLP_DIM, num_frames=T, num_classes=NUM_CLASSES)

    x = jax.random.normal(kx, (B, T, M, N_IN), dtype=jnp.float32)

    out = vivit_forward(params, x, heads=HEADS, dim_head=DIM_HEAD)
    jax.block_until_ready(out)

    assert out.shape == (B, NUM_CLASSES)
    assert bool(jnp.all(jnp.abs(jnp.sum(out, axis=-1) - 1.0) < 1e-3))
    print("KERNEL_OK")
</pallas_src>

<mosaic_0001>
module attributes {stable_mosaic.version = 11 : i64} {
  func.func @_vivit_kernel(%arg0: i32, %arg1: memref<1x4x8x32xf32, #tpu.memory_space<vmem>>, %arg2: memref<1x4x8x32xf32, #tpu.memory_space<vmem>>, %arg3: memref<1x32xf32, #tpu.memory_space<vmem>>, %arg4: memref<1x32xf32, #tpu.memory_space<vmem>>, %arg5: memref<32x32xf32, #tpu.memory_space<vmem>>, %arg6: memref<1x32xf32, #tpu.memory_space<vmem>>, %arg7: memref<1x32xf32, #tpu.memory_space<vmem>>, %arg8: memref<1x32xf32, #tpu.memory_space<vmem>>, %arg9: memref<2x1x32xf32, #tpu.memory_space<vmem>>, %arg10: memref<2x1x32xf32, #tpu.memory_space<vmem>>, %arg11: memref<2x4x32x8xf32, #tpu.memory_space<vmem>>, %arg12: memref<2x4x32x8xf32, #tpu.memory_space<vmem>>, %arg13: memref<2x4x32x8xf32, #tpu.memory_space<vmem>>, %arg14: memref<2x4x8x32xf32, #tpu.memory_space<vmem>>, %arg15: memref<2x1x32xf32, #tpu.memory_space<vmem>>, %arg16: memref<2x1x32xf32, #tpu.memory_space<vmem>>, %arg17: memref<2x1x32xf32, #tpu.memory_space<vmem>>, %arg18: memref<2x32x128xf32, #tpu.memory_space<vmem>>, %arg19: memref<2x1x128xf32, #tpu.memory_space<vmem>>, %arg20: memref<2x128x32xf32, #tpu.memory_space<vmem>>, %arg21: memref<2x1x32xf32, #tpu.memory_space<vmem>>, %arg22: memref<2x1x32xf32, #tpu.memory_space<vmem>>, %arg23: memref<2x1x32xf32, #tpu.memory_space<vmem>>, %arg24: memref<2x4x32x8xf32, #tpu.memory_space<vmem>>, %arg25: memref<2x4x32x8xf32, #tpu.memory_space<vmem>>, %arg26: memref<2x4x32x8xf32, #tpu.memory_space<vmem>>, %arg27: memref<2x4x8x32xf32, #tpu.memory_space<vmem>>, %arg28: memref<2x1x32xf32, #tpu.memory_space<vmem>>, %arg29: memref<1x32xf32, #tpu.memory_space<vmem>>, %arg30: memref<1x32xf32, #tpu.memory_space<vmem>>, %arg31: memref<1x32xf32, #tpu.memory_space<vmem>>, %arg32: memref<1x32xf32, #tpu.memory_space<vmem>>, %arg33: memref<32x124xf32, #tpu.memory_space<vmem>>, %arg34: memref<1x124xf32, #tpu.memory_space<vmem>>, %arg35: memref<1x1x124xf32, #tpu.memory_space<vmem>>) attributes {dimension_semantics = [#tpu.dimension_semantics<parallel>], iteration_bounds = array<i64: 2>, scalar_prefetch = 0 : i64, scratch_operands = 0 : i64, tpu.core_type = #tpu.core_type<tc>, window_params = [{transform_indices = @transform_0, window_bounds = array<i64: 1, 4, 8, 32>}, {pipeline_mode = #tpu.pipeline_mode<synchronous>, transform_indices = @transform_1, window_bounds = array<i64: 1, 4, 8, 32>}, {pipeline_mode = #tpu.pipeline_mode<synchronous>, transform_indices = @transform_2, window_bounds = array<i64: 1, 32>}, {pipeline_mode = #tpu.pipeline_mode<synchronous>, transform_indices = @transform_3, window_bounds = array<i64: 1, 32>}, {pipeline_mode = #tpu.pipeline_mode<synchronous>, transform_indices = @transform_4, window_bounds = array<i64: 32, 32>}, {pipeline_mode = #tpu.pipeline_mode<synchronous>, transform_indices = @transform_5, window_bounds = array<i64: 1, 32>}, {pipeline_mode = #tpu.pipeline_mode<synchronous>, transform_indices = @transform_6, window_bounds = array<i64: 1, 32>}, {pipeline_mode = #tpu.pipeline_mode<synchronous>, transform_indices = @transform_7, window_bounds = array<i64: 1, 32>}, {pipeline_mode = #tpu.pipeline_mode<synchronous>, transform_indices = @transform_8, window_bounds = array<i64: 2, 1, 32>}, {pipeline_mode = #tpu.pipeline_mode<synchronous>, transform_indices = @transform_9, window_bounds = array<i64: 2, 1, 32>}, {pipeline_mode = #tpu.pipeline_mode<synchronous>, transform_indices = @transform_10, window_bounds = array<i64: 2, 4, 32, 8>}, {pipeline_mode = #tpu.pipeline_mode<synchronous>, transform_indices = @transform_11, window_bounds = array<i64: 2, 4, 32, 8>}, {pipeline_mode = #tpu.pipeline_mode<synchronous>, transform_indices = @transform_12, window_bounds = array<i64: 2, 4, 32, 8>}, {pipeline_mode = #tpu.pipeline_mode<synchronous>, transform_indices = @transform_13, window_bounds = array<i64: 2, 4, 8, 32>}, {pipeline_mode = #tpu.pipeline_mode<synchronous>, transform_indices = @transform_14, window_bounds = array<i64: 2, 1, 32>}, {pipeline_mode = #tpu.pipeline_mode<synchronous>, transform_indices = @transform_15, window_bounds = array<i64: 2, 1, 32>}, {pipeline_mode = #tpu.pipeline_mode<synchronous>, transform_indices = @transform_16, window_bounds = array<i64: 2, 1, 32>}, {pipeline_mode = #tpu.pipeline_mode<synchronous>, transform_indices = @transform_17, window_bounds = array<i64: 2, 32, 128>}, {pipeline_mode = #tpu.pipeline_mode<synchronous>, transform_indices = @transform_18, window_bounds = array<i64: 2, 1, 128>}, {pipeline_mode = #tpu.pipeline_mode<synchronous>, transform_indices = @transform_19, window_bounds = array<i64: 2, 128, 32>}, {pipeline_mode = #tpu.pipeline_mode<synchronous>, transform_indices = @transform_20, window_bounds = array<i64: 2, 1, 32>}, {pipeline_mode = #tpu.pipeline_mode<synchronous>, transform_indices = @transform_21, window_bounds = array<i64: 2, 1, 32>}, {pipeline_mode = #tpu.pipeline_mode<synchronous>, transform_indices = @transform_22, window_bounds = array<i64: 2, 1, 32>}, {pipeline_mode = #tpu.pipeline_mode<synchronous>, transform_indices = @transform_23, window_bounds = array<i64: 2, 4, 32, 8>}, {pipeline_mode = #tpu.pipeline_mode<synchronous>, transform_indices = @transform_24, window_bounds = array<i64: 2, 4, 32, 8>}, {pipeline_mode = #tpu.pipeline_mode<synchronous>, transform_indices = @transform_25, window_bounds = array<i64: 2, 4, 32, 8>}, {pipeline_mode = #tpu.pipeline_mode<synchronous>, transform_indices = @transform_26, window_bounds = array<i64: 2, 4, 8, 32>}, {pipeline_mode = #tpu.pipeline_mode<synchronous>, transform_indices = @transform_27, window_bounds = array<i64: 2, 1, 32>}, {pipeline_mode = #tpu.pipeline_mode<synchronous>, transform_indices = @transform_28, window_bounds = array<i64: 1, 32>}, {pipeline_mode = #tpu.pipeline_mode<synchronous>, transform_indices = @transform_29, window_bounds = array<i64: 1, 32>}, {pipeline_mode = #tpu.pipeline_mode<synchronous>, transform_indices = @transform_30, window_bounds = array<i64: 1, 32>}, {pipeline_mode = #tpu.pipeline_mode<synchronous>, transform_indices = @transform_31, window_bounds = array<i64: 1, 32>}, {pipeline_mode = #tpu.pipeline_mode<synchronous>, transform_indices = @transform_32, window_bounds = array<i64: 32, 124>}, {pipeline_mode = #tpu.pipeline_mode<synchronous>, transform_indices = @transform_33, window_bounds = array<i64: 1, 124>}, {transform_indices = @transform_34, window_bounds = array<i64: 1, 1, 124>}]} {
    %c0 = arith.constant 0 : index
    %c0_0 = arith.constant 0 : index
    %c0_1 = arith.constant 0 : index
    %c0_2 = arith.constant 0 : index
    %0 = vector.load %arg1[%c0, %c0_0, %c0_1, %c0_2] : memref<1x4x8x32xf32, #tpu.memory_space<vmem>>, vector<1x4x8x32xf32>
    %1 = vector.shape_cast %0 : vector<1x4x8x32xf32> to vector<4x8x32xf32>
    %c0_3 = arith.constant 0 : index
    %c0_4 = arith.constant 0 : index
    %2 = vector.load %arg5[%c0_3, %c0_4] : memref<32x32xf32, #tpu.memory_space<vmem>>, vector<32x32xf32>
    %c0_5 = arith.constant 0 : index
    %c0_6 = arith.constant 0 : index
    %3 = vector.load %arg3[%c0_5, %c0_6] : memref<1x32xf32, #tpu.memory_space<vmem>>, vector<1x32xf32>
    %c0_7 = arith.constant 0 : index
    %c0_8 = arith.constant 0 : index
    %4 = vector.load %arg4[%c0_7, %c0_8] : memref<1x32xf32, #tpu.memory_space<vmem>>, vector<1x32xf32>
    %cst = arith.constant dense<0.000000e+00> : vector<4x8xf32>
    %5 = vector.multi_reduction <add>, %1, %cst [2] : vector<4x8x32xf32> to vector<4x8xf32>
    %6 = vector.shape_cast %5 : vector<4x8xf32> to vector<4x8x1xf32>
    %cst_9 = arith.constant 3.200000e+01 : f32
    %7 = vector.broadcast %cst_9 : f32 to vector<4x8x1xf32>
    %8 = arith.divf %6, %7 : vector<4x8x1xf32>
    %9 = vector.broadcast %8 : vector<4x8x1xf32> to vector<4x8x32xf32>
    %10 = arith.subf %1, %9 : vector<4x8x32xf32>
    %11 = arith.mulf %10, %10 : vector<4x8x32xf32>
    %cst_10 = arith.constant dense<0.000000e+00> : vector<4x8xf32>
    %12 = vector.multi_reduction <add>, %11, %cst_10 [2] : vector<4x8x32xf32> to vector<4x8xf32>
    %13 = vector.shape_cast %12 : vector<4x8xf32> to vector<4x8x1xf32>
    %cst_11 = arith.constant 3.200000e+01 : f32
    %14 = vector.broadcast %cst_11 : f32 to vector<4x8x1xf32>
    %15 = arith.divf %13, %14 : vector<4x8x1xf32>
    %16 = vector.broadcast %8 : vector<4x8x1xf32> to vector<4x8x32xf32>
    %17 = arith.subf %1, %16 : vector<4x8x32xf32>
    %cst_12 = arith.constant 9.99999974E-6 : f32
    %18 = vector.broadcast %cst_12 : f32 to vector<4x8x1xf32>
    %19 = arith.addf %15, %18 : vector<4x8x1xf32>
    %20 = math.rsqrt %19 : vector<4x8x1xf32>
    %21 = vector.broadcast %20 : vector<4x8x1xf32> to vector<4x8x32xf32>
    %22 = arith.mulf %17, %21 : vector<4x8x32xf32>
    %23 = vector.shape_cast %3 : vector<1x32xf32> to vector<1x1x32xf32>
    %24 = vector.broadcast %23 : vector<1x1x32xf32> to vector<4x8x32xf32>
    %25 = arith.mulf %22, %24 : vector<4x8x32xf32>
    %26 = vector.shape_cast %4 : vector<1x32xf32> to vector<1x1x32xf32>
    %27 = vector.broadcast %26 : vector<1x1x32xf32> to vector<4x8x32xf32>
    %28 = arith.addf %25, %27 : vector<4x8x32xf32>
    %29 = vector.shape_cast %2 : vector<32x32xf32> to vector<1x32x32xf32>
    %30 = vector.broadcast %29 : vector<1x32x32xf32> to vector<4x32x32xf32>
    %cst_13 = arith.constant dense<0.000000e+00> : vector<4x8x32xf32>
    %31 = tpu.matmul %28, %30, %cst_13 {dimension_numbers = #tpu.dot_dimension_numbers<[2], [1], [1], [2], [0, 0, 0, 1, 1, 2], [0], [0]>} : vector<4x8x32xf32>, vector<4x32x32xf32>, vector<4x8x32xf32> -> vector<4x8x32xf32>
    %c0_14 = arith.constant 0 : index
    %c0_15 = arith.constant 0 : index
    %32 = vector.load %arg6[%c0_14, %c0_15] : memref<1x32xf32, #tpu.memory_space<vmem>>, vector<1x32xf32>
    %33 = vector.shape_cast %32 : vector<1x32xf32> to vector<1x1x32xf32>
    %34 = vector.broadcast %33 : vector<1x1x32xf32> to vector<4x8x32xf32>
    %35 = arith.addf %31, %34 : vector<4x8x32xf32>
    %c0_16 = arith.constant 0 : index
    %c0_17 = arith.constant 0 : index
    %36 = vector.load %arg7[%c0_16, %c0_17] : memref<1x32xf32, #tpu.memory_space<vmem>>, vector<1x32xf32>
    %c0_18 = arith.constant 0 : index
    %c0_19 = arith.constant 0 : index
    %37 = vector.load %arg8[%c0_18, %c0_19] : memref<1x32xf32, #tpu.memory_space<vmem>>, vector<1x32xf32>
    %cst_20 = arith.constant dense<0.000000e+00> : vector<4x8xf32>
    %38 = vector.multi_reduction <add>, %35, %cst_20 [2] : vector<4x8x32xf32> to vector<4x8xf32>
    %39 = vector.shape_cast %38 : vector<4x8xf32> to vector<4x8x1xf32>
    %cst_21 = arith.constant 3.200000e+01 : f32
    %40 = vector.broadcast %cst_21 : f32 to vector<4x8x1xf32>
    %41 = arith.divf %39, %40 : vector<4x8x1xf32>
    %42 = vector.broadcast %41 : vector<4x8x1xf32> to vector<4x8x32xf32>
    %43 = arith.subf %35, %42 : vector<4x8x32xf32>
    %44 = arith.mulf %43, %43 : vector<4x8x32xf32>
    %cst_22 = arith.constant dense<0.000000e+00> : vector<4x8xf32>
    %45 = vector.multi_reduction <add>, %44, %cst_22 [2] : vector<4x8x32xf32> to vector<4x8xf32>
    %46 = vector.shape_cast %45 : vector<4x8xf32> to vector<4x8x1xf32>
    %cst_23 = arith.constant 3.200000e+01 : f32
    %47 = vector.broadcast %cst_23 : f32 to vector<4x8x1xf32>
    %48 = arith.divf %46, %47 : vector<4x8x1xf32>
    %49 = vector.broadcast %41 : vector<4x8x1xf32> to vector<4x8x32xf32>
    %50 = arith.subf %35, %49 : vector<4x8x32xf32>
    %cst_24 = arith.constant 9.99999974E-6 : f32
    %51 = vector.broadcast %cst_24 : f32 to vector<4x8x1xf32>
    %52 = arith.addf %48, %51 : vector<4x8x1xf32>
    %53 = math.rsqrt %52 : vector<4x8x1xf32>
    %54 = vector.broadcast %53 : vector<4x8x1xf32> to vector<4x8x32xf32>
    %55 = arith.mulf %50, %54 : vector<4x8x32xf32>
    %56 = vector.shape_cast %36 : vector<1x32xf32> to vector<1x1x32xf32>
    %57 = vector.broadcast %56 : vector<1x1x32xf32> to vector<4x8x32xf32>
    %58 = arith.mulf %55, %57 : vector<4x8x32xf32>
    %59 = vector.shape_cast %37 : vector<1x32xf32> to vector<1x1x32xf32>
    %60 = vector.broadcast %59 : vector<1x1x32xf32> to vector<4x8x32xf32>
    %61 = arith.addf %58, %60 : vector<4x8x32xf32>
    %c0_25 = arith.constant 0 : index
    %c0_26 = arith.constant 0 : index
    %c0_27 = arith.constant 0 : index
    %c0_28 = arith.constant 0 : index
    %62 = vector.load %arg2[%c0_25, %c0_26, %c0_27, %c0_28] : memref<1x4x8x32xf32, #tpu.memory_space<vmem>>, vector<1x4x8x32xf32>
    %63 = vector.shape_cast %62 : vector<1x4x8x32xf32> to vector<4x8x32xf32>
    %64 = arith.addf %61, %63 : vector<4x8x32xf32>
    %c0_29 = arith.constant 0 : index
    %c0_30 = arith.constant 0 : index
    %c0_31 = arith.constant 0 : index
    %65 = vector.load %arg9[%c0_29, %c0_30, %c0_31] : memref<2x1x32xf32, #tpu.memory_space<vmem>>, vector<1x1x32xf32>
    %66 = vector.shape_cast %65 : vector<1x1x32xf32> to vector<1x32xf32>
    %c0_32 = arith.constant 0 : index
    %c0_33 = arith.constant 0 : index
    %c0_34 = arith.constant 0 : index
    %67 = vector.load %arg10[%c0_32, %c0_33, %c0_34] : memref<2x1x32xf32, #tpu.memory_space<vmem>>, vector<1x1x32xf32>
    %68 = vector.shape_cast %67 : vector<1x1x32xf32> to vector<1x32xf32>
    %c0_35 = arith.constant 0 : index
    %c0_36 = arith.constant 0 : index
    %c0_37 = arith.constant 0 : index
    %c0_38 = arith.constant 0 : index
    %69 = vector.load %arg11[%c0_35, %c0_36, %c0_37, %c0_38] : memref<2x4x32x8xf32, #tpu.memory_space<vmem>>, vector<1x4x32x8xf32>
    %70 = vector.shape_cast %69 : vector<1x4x32x8xf32> to vector<4x32x8xf32>
    %c0_39 = arith.constant 0 : index
    %c0_40 = arith.constant 0 : index
    %c0_41 = arith.constant 0 : index
    %c0_42 = arith.constant 0 : index
    %71 = vector.load %arg12[%c0_39, %c0_40, %c0_41, %c0_42] : memref<2x4x32x8xf32, #tpu.memory_space<vmem>>, vector<1x4x32x8xf32>
    %72 = vector.shape_cast %71 : vector<1x4x32x8xf32> to vector<4x32x8xf32>
    %c0_43 = arith.constant 0 : index
    %c0_44 = arith.constant 0 : index
    %c0_45 = arith.constant 0 : index
    %c0_46 = arith.constant 0 : index
    %73 = vector.load %arg13[%c0_43, %c0_44, %c0_45, %c0_46] : memref<2x4x32x8xf32, #tpu.memory_space<vmem>>, vector<1x4x32x8xf32>
    %74 = vector.shape_cast %73 : vector<1x4x32x8xf32> to vector<4x32x8xf32>
    %c0_47 = arith.constant 0 : index
    %c0_48 = arith.constant 0 : index
    %c0_49 = arith.constant 0 : index
    %c0_50 = arith.constant 0 : index
    %75 = vector.load %arg14[%c0_47, %c0_48, %c0_49, %c0_50] : memref<2x4x8x32xf32, #tpu.memory_space<vmem>>, vector<1x4x8x32xf32>
    %76 = vector.shape_cast %75 : vector<1x4x8x32xf32> to vector<4x8x32xf32>
    %c0_51 = arith.constant 0 : index
    %c0_52 = arith.constant 0 : index
    %c0_53 = arith.constant 0 : index
    %77 = vector.load %arg15[%c0_51, %c0_52, %c0_53] : memref<2x1x32xf32, #tpu.memory_space<vmem>>, vector<1x1x32xf32>
    %78 = vector.shape_cast %77 : vector<1x1x32xf32> to vector<1x32xf32>
    %cst_54 = arith.constant dense<0.000000e+00> : vector<4x8xf32>
    %79 = vector.multi_reduction <add>, %64, %cst_54 [2] : vector<4x8x32xf32> to vector<4x8xf32>
    %80 = vector.shape_cast %79 : vector<4x8xf32> to vector<4x8x1xf32>
    %cst_55 = arith.constant 3.200000e+01 : f32
    %81 = vector.broadcast %cst_55 : f32 to vector<4x8x1xf32>
    %82 = arith.divf %80, %81 : vector<4x8x1xf32>
    %83 = vector.broadcast %82 : vector<4x8x1xf32> to vector<4x8x32xf32>
    %84 = arith.subf %64, %83 : vector<4x8x32xf32>
    %85 = arith.mulf %84, %84 : vector<4x8x32xf32>
    %cst_56 = arith.constant dense<0.000000e+00> : vector<4x8xf32>
    %86 = vector.multi_reduction <add>, %85, %cst_56 [2] : vector<4x8x32xf32> to vector<4x8xf32>
    %87 = vector.shape_cast %86 : vector<4x8xf32> to vector<4x8x1xf32>
    %cst_57 = arith.constant 3.200000e+01 : f32
    %88 = vector.broadcast %cst_57 : f32 to vector<4x8x1xf32>
    %89 = arith.divf %87, %88 : vector<4x8x1xf32>
    %90 = vector.broadcast %82 : vector<4x8x1xf32> to vector<4x8x32xf32>
    %91 = arith.subf %64, %90 : vector<4x8x32xf32>
    %cst_58 = arith.constant 9.99999974E-6 : f32
    %92 = vector.broadcast %cst_58 : f32 to vector<4x8x1xf32>
    %93 = arith.addf %89, %92 : vector<4x8x1xf32>
    %94 = math.rsqrt %93 : vector<4x8x1xf32>
    %95 = vector.broadcast %94 : vector<4x8x1xf32> to vector<4x8x32xf32>
    %96 = arith.mulf %91, %95 : vector<4x8x32xf32>
    %97 = vector.shape_cast %66 : vector<1x32xf32> to vector<1x1x32xf32>
    %98 = vector.broadcast %97 : vector<1x1x32xf32> to vector<4x8x32xf32>
    %99 = arith.mulf %96, %98 : vector<4x8x32xf32>
    %100 = vector.shape_cast %68 : vector<1x32xf32> to vector<1x1x32xf32>
    %101 = vector.broadcast %100 : vector<1x1x32xf32> to vector<4x8x32xf32>
    %102 = arith.addf %99, %101 : vector<4x8x32xf32>
    %103 = vector.shape_cast %102 : vector<4x8x32xf32> to vector<4x1x8x32xf32>
    %104 = vector.shape_cast %103 : vector<4x1x8x32xf32> to vector<4x1x8x32xf32>
    %105 = vector.broadcast %104 : vector<4x1x8x32xf32> to vector<4x4x8x32xf32>
    %106 = vector.shape_cast %105 : vector<4x4x8x32xf32> to vector<16x8x32xf32>
    %107 = vector.extract_strided_slice %102 {offsets = [0, 0, 0], sizes = [4, 1, 32], strides = [1, 1, 1]} : vector<4x8x32xf32> to vector<4x1x32xf32>
    %108 = vector.shape_cast %107 : vector<4x1x32xf32> to vector<4x1x1x32xf32>
    %109 = vector.shape_cast %108 : vector<4x1x1x32xf32> to vector<4x1x1x32xf32>
    %110 = vector.broadcast %109 : vector<4x1x1x32xf32> to vector<4x4x1x32xf32>
    %111 = vector.shape_cast %110 : vector<4x4x1x32xf32> to vector<16x1x32xf32>
    %112 = vector.shape_cast %72 : vector<4x32x8xf32> to vector<1x4x32x8xf32>
    %113 = vector.shape_cast %112 : vector<1x4x32x8xf32> to vector<1x4x32x8xf32>
    %114 = vector.broadcast %113 : vector<1x4x32x8xf32> to vector<4x4x32x8xf32>
    %115 = vector.shape_cast %114 : vector<4x4x32x8xf32> to vector<16x32x8xf32>
    %cst_59 = arith.constant dense<0.000000e+00> : vector<16x8x8xf32>
    %116 = tpu.matmul %106, %115, %cst_59 {dimension_numbers = #tpu.dot_dimension_numbers<[2], [1], [1], [2], [0, 0, 0, 1, 1, 2], [0], [0]>} : vector<16x8x32xf32>, vector<16x32x8xf32>, vector<16x8x8xf32> -> vector<16x8x8xf32>
    %117 = vector.shape_cast %74 : vector<4x32x8xf32> to vector<1x4x32x8xf32>
    %118 = vector.shape_cast %117 : vector<1x4x32x8xf32> to vector<1x4x32x8xf32>
    %119 = vector.broadcast %118 : vector<1x4x32x8xf32> to vector<4x4x32x8xf32>
    %120 = vector.shape_cast %119 : vector<4x4x32x8xf32> to vector<16x32x8xf32>
    %cst_60 = arith.constant dense<0.000000e+00> : vector<16x8x8xf32>
    %121 = tpu.matmul %106, %120, %cst_60 {dimension_numbers = #tpu.dot_dimension_numbers<[2], [1], [1], [2], [0, 0, 0, 1, 1, 2], [0], [0]>} : vector<16x8x32xf32>, vector<16x32x8xf32>, vector<16x8x8xf32> -> vector<16x8x8xf32>
    %122 = vector.shape_cast %70 : vector<4x32x8xf32> to vector<1x4x32x8xf32>
    %123 = vector.shape_cast %122 : vector<1x4x32x8xf32> to vector<1x4x32x8xf32>
    %124 = vector.broadcast %123 : vector<1x4x32x8xf32> to vector<4x4x32x8xf32>
    %125 = vector.shape_cast %124 : vector<4x4x32x8xf32> to vector<16x32x8xf32>
    %cst_61 = arith.constant dense<0.000000e+00> : vector<16x1x8xf32>
    %126 = tpu.matmul %111, %125, %cst_61 {dimension_numbers = #tpu.dot_dimension_numbers<[2], [1], [1], [2], [0, 0, 0, 1, 1, 2], [0], [0]>} : vector<16x1x32xf32>, vector<16x32x8xf32>, vector<16x1x8xf32> -> vector<16x1x8xf32>
    %cst_62 = arith.constant dense<0.000000e+00> : vector<16x1x8xf32>
    %127 = tpu.matmul %126, %116, %cst_62 {dimension_numbers = #tpu.dot_dimension_numbers<[2], [2], [1], [1], [0, 0, 0, 1, 1, 1], [0], [0]>} : vector<16x1x8xf32>, vector<16x8x8xf32>, vector<16x1x8xf32> -> vector<16x1x8xf32>
    %cst_63 = arith.constant 0.353553385 : f32
    %128 = vector.broadcast %cst_63 : f32 to vector<16x1x8xf32>
    %129 = arith.mulf %127, %128 : vector<16x1x8xf32>
    %cst_64 = arith.constant dense<0xFF800000> : vector<16x1xf32>
    %130 = vector.multi_reduction <maximumf>, %129, %cst_64 [2] : vector<16x1x8xf32> to vector<16x1xf32>
    %131 = vector.shape_cast %130 : vector<16x1xf32> to vector<16x1x1xf32>
    %132 = vector.broadcast %131 : vector<16x1x1xf32> to vector<16x1x8xf32>
    %133 = arith.subf %129, %132 : vector<16x1x8xf32>
    %134 = math.exp %133 : vector<16x1x8xf32>
    %cst_65 = arith.constant dense<0.000000e+00> : vector<16x1xf32>
    %135 = vector.multi_reduction <add>, %134, %cst_65 [2] : vector<16x1x8xf32> to vector<16x1xf32>
    %136 = vector.shape_cast %135 : vector<16x1xf32> to vector<16x1x1xf32>
    %137 = tpu.reciprocal %136 {approx = true} : vector<16x1x1xf32> -> vector<16x1x1xf32>
    %138 = vector.broadcast %137 : vector<16x1x1xf32> to vector<16x1x8xf32>
    %139 = arith.mulf %134, %138 : vector<16x1x8xf32>
    %cst_66 = arith.constant dense<0.000000e+00> : vector<16x1x8xf32>
    %140 = tpu.matmul %139, %121, %cst_66 {dimension_numbers = #tpu.dot_dimension_numbers<[2], [1], [1], [2], [0, 0, 0, 1, 1, 2], [0], [0]>} : vector<16x1x8xf32>, vector<16x8x8xf32>, vector<16x1x8xf32> -> vector<16x1x8xf32>
    %141 = vector.shape_cast %76 : vector<4x8x32xf32> to vector<1x4x8x32xf32>
    %142 = vector.shape_cast %141 : vector<1x4x8x32xf32> to vector<1x4x8x32xf32>
    %143 = vector.broadcast %142 : vector<1x4x8x32xf32> to vector<4x4x8x32xf32>
    %144 = vector.shape_cast %143 : vector<4x4x8x32xf32> to vector<16x8x32xf32>
    %cst_67 = arith.constant dense<0.000000e+00> : vector<16x1x32xf32>
    %145 = tpu.matmul %140, %144, %cst_67 {dimension_numbers = #tpu.dot_dimension_numbers<[2], [1], [1], [2], [0, 0, 0, 1, 1, 2], [0], [0]>} : vector<16x1x8xf32>, vector<16x8x32xf32>, vector<16x1x32xf32> -> vector<16x1x32xf32>
    %146 = vector.shape_cast %145 : vector<16x1x32xf32> to vector<4x4x1x32xf32>
    %cst_68 = arith.constant dense<0.000000e+00> : vector<4x1x32xf32>
    %147 = vector.multi_reduction <add>, %146, %cst_68 [1] : vector<4x4x1x32xf32> to vector<4x1x32xf32>
    %148 = vector.shape_cast %78 : vector<1x32xf32> to vector<1x1x32xf32>
    %149 = vector.broadcast %148 : vector<1x1x32xf32> to vector<4x1x32xf32>
    %150 = arith.addf %147, %149 : vector<4x1x32xf32>
    %151 = vector.shape_cast %150 : vector<4x1x32xf32> to vector<4x32xf32>
    %152 = vector.extract_strided_slice %64 {offsets = [0, 0, 0], sizes = [4, 1, 32], strides = [1, 1, 1]} : vector<4x8x32xf32> to vector<4x1x32xf32>
    %153 = vector.shape_cast %152 : vector<4x1x32xf32> to vector<4x32xf32>
    %154 = arith.addf %151, %153 : vector<4x32xf32>
    %c0_69 = arith.constant 0 : index
    %c0_70 = arith.constant 0 : index
    %c0_71 = arith.constant 0 : index
    %155 = vector.load %arg16[%c0_69, %c0_70, %c0_71] : memref<2x1x32xf32, #tpu.memory_space<vmem>>, vector<1x1x32xf32>
    %156 = vector.shape_cast %155 : vector<1x1x32xf32> to vector<1x32xf32>
    %c0_72 = arith.constant 0 : index
    %c0_73 = arith.constant 0 : index
    %c0_74 = arith.constant 0 : index
    %157 = vector.load %arg17[%c0_72, %c0_73, %c0_74] : memref<2x1x32xf32, #tpu.memory_space<vmem>>, vector<1x1x32xf32>
    %158 = vector.shape_cast %157 : vector<1x1x32xf32> to vector<1x32xf32>
    %c0_75 = arith.constant 0 : index
    %c0_76 = arith.constant 0 : index
    %c0_77 = arith.constant 0 : index
    %159 = vector.load %arg18[%c0_75, %c0_76, %c0_77] : memref<2x32x128xf32, #tpu.memory_space<vmem>>, vector<1x32x128xf32>
    %160 = vector.shape_cast %159 : vector<1x32x128xf32> to vector<32x128xf32>
    %c0_78 = arith.constant 0 : index
    %c0_79 = arith.constant 0 : index
    %c0_80 = arith.constant 0 : index
    %161 = vector.load %arg19[%c0_78, %c0_79, %c0_80] : memref<2x1x128xf32, #tpu.memory_space<vmem>>, vector<1x1x128xf32>
    %162 = vector.shape_cast %161 : vector<1x1x128xf32> to vector<1x128xf32>
    %c0_81 = arith.constant 0 : index
    %c0_82 = arith.constant 0 : index
    %c0_83 = arith.constant 0 : index
    %163 = vector.load %arg20[%c0_81, %c0_82, %c0_83] : memref<2x128x32xf32, #tpu.memory_space<vmem>>, vector<1x128x32xf32>
    %164 = vector.shape_cast %163 : vector<1x128x32xf32> to vector<128x32xf32>
    %c0_84 = arith.constant 0 : index
    %c0_85 = arith.constant 0 : index
    %c0_86 = arith.constant 0 : index
    %165 = vector.load %arg21[%c0_84, %c0_85, %c0_86] : memref<2x1x32xf32, #tpu.memory_space<vmem>>, vector<1x1x32xf32>
    %166 = vector.shape_cast %165 : vector<1x1x32xf32> to vector<1x32xf32>
    %cst_87 = arith.constant dense<0.000000e+00> : vector<4xf32>
    %167 = vector.multi_reduction <add>, %154, %cst_87 [1] : vector<4x32xf32> to vector<4xf32>
    %168 = vector.shape_cast %167 : vector<4xf32> to vector<4x1xf32>
    %cst_88 = arith.constant 3.200000e+01 : f32
    %169 = vector.broadcast %cst_88 : f32 to vector<4x1xf32>
    %170 = arith.divf %168, %169 : vector<4x1xf32>
    %171 = vector.broadcast %170 : vector<4x1xf32> to vector<4x32xf32>
    %172 = arith.subf %154, %171 : vector<4x32xf32>
    %173 = arith.mulf %172, %172 : vector<4x32xf32>
    %cst_89 = arith.constant dense<0.000000e+00> : vector<4xf32>
    %174 = vector.multi_reduction <add>, %173, %cst_89 [1] : vector<4x32xf32> to vector<4xf32>
    %175 = vector.shape_cast %174 : vector<4xf32> to vector<4x1xf32>
    %cst_90 = arith.constant 3.200000e+01 : f32
    %176 = vector.broadcast %cst_90 : f32 to vector<4x1xf32>
    %177 = arith.divf %175, %176 : vector<4x1xf32>
    %178 = vector.broadcast %170 : vector<4x1xf32> to vector<4x32xf32>
    %179 = arith.subf %154, %178 : vector<4x32xf32>
    %cst_91 = arith.constant 9.99999974E-6 : f32
    %180 = vector.broadcast %cst_91 : f32 to vector<4x1xf32>
    %181 = arith.addf %177, %180 : vector<4x1xf32>
    %182 = math.rsqrt %181 : vector<4x1xf32>
    %183 = vector.broadcast %182 : vector<4x1xf32> to vector<4x32xf32>
    %184 = arith.mulf %179, %183 : vector<4x32xf32>
    %185 = vector.broadcast %156 : vector<1x32xf32> to vector<4x32xf32>
    %186 = arith.mulf %184, %185 : vector<4x32xf32>
    %187 = vector.broadcast %158 : vector<1x32xf32> to vector<4x32xf32>
    %188 = arith.addf %186, %187 : vector<4x32xf32>
    %cst_92 = arith.constant dense<0.000000e+00> : vector<4x128xf32>
    %189 = tpu.matmul %188, %160, %cst_92 {dimension_numbers = #tpu.dot_dimension_numbers<[1], [0], [0], [1], [0, 0, 1, 1], [], []>} : vector<4x32xf32>, vector<32x128xf32>, vector<4x128xf32> -> vector<4x128xf32>
    %190 = vector.broadcast %162 : vector<1x128xf32> to vector<4x128xf32>
    %191 = arith.addf %189, %190 : vector<4x128xf32>
    %cst_93 = arith.constant 5.000000e-01 : f32
    %192 = vector.broadcast %cst_93 : f32 to vector<4x128xf32>
    %193 = arith.mulf %192, %191 : vector<4x128xf32>
    %cst_94 = arith.constant 0.707106769 : f32
    %194 = vector.broadcast %cst_94 : f32 to vector<4x128xf32>
    %195 = arith.mulf %191, %194 : vector<4x128xf32>
    %196 = math.erf %195 : vector<4x128xf32>
    %cst_95 = arith.constant 1.000000e+00 : f32
    %197 = vector.broadcast %cst_95 : f32 to vector<4x128xf32>
    %198 = arith.addf %197, %196 : vector<4x128xf32>
    %199 = arith.mulf %193, %198 : vector<4x128xf32>
    %cst_96 = arith.constant dense<0.000000e+00> : vector<4x32xf32>
    %200 = tpu.matmul %199, %164, %cst_96 {dimension_numbers = #tpu.dot_dimension_numbers<[1], [0], [0], [1], [0, 0, 1, 1], [], []>} : vector<4x128xf32>, vector<128x32xf32>, vector<4x32xf32> -> vector<4x32xf32>
    %201 = vector.broadcast %166 : vector<1x32xf32> to vector<4x32xf32>
    %202 = arith.addf %200, %201 : vector<4x32xf32>
    %203 = arith.addf %202, %154 : vector<4x32xf32>
    %c0_97 = arith.constant 0 : index
    %c0_98 = arith.constant 0 : index
    %c0_99 = arith.constant 0 : index
    %204 = vector.load %arg22[%c0_97, %c0_98, %c0_99] : memref<2x1x32xf32, #tpu.memory_space<vmem>>, vector<1x1x32xf32>
    %205 = vector.shape_cast %204 : vector<1x1x32xf32> to vector<1x32xf32>
    %c0_100 = arith.constant 0 : index
    %c0_101 = arith.constant 0 : index
    %c0_102 = arith.constant 0 : index
    %206 = vector.load %arg23[%c0_100, %c0_101, %c0_102] : memref<2x1x32xf32, #tpu.memory_space<vmem>>, vector<1x1x32xf32>
    %207 = vector.shape_cast %206 : vector<1x1x32xf32> to vector<1x32xf32>
    %c0_103 = arith.constant 0 : index
    %c0_104 = arith.constant 0 : index
    %c0_105 = arith.constant 0 : index
    %c0_106 = arith.constant 0 : index
    %208 = vector.load %arg24[%c0_103, %c0_104, %c0_105, %c0_106] : memref<2x4x32x8xf32, #tpu.memory_space<vmem>>, vector<1x4x32x8xf32>
    %209 = vector.shape_cast %208 : vector<1x4x32x8xf32> to vector<4x32x8xf32>
    %c0_107 = arith.constant 0 : index
    %c0_108 = arith.constant 0 : index
    %c0_109 = arith.constant 0 : index
    %c0_110 = arith.constant 0 : index
    %210 = vector.load %arg25[%c0_107, %c0_108, %c0_109, %c0_110] : memref<2x4x32x8xf32, #tpu.memory_space<vmem>>, vector<1x4x32x8xf32>
    %211 = vector.shape_cast %210 : vector<1x4x32x8xf32> to vector<4x32x8xf32>
    %c0_111 = arith.constant 0 : index
    %c0_112 = arith.constant 0 : index
    %c0_113 = arith.constant 0 : index
    %c0_114 = arith.constant 0 : index
    %212 = vector.load %arg26[%c0_111, %c0_112, %c0_113, %c0_114] : memref<2x4x32x8xf32, #tpu.memory_space<vmem>>, vector<1x4x32x8xf32>
    %213 = vector.shape_cast %212 : vector<1x4x32x8xf32> to vector<4x32x8xf32>
    %c0_115 = arith.constant 0 : index
    %c0_116 = arith.constant 0 : index
    %c0_117 = arith.constant 0 : index
    %c0_118 = arith.constant 0 : index
    %214 = vector.load %arg27[%c0_115, %c0_116, %c0_117, %c0_118] : memref<2x4x8x32xf32, #tpu.memory_space<vmem>>, vector<1x4x8x32xf32>
    %215 = vector.shape_cast %214 : vector<1x4x8x32xf32> to vector<4x8x32xf32>
    %c0_119 = arith.constant 0 : index
    %c0_120 = arith.constant 0 : index
    %c0_121 = arith.constant 0 : index
    %216 = vector.load %arg28[%c0_119, %c0_120, %c0_121] : memref<2x1x32xf32, #tpu.memory_space<vmem>>, vector<1x1x32xf32>
    %217 = vector.shape_cast %216 : vector<1x1x32xf32> to vector<1x32xf32>
    %cst_122 = arith.constant dense<0.000000e+00> : vector<4xf32>
    %218 = vector.multi_reduction <add>, %203, %cst_122 [1] : vector<4x32xf32> to vector<4xf32>
    %219 = vector.shape_cast %218 : vector<4xf32> to vector<4x1xf32>
    %cst_123 = arith.constant 3.200000e+01 : f32
    %220 = vector.broadcast %cst_123 : f32 to vector<4x1xf32>
    %221 = arith.divf %219, %220 : vector<4x1xf32>
    %222 = vector.broadcast %221 : vector<4x1xf32> to vector<4x32xf32>
    %223 = arith.subf %203, %222 : vector<4x32xf32>
    %224 = arith.mulf %223, %223 : vector<4x32xf32>
    %cst_124 = arith.constant dense<0.000000e+00> : vector<4xf32>
    %225 = vector.multi_reduction <add>, %224, %cst_124 [1] : vector<4x32xf32> to vector<4xf32>
    %226 = vector.shape_cast %225 : vector<4xf32> to vector<4x1xf32>
    %cst_125 = arith.constant 3.200000e+01 : f32
    %227 = vector.broadcast %cst_125 : f32 to vector<4x1xf32>
    %228 = arith.divf %226, %227 : vector<4x1xf32>
    %229 = vector.broadcast %221 : vector<4x1xf32> to vector<4x32xf32>
    %230 = arith.subf %203, %229 : vector<4x32xf32>
    %cst_126 = arith.constant 9.99999974E-6 : f32
    %231 = vector.broadcast %cst_126 : f32 to vector<4x1xf32>
    %232 = arith.addf %228, %231 : vector<4x1xf32>
    %233 = math.rsqrt %232 : vector<4x1xf32>
    %234 = vector.broadcast %233 : vector<4x1xf32> to vector<4x32xf32>
    %235 = arith.mulf %230, %234 : vector<4x32xf32>
    %236 = vector.broadcast %205 : vector<1x32xf32> to vector<4x32xf32>
    %237 = arith.mulf %235, %236 : vector<4x32xf32>
    %238 = vector.broadcast %207 : vector<1x32xf32> to vector<4x32xf32>
    %239 = arith.addf %237, %238 : vector<4x32xf32>
    %240 = vector.shape_cast %239 : vector<4x32xf32> to vector<1x4x32xf32>
    %241 = vector.broadcast %240 : vector<1x4x32xf32> to vector<4x4x32xf32>
    %cst_127 = arith.constant dense<0.000000e+00> : vector<4x4x8xf32>
    %242 = tpu.matmul %241, %209, %cst_127 {dimension_numbers = #tpu.dot_dimension_numbers<[2], [1], [1], [2], [0, 0, 0, 1, 1, 2], [0], [0]>} : vector<4x4x32xf32>, vector<4x32x8xf32>, vector<4x4x8xf32> -> vector<4x4x8xf32>
    %cst_128 = arith.constant dense<0.000000e+00> : vector<4x4x8xf32>
    %243 = tpu.matmul %241, %211, %cst_128 {dimension_numbers = #tpu.dot_dimension_numbers<[2], [1], [1], [2], [0, 0, 0, 1, 1, 2], [0], [0]>} : vector<4x4x32xf32>, vector<4x32x8xf32>, vector<4x4x8xf32> -> vector<4x4x8xf32>
    %cst_129 = arith.constant dense<0.000000e+00> : vector<4x4x8xf32>
    %244 = tpu.matmul %241, %213, %cst_129 {dimension_numbers = #tpu.dot_dimension_numbers<[2], [1], [1], [2], [0, 0, 0, 1, 1, 2], [0], [0]>} : vector<4x4x32xf32>, vector<4x32x8xf32>, vector<4x4x8xf32> -> vector<4x4x8xf32>
    %cst_130 = arith.constant dense<0.000000e+00> : vector<4x4x4xf32>
    %245 = tpu.matmul %242, %243, %cst_130 {dimension_numbers = #tpu.dot_dimension_numbers<[2], [2], [1], [1], [0, 0, 0, 1, 1, 1], [0], [0]>} : vector<4x4x8xf32>, vector<4x4x8xf32>, vector<4x4x4xf32> -> vector<4x4x4xf32>
    %cst_131 = arith.constant 0.353553385 : f32
    %246 = vector.broadcast %cst_131 : f32 to vector<4x4x4xf32>
    %247 = arith.mulf %245, %246 : vector<4x4x4xf32>
    %cst_132 = arith.constant dense<0xFF800000> : vector<4x4xf32>
    %248 = vector.multi_reduction <maximumf>, %247, %cst_132 [2] : vector<4x4x4xf32> to vector<4x4xf32>
    %249 = vector.shape_cast %248 : vector<4x4xf32> to vector<4x4x1xf32>
    %250 = vector.broadcast %249 : vector<4x4x1xf32> to vector<4x4x4xf32>
    %251 = arith.subf %247, %250 : vector<4x4x4xf32>
    %252 = math.exp %251 : vector<4x4x4xf32>
    %cst_133 = arith.constant dense<0.000000e+00> : vector<4x4xf32>
    %253 = vector.multi_reduction <add>, %252, %cst_133 [2] : vector<4x4x4xf32> to vector<4x4xf32>
    %254 = vector.shape_cast %253 : vector<4x4xf32> to vector<4x4x1xf32>
    %255 = tpu.reciprocal %254 {approx = true} : vector<4x4x1xf32> -> vector<4x4x1xf32>
    %256 = vector.broadcast %255 : vector<4x4x1xf32> to vector<4x4x4xf32>
    %257 = arith.mulf %252, %256 : vector<4x4x4xf32>
    %cst_134 = arith.constant dense<0.000000e+00> : vector<4x4x8xf32>
    %258 = tpu.matmul %257, %244, %cst_134 {dimension_numbers = #tpu.dot_dimension_numbers<[2], [1], [1], [2], [0, 0, 0, 1, 1, 2], [0], [0]>} : vector<4x4x4xf32>, vector<4x4x8xf32>, vector<4x4x8xf32> -> vector<4x4x8xf32>
    %cst_135 = arith.constant dense<0.000000e+00> : vector<4x4x32xf32>
    %259 = tpu.matmul %258, %215, %cst_135 {dimension_numbers = #tpu.dot_dimension_numbers<[2], [1], [1], [2], [0, 0, 0, 1, 1, 2], [0], [0]>} : vector<4x4x8xf32>, vector<4x8x32xf32>, vector<4x4x32xf32> -> vector<4x4x32xf32>
    %cst_136 = arith.constant dense<0.000000e+00> : vector<4x32xf32>
    %260 = vector.multi_reduction <add>, %259, %cst_136 [0] : vector<4x4x32xf32> to vector<4x32xf32>
    %261 = vector.broadcast %217 : vector<1x32xf32> to vector<4x32xf32>
    %262 = arith.addf %260, %261 : vector<4x32xf32>
    %263 = arith.addf %262, %203 : vector<4x32xf32>
    %264 = vector.shape_cast %263 : vector<4x32xf32> to vector<1x4x32xf32>
    %c1 = arith.constant 1 : index
    %c0_137 = arith.constant 0 : index
    %c0_138 = arith.constant 0 : index
    %265 = vector.load %arg9[%c1, %c0_137, %c0_138] : memref<2x1x32xf32, #tpu.memory_space<vmem>>, vector<1x1x32xf32>
    %266 = vector.shape_cast %265 : vector<1x1x32xf32> to vector<1x32xf32>
    %c1_139 = arith.constant 1 : index
    %c0_140 = arith.constant 0 : index
    %c0_141 = arith.constant 0 : index
    %267 = vector.load %arg10[%c1_139, %c0_140, %c0_141] : memref<2x1x32xf32, #tpu.memory_space<vmem>>, vector<1x1x32xf32>
    %268 = vector.shape_cast %267 : vector<1x1x32xf32> to vector<1x32xf32>
    %c1_142 = arith.constant 1 : index
    %c0_143 = arith.constant 0 : index
    %c0_144 = arith.constant 0 : index
    %c0_145 = arith.constant 0 : index
    %269 = vector.load %arg11[%c1_142, %c0_143, %c0_144, %c0_145] : memref<2x4x32x8xf32, #tpu.memory_space<vmem>>, vector<1x4x32x8xf32>
    %270 = vector.shape_cast %269 : vector<1x4x32x8xf32> to vector<4x32x8xf32>
    %c1_146 = arith.constant 1 : index
    %c0_147 = arith.constant 0 : index
    %c0_148 = arith.constant 0 : index
    %c0_149 = arith.constant 0 : index
    %271 = vector.load %arg12[%c1_146, %c0_147, %c0_148, %c0_149] : memref<2x4x32x8xf32, #tpu.memory_space<vmem>>, vector<1x4x32x8xf32>
    %272 = vector.shape_cast %271 : vector<1x4x32x8xf32> to vector<4x32x8xf32>
    %c1_150 = arith.constant 1 : index
    %c0_151 = arith.constant 0 : index
    %c0_152 = arith.constant 0 : index
    %c0_153 = arith.constant 0 : index
    %273 = vector.load %arg13[%c1_150, %c0_151, %c0_152, %c0_153] : memref<2x4x32x8xf32, #tpu.memory_space<vmem>>, vector<1x4x32x8xf32>
    %274 = vector.shape_cast %273 : vector<1x4x32x8xf32> to vector<4x32x8xf32>
    %c1_154 = arith.constant 1 : index
    %c0_155 = arith.constant 0 : index
    %c0_156 = arith.constant 0 : index
    %c0_157 = arith.constant 0 : index
    %275 = vector.load %arg14[%c1_154, %c0_155, %c0_156, %c0_157] : memref<2x4x8x32xf32, #tpu.memory_space<vmem>>, vector<1x4x8x32xf32>
    %276 = vector.shape_cast %275 : vector<1x4x8x32xf32> to vector<4x8x32xf32>
    %c1_158 = arith.constant 1 : index
    %c0_159 = arith.constant 0 : index
    %c0_160 = arith.constant 0 : index
    %277 = vector.load %arg15[%c1_158, %c0_159, %c0_160] : memref<2x1x32xf32, #tpu.memory_space<vmem>>, vector<1x1x32xf32>
    %278 = vector.shape_cast %277 : vector<1x1x32xf32> to vector<1x32xf32>
    %cst_161 = arith.constant dense<0.000000e+00> : vector<1x4xf32>
    %279 = vector.multi_reduction <add>, %264, %cst_161 [2] : vector<1x4x32xf32> to vector<1x4xf32>
    %280 = vector.shape_cast %279 : vector<1x4xf32> to vector<1x4x1xf32>
    %cst_162 = arith.constant 3.200000e+01 : f32
    %281 = vector.broadcast %cst_162 : f32 to vector<1x4x1xf32>
    %282 = arith.divf %280, %281 : vector<1x4x1xf32>
    %283 = vector.broadcast %282 : vector<1x4x1xf32> to vector<1x4x32xf32>
    %284 = arith.subf %264, %283 : vector<1x4x32xf32>
    %285 = arith.mulf %284, %284 : vector<1x4x32xf32>
    %cst_163 = arith.constant dense<0.000000e+00> : vector<1x4xf32>
    %286 = vector.multi_reduction <add>, %285, %cst_163 [2] : vector<1x4x32xf32> to vector<1x4xf32>
    %287 = vector.shape_cast %286 : vector<1x4xf32> to vector<1x4x1xf32>
    %cst_164 = arith.constant 3.200000e+01 : f32
    %288 = vector.broadcast %cst_164 : f32 to vector<1x4x1xf32>
    %289 = arith.divf %287, %288 : vector<1x4x1xf32>
    %290 = vector.broadcast %282 : vector<1x4x1xf32> to vector<1x4x32xf32>
    %291 = arith.subf %264, %290 : vector<1x4x32xf32>
    %cst_165 = arith.constant 9.99999974E-6 : f32
    %292 = vector.broadcast %cst_165 : f32 to vector<1x4x1xf32>
    %293 = arith.addf %289, %292 : vector<1x4x1xf32>
    %294 = math.rsqrt %293 : vector<1x4x1xf32>
    %295 = vector.broadcast %294 : vector<1x4x1xf32> to vector<1x4x32xf32>
    %296 = arith.mulf %291, %295 : vector<1x4x32xf32>
    %297 = vector.shape_cast %266 : vector<1x32xf32> to vector<1x1x32xf32>
    %298 = vector.broadcast %297 : vector<1x1x32xf32> to vector<1x4x32xf32>
    %299 = arith.mulf %296, %298 : vector<1x4x32xf32>
    %300 = vector.shape_cast %268 : vector<1x32xf32> to vector<1x1x32xf32>
    %301 = vector.broadcast %300 : vector<1x1x32xf32> to vector<1x4x32xf32>
    %302 = arith.addf %299, %301 : vector<1x4x32xf32>
    %303 = vector.shape_cast %302 : vector<1x4x32xf32> to vector<1x1x4x32xf32>
    %304 = vector.shape_cast %303 : vector<1x1x4x32xf32> to vector<1x1x4x32xf32>
    %305 = vector.broadcast %304 : vector<1x1x4x32xf32> to vector<1x4x4x32xf32>
    %306 = vector.shape_cast %305 : vector<1x4x4x32xf32> to vector<4x4x32xf32>
    %307 = vector.extract_strided_slice %302 {offsets = [0, 0, 0], sizes = [1, 1, 32], strides = [1, 1, 1]} : vector<1x4x32xf32> to vector<1x1x32xf32>
    %308 = vector.shape_cast %307 : vector<1x1x32xf32> to vector<1x1x1x32xf32>
    %309 = vector.shape_cast %308 : vector<1x1x1x32xf32> to vector<1x1x1x32xf32>
    %310 = vector.broadcast %309 : vector<1x1x1x32xf32> to vector<1x4x1x32xf32>
    %311 = vector.shape_cast %310 : vector<1x4x1x32xf32> to vector<4x1x32xf32>
    %312 = vector.shape_cast %272 : vector<4x32x8xf32> to vector<1x4x32x8xf32>
    %313 = vector.shape_cast %312 : vector<1x4x32x8xf32> to vector<4x32x8xf32>
    %cst_166 = arith.constant dense<0.000000e+00> : vector<4x4x8xf32>
    %314 = tpu.matmul %306, %313, %cst_166 {dimension_numbers = #tpu.dot_dimension_numbers<[2], [1], [1], [2], [0, 0, 0, 1, 1, 2], [0], [0]>} : vector<4x4x32xf32>, vector<4x32x8xf32>, vector<4x4x8xf32> -> vector<4x4x8xf32>
    %315 = vector.shape_cast %274 : vector<4x32x8xf32> to vector<1x4x32x8xf32>
    %316 = vector.shape_cast %315 : vector<1x4x32x8xf32> to vector<4x32x8xf32>
    %cst_167 = arith.constant dense<0.000000e+00> : vector<4x4x8xf32>
    %317 = tpu.matmul %306, %316, %cst_167 {dimension_numbers = #tpu.dot_dimension_numbers<[2], [1], [1], [2], [0, 0, 0, 1, 1, 2], [0], [0]>} : vector<4x4x32xf32>, vector<4x32x8xf32>, vector<4x4x8xf32> -> vector<4x4x8xf32>
    %318 = vector.shape_cast %270 : vector<4x32x8xf32> to vector<1x4x32x8xf32>
    %319 = vector.shape_cast %318 : vector<1x4x32x8xf32> to vector<4x32x8xf32>
    %cst_168 = arith.constant dense<0.000000e+00> : vector<4x1x8xf32>
    %320 = tpu.matmul %311, %319, %cst_168 {dimension_numbers = #tpu.dot_dimension_numbers<[2], [1], [1], [2], [0, 0, 0, 1, 1, 2], [0], [0]>} : vector<4x1x32xf32>, vector<4x32x8xf32>, vector<4x1x8xf32> -> vector<4x1x8xf32>
    %cst_169 = arith.constant dense<0.000000e+00> : vector<4x1x4xf32>
    %321 = tpu.matmul %320, %314, %cst_169 {dimension_numbers = #tpu.dot_dimension_numbers<[2], [2], [1], [1], [0, 0, 0, 1, 1, 1], [0], [0]>} : vector<4x1x8xf32>, vector<4x4x8xf32>, vector<4x1x4xf32> -> vector<4x1x4xf32>
    %cst_170 = arith.constant 0.353553385 : f32
    %322 = vector.broadcast %cst_170 : f32 to vector<4x1x4xf32>
    %323 = arith.mulf %321, %322 : vector<4x1x4xf32>
    %cst_171 = arith.constant dense<0xFF800000> : vector<4x1xf32>
    %324 = vector.multi_reduction <maximumf>, %323, %cst_171 [2] : vector<4x1x4xf32> to vector<4x1xf32>
    %325 = vector.shape_cast %324 : vector<4x1xf32> to vector<4x1x1xf32>
    %326 = vector.broadcast %325 : vector<4x1x1xf32> to vector<4x1x4xf32>
    %327 = arith.subf %323, %326 : vector<4x1x4xf32>
    %328 = math.exp %327 : vector<4x1x4xf32>
    %cst_172 = arith.constant dense<0.000000e+00> : vector<4x1xf32>
    %329 = vector.multi_reduction <add>, %328, %cst_172 [2] : vector<4x1x4xf32> to vector<4x1xf32>
    %330 = vector.shape_cast %329 : vector<4x1xf32> to vector<4x1x1xf32>
    %331 = tpu.reciprocal %330 {approx = true} : vector<4x1x1xf32> -> vector<4x1x1xf32>
    %332 = vector.broadcast %331 : vector<4x1x1xf32> to vector<4x1x4xf32>
    %333 = arith.mulf %328, %332 : vector<4x1x4xf32>
    %cst_173 = arith.constant dense<0.000000e+00> : vector<4x1x8xf32>
    %334 = tpu.matmul %333, %317, %cst_173 {dimension_numbers = #tpu.dot_dimension_numbers<[2], [1], [1], [2], [0, 0, 0, 1, 1, 2], [0], [0]>} : vector<4x1x4xf32>, vector<4x4x8xf32>, vector<4x1x8xf32> -> vector<4x1x8xf32>
    %335 = vector.shape_cast %276 : vector<4x8x32xf32> to vector<1x4x8x32xf32>
    %336 = vector.shape_cast %335 : vector<1x4x8x32xf32> to vector<4x8x32xf32>
    %cst_174 = arith.constant dense<0.000000e+00> : vector<4x1x32xf32>
    %337 = tpu.matmul %334, %336, %cst_174 {dimension_numbers = #tpu.dot_dimension_numbers<[2], [1], [1], [2], [0, 0, 0, 1, 1, 2], [0], [0]>} : vector<4x1x8xf32>, vector<4x8x32xf32>, vector<4x1x32xf32> -> vector<4x1x32xf32>
    %338 = vector.shape_cast %337 : vector<4x1x32xf32> to vector<1x4x1x32xf32>
    %cst_175 = arith.constant dense<0.000000e+00> : vector<1x1x32xf32>
    %339 = vector.multi_reduction <add>, %338, %cst_175 [1] : vector<1x4x1x32xf32> to vector<1x1x32xf32>
    %340 = vector.shape_cast %278 : vector<1x32xf32> to vector<1x1x32xf32>
    %341 = arith.addf %339, %340 : vector<1x1x32xf32>
    %342 = vector.shape_cast %341 : vector<1x1x32xf32> to vector<1x32xf32>
    %343 = vector.extract_strided_slice %264 {offsets = [0, 0, 0], sizes = [1, 1, 32], strides = [1, 1, 1]} : vector<1x4x32xf32> to vector<1x1x32xf32>
    %344 = vector.shape_cast %343 : vector<1x1x32xf32> to vector<1x32xf32>
    %345 = arith.addf %342, %344 : vector<1x32xf32>
    %c1_176 = arith.constant 1 : index
    %c0_177 = arith.constant 0 : index
    %c0_178 = arith.constant 0 : index
    %346 = vector.load %arg16[%c1_176, %c0_177, %c0_178] : memref<2x1x32xf32, #tpu.memory_space<vmem>>, vector<1x1x32xf32>
    %347 = vector.shape_cast %346 : vector<1x1x32xf32> to vector<1x32xf32>
    %c1_179 = arith.constant 1 : index
    %c0_180 = arith.constant 0 : index
    %c0_181 = arith.constant 0 : index
    %348 = vector.load %arg17[%c1_179, %c0_180, %c0_181] : memref<2x1x32xf32, #tpu.memory_space<vmem>>, vector<1x1x32xf32>
    %349 = vector.shape_cast %348 : vector<1x1x32xf32> to vector<1x32xf32>
    %c1_182 = arith.constant 1 : index
    %c0_183 = arith.constant 0 : index
    %c0_184 = arith.constant 0 : index
    %350 = vector.load %arg18[%c1_182, %c0_183, %c0_184] : memref<2x32x128xf32, #tpu.memory_space<vmem>>, vector<1x32x128xf32>
    %351 = vector.shape_cast %350 : vector<1x32x128xf32> to vector<32x128xf32>
    %c1_185 = arith.constant 1 : index
    %c0_186 = arith.constant 0 : index
    %c0_187 = arith.constant 0 : index
    %352 = vector.load %arg19[%c1_185, %c0_186, %c0_187] : memref<2x1x128xf32, #tpu.memory_space<vmem>>, vector<1x1x128xf32>
    %353 = vector.shape_cast %352 : vector<1x1x128xf32> to vector<1x128xf32>
    %c1_188 = arith.constant 1 : index
    %c0_189 = arith.constant 0 : index
    %c0_190 = arith.constant 0 : index
    %354 = vector.load %arg20[%c1_188, %c0_189, %c0_190] : memref<2x128x32xf32, #tpu.memory_space<vmem>>, vector<1x128x32xf32>
    %355 = vector.shape_cast %354 : vector<1x128x32xf32> to vector<128x32xf32>
    %c1_191 = arith.constant 1 : index
    %c0_192 = arith.constant 0 : index
    %c0_193 = arith.constant 0 : index
    %356 = vector.load %arg21[%c1_191, %c0_192, %c0_193] : memref<2x1x32xf32, #tpu.memory_space<vmem>>, vector<1x1x32xf32>
    %357 = vector.shape_cast %356 : vector<1x1x32xf32> to vector<1x32xf32>
    %cst_194 = arith.constant dense<0.000000e+00> : vector<1xf32>
    %358 = vector.multi_reduction <add>, %345, %cst_194 [1] : vector<1x32xf32> to vector<1xf32>
    %359 = vector.shape_cast %358 : vector<1xf32> to vector<1x1xf32>
    %cst_195 = arith.constant 3.200000e+01 : f32
    %360 = vector.broadcast %cst_195 : f32 to vector<1x1xf32>
    %361 = arith.divf %359, %360 : vector<1x1xf32>
    %362 = vector.broadcast %361 : vector<1x1xf32> to vector<1x32xf32>
    %363 = arith.subf %345, %362 : vector<1x32xf32>
    %364 = arith.mulf %363, %363 : vector<1x32xf32>
    %cst_196 = arith.constant dense<0.000000e+00> : vector<1xf32>
    %365 = vector.multi_reduction <add>, %364, %cst_196 [1] : vector<1x32xf32> to vector<1xf32>
    %366 = vector.shape_cast %365 : vector<1xf32> to vector<1x1xf32>
    %cst_197 = arith.constant 3.200000e+01 : f32
    %367 = vector.broadcast %cst_197 : f32 to vector<1x1xf32>
    %368 = arith.divf %366, %367 : vector<1x1xf32>
    %369 = vector.broadcast %361 : vector<1x1xf32> to vector<1x32xf32>
    %370 = arith.subf %345, %369 : vector<1x32xf32>
    %cst_198 = arith.constant 9.99999974E-6 : f32
    %371 = vector.broadcast %cst_198 : f32 to vector<1x1xf32>
    %372 = arith.addf %368, %371 : vector<1x1xf32>
    %373 = math.rsqrt %372 : vector<1x1xf32>
    %374 = vector.broadcast %373 : vector<1x1xf32> to vector<1x32xf32>
    %375 = arith.mulf %370, %374 : vector<1x32xf32>
    %376 = arith.mulf %375, %347 : vector<1x32xf32>
    %377 = arith.addf %376, %349 : vector<1x32xf32>
    %cst_199 = arith.constant dense<0.000000e+00> : vector<1x128xf32>
    %378 = tpu.matmul %377, %351, %cst_199 {dimension_numbers = #tpu.dot_dimension_numbers<[1], [0], [0], [1], [0, 0, 1, 1], [], []>} : vector<1x32xf32>, vector<32x128xf32>, vector<1x128xf32> -> vector<1x128xf32>
    %379 = arith.addf %378, %353 : vector<1x128xf32>
    %cst_200 = arith.constant 5.000000e-01 : f32
    %380 = vector.broadcast %cst_200 : f32 to vector<1x128xf32>
    %381 = arith.mulf %380, %379 : vector<1x128xf32>
    %cst_201 = arith.constant 0.707106769 : f32
    %382 = vector.broadcast %cst_201 : f32 to vector<1x128xf32>
    %383 = arith.mulf %379, %382 : vector<1x128xf32>
    %384 = math.erf %383 : vector<1x128xf32>
    %cst_202 = arith.constant 1.000000e+00 : f32
    %385 = vector.broadcast %cst_202 : f32 to vector<1x128xf32>
    %386 = arith.addf %385, %384 : vector<1x128xf32>
    %387 = arith.mulf %381, %386 : vector<1x128xf32>
    %cst_203 = arith.constant dense<0.000000e+00> : vector<1x32xf32>
    %388 = tpu.matmul %387, %355, %cst_203 {dimension_numbers = #tpu.dot_dimension_numbers<[1], [0], [0], [1], [0, 0, 1, 1], [], []>} : vector<1x128xf32>, vector<128x32xf32>, vector<1x32xf32> -> vector<1x32xf32>
    %389 = arith.addf %388, %357 : vector<1x32xf32>
    %390 = arith.addf %389, %345 : vector<1x32xf32>
    %c1_204 = arith.constant 1 : index
    %c0_205 = arith.constant 0 : index
    %c0_206 = arith.constant 0 : index
    %391 = vector.load %arg22[%c1_204, %c0_205, %c0_206] : memref<2x1x32xf32, #tpu.memory_space<vmem>>, vector<1x1x32xf32>
    %392 = vector.shape_cast %391 : vector<1x1x32xf32> to vector<1x32xf32>
    %c1_207 = arith.constant 1 : index
    %c0_208 = arith.constant 0 : index
    %c0_209 = arith.constant 0 : index
    %393 = vector.load %arg23[%c1_207, %c0_208, %c0_209] : memref<2x1x32xf32, #tpu.memory_space<vmem>>, vector<1x1x32xf32>
    %394 = vector.shape_cast %393 : vector<1x1x32xf32> to vector<1x32xf32>
    %c1_210 = arith.constant 1 : index
    %c0_211 = arith.constant 0 : index
    %c0_212 = arith.constant 0 : index
    %c0_213 = arith.constant 0 : index
    %395 = vector.load %arg24[%c1_210, %c0_211, %c0_212, %c0_213] : memref<2x4x32x8xf32, #tpu.memory_space<vmem>>, vector<1x4x32x8xf32>
    %396 = vector.shape_cast %395 : vector<1x4x32x8xf32> to vector<4x32x8xf32>
    %c1_214 = arith.constant 1 : index
    %c0_215 = arith.constant 0 : index
    %c0_216 = arith.constant 0 : index
    %c0_217 = arith.constant 0 : index
    %397 = vector.load %arg25[%c1_214, %c0_215, %c0_216, %c0_217] : memref<2x4x32x8xf32, #tpu.memory_space<vmem>>, vector<1x4x32x8xf32>
    %398 = vector.shape_cast %397 : vector<1x4x32x8xf32> to vector<4x32x8xf32>
    %c1_218 = arith.constant 1 : index
    %c0_219 = arith.constant 0 : index
    %c0_220 = arith.constant 0 : index
    %c0_221 = arith.constant 0 : index
    %399 = vector.load %arg26[%c1_218, %c0_219, %c0_220, %c0_221] : memref<2x4x32x8xf32, #tpu.memory_space<vmem>>, vector<1x4x32x8xf32>
    %400 = vector.shape_cast %399 : vector<1x4x32x8xf32> to vector<4x32x8xf32>
    %c1_222 = arith.constant 1 : index
    %c0_223 = arith.constant 0 : index
    %c0_224 = arith.constant 0 : index
    %c0_225 = arith.constant 0 : index
    %401 = vector.load %arg27[%c1_222, %c0_223, %c0_224, %c0_225] : memref<2x4x8x32xf32, #tpu.memory_space<vmem>>, vector<1x4x8x32xf32>
    %402 = vector.shape_cast %401 : vector<1x4x8x32xf32> to vector<4x8x32xf32>
    %c1_226 = arith.constant 1 : index
    %c0_227 = arith.constant 0 : index
    %c0_228 = arith.constant 0 : index
    %403 = vector.load %arg28[%c1_226, %c0_227, %c0_228] : memref<2x1x32xf32, #tpu.memory_space<vmem>>, vector<1x1x32xf32>
    %404 = vector.shape_cast %403 : vector<1x1x32xf32> to vector<1x32xf32>
    %cst_229 = arith.constant dense<0.000000e+00> : vector<1xf32>
    %405 = vector.multi_reduction <add>, %390, %cst_229 [1] : vector<1x32xf32> to vector<1xf32>
    %406 = vector.shape_cast %405 : vector<1xf32> to vector<1x1xf32>
    %cst_230 = arith.constant 3.200000e+01 : f32
    %407 = vector.broadcast %cst_230 : f32 to vector<1x1xf32>
    %408 = arith.divf %406, %407 : vector<1x1xf32>
    %409 = vector.broadcast %408 : vector<1x1xf32> to vector<1x32xf32>
    %410 = arith.subf %390, %409 : vector<1x32xf32>
    %411 = arith.mulf %410, %410 : vector<1x32xf32>
    %cst_231 = arith.constant dense<0.000000e+00> : vector<1xf32>
    %412 = vector.multi_reduction <add>, %411, %cst_231 [1] : vector<1x32xf32> to vector<1xf32>
    %413 = vector.shape_cast %412 : vector<1xf32> to vector<1x1xf32>
    %cst_232 = arith.constant 3.200000e+01 : f32
    %414 = vector.broadcast %cst_232 : f32 to vector<1x1xf32>
    %415 = arith.divf %413, %414 : vector<1x1xf32>
    %416 = vector.broadcast %408 : vector<1x1xf32> to vector<1x32xf32>
    %417 = arith.subf %390, %416 : vector<1x32xf32>
    %cst_233 = arith.constant 9.99999974E-6 : f32
    %418 = vector.broadcast %cst_233 : f32 to vector<1x1xf32>
    %419 = arith.addf %415, %418 : vector<1x1xf32>
    %420 = math.rsqrt %419 : vector<1x1xf32>
    %421 = vector.broadcast %420 : vector<1x1xf32> to vector<1x32xf32>
    %422 = arith.mulf %417, %421 : vector<1x32xf32>
    %423 = arith.mulf %422, %392 : vector<1x32xf32>
    %424 = arith.addf %423, %394 : vector<1x32xf32>
    %425 = vector.shape_cast %424 : vector<1x32xf32> to vector<1x1x32xf32>
    %426 = vector.broadcast %425 : vector<1x1x32xf32> to vector<4x1x32xf32>
    %cst_234 = arith.constant dense<0.000000e+00> : vector<4x1x8xf32>
    %427 = tpu.matmul %426, %396, %cst_234 {dimension_numbers = #tpu.dot_dimension_numbers<[2], [1], [1], [2], [0, 0, 0, 1, 1, 2], [0], [0]>} : vector<4x1x32xf32>, vector<4x32x8xf32>, vector<4x1x8xf32> -> vector<4x1x8xf32>
    %cst_235 = arith.constant dense<0.000000e+00> : vector<4x1x8xf32>
    %428 = tpu.matmul %426, %398, %cst_235 {dimension_numbers = #tpu.dot_dimension_numbers<[2], [1], [1], [2], [0, 0, 0, 1, 1, 2], [0], [0]>} : vector<4x1x32xf32>, vector<4x32x8xf32>, vector<4x1x8xf32> -> vector<4x1x8xf32>
    %cst_236 = arith.constant dense<0.000000e+00> : vector<4x1x8xf32>
    %429 = tpu.matmul %426, %400, %cst_236 {dimension_numbers = #tpu.dot_dimension_numbers<[2], [1], [1], [2], [0, 0, 0, 1, 1, 2], [0], [0]>} : vector<4x1x32xf32>, vector<4x32x8xf32>, vector<4x1x8xf32> -> vector<4x1x8xf32>
    %cst_237 = arith.constant dense<0.000000e+00> : vector<4x1x1xf32>
    %430 = tpu.matmul %427, %428, %cst_237 {dimension_numbers = #tpu.dot_dimension_numbers<[2], [2], [1], [1], [0, 0, 0, 1, 1, 1], [0], [0]>} : vector<4x1x8xf32>, vector<4x1x8xf32>, vector<4x1x1xf32> -> vector<4x1x1xf32>
    %cst_238 = arith.constant 0.353553385 : f32
    %431 = vector.broadcast %cst_238 : f32 to vector<4x1x1xf32>
    %432 = arith.mulf %430, %431 : vector<4x1x1xf32>
    %cst_239 = arith.constant dense<0xFF800000> : vector<4x1xf32>
    %433 = vector.multi_reduction <maximumf>, %432, %cst_239 [2] : vector<4x1x1xf32> to vector<4x1xf32>
    %434 = vector.shape_cast %433 : vector<4x1xf32> to vector<4x1x1xf32>
    %435 = arith.subf %432, %434 : vector<4x1x1xf32>
    %436 = math.exp %435 : vector<4x1x1xf32>
    %cst_240 = arith.constant dense<0.000000e+00> : vector<4x1xf32>
    %437 = vector.multi_reduction <add>, %436, %cst_240 [2] : vector<4x1x1xf32> to vector<4x1xf32>
    %438 = vector.shape_cast %437 : vector<4x1xf32> to vector<4x1x1xf32>
    %439 = tpu.reciprocal %438 {approx = true} : vector<4x1x1xf32> -> vector<4x1x1xf32>
    %440 = arith.mulf %436, %439 : vector<4x1x1xf32>
    %cst_241 = arith.constant dense<0.000000e+00> : vector<4x1x8xf32>
    %441 = tpu.matmul %440, %429, %cst_241 {dimension_numbers = #tpu.dot_dimension_numbers<[2], [1], [1], [2], [0, 0, 0, 1, 1, 2], [0], [0]>} : vector<4x1x1xf32>, vector<4x1x8xf32>, vector<4x1x8xf32> -> vector<4x1x8xf32>
    %cst_242 = arith.constant dense<0.000000e+00> : vector<4x1x32xf32>
    %442 = tpu.matmul %441, %402, %cst_242 {dimension_numbers = #tpu.dot_dimension_numbers<[2], [1], [1], [2], [0, 0, 0, 1, 1, 2], [0], [0]>} : vector<4x1x8xf32>, vector<4x8x32xf32>, vector<4x1x32xf32> -> vector<4x1x32xf32>
    %cst_243 = arith.constant dense<0.000000e+00> : vector<1x32xf32>
    %443 = vector.multi_reduction <add>, %442, %cst_243 [0] : vector<4x1x32xf32> to vector<1x32xf32>
    %444 = arith.addf %443, %404 : vector<1x32xf32>
    %445 = arith.addf %444, %390 : vector<1x32xf32>
    %c0_244 = arith.constant 0 : index
    %c0_245 = arith.constant 0 : index
    %446 = vector.load %arg29[%c0_244, %c0_245] : memref<1x32xf32, #tpu.memory_space<vmem>>, vector<1x32xf32>
    %c0_246 = arith.constant 0 : index
    %c0_247 = arith.constant 0 : index
    %447 = vector.load %arg30[%c0_246, %c0_247] : memref<1x32xf32, #tpu.memory_space<vmem>>, vector<1x32xf32>
    %cst_248 = arith.constant dense<0.000000e+00> : vector<1xf32>
    %448 = vector.multi_reduction <add>, %445, %cst_248 [1] : vector<1x32xf32> to vector<1xf32>
    %449 = vector.shape_cast %448 : vector<1xf32> to vector<1x1xf32>
    %cst_249 = arith.constant 3.200000e+01 : f32
    %450 = vector.broadcast %cst_249 : f32 to vector<1x1xf32>
    %451 = arith.divf %449, %450 : vector<1x1xf32>
    %452 = vector.broadcast %451 : vector<1x1xf32> to vector<1x32xf32>
    %453 = arith.subf %445, %452 : vector<1x32xf32>
    %454 = arith.mulf %453, %453 : vector<1x32xf32>
    %cst_250 = arith.constant dense<0.000000e+00> : vector<1xf32>
    %455 = vector.multi_reduction <add>, %454, %cst_250 [1] : vector<1x32xf32> to vector<1xf32>
    %456 = vector.shape_cast %455 : vector<1xf32> to vector<1x1xf32>
    %cst_251 = arith.constant 3.200000e+01 : f32
    %457 = vector.broadcast %cst_251 : f32 to vector<1x1xf32>
    %458 = arith.divf %456, %457 : vector<1x1xf32>
    %459 = vector.broadcast %451 : vector<1x1xf32> to vector<1x32xf32>
    %460 = arith.subf %445, %459 : vector<1x32xf32>
    %cst_252 = arith.constant 9.99999974E-6 : f32
    %461 = vector.broadcast %cst_252 : f32 to vector<1x1xf32>
    %462 = arith.addf %458, %461 : vector<1x1xf32>
    %463 = math.rsqrt %462 : vector<1x1xf32>
    %464 = vector.broadcast %463 : vector<1x1xf32> to vector<1x32xf32>
    %465 = arith.mulf %460, %464 : vector<1x32xf32>
    %466 = arith.mulf %465, %446 : vector<1x32xf32>
    %467 = arith.addf %466, %447 : vector<1x32xf32>
    %c0_253 = arith.constant 0 : index
    %c0_254 = arith.constant 0 : index
    %468 = vector.load %arg31[%c0_253, %c0_254] : memref<1x32xf32, #tpu.memory_space<vmem>>, vector<1x32xf32>
    %c0_255 = arith.constant 0 : index
    %c0_256 = arith.constant 0 : index
    %469 = vector.load %arg32[%c0_255, %c0_256] : memref<1x32xf32, #tpu.memory_space<vmem>>, vector<1x32xf32>
    %cst_257 = arith.constant dense<0.000000e+00> : vector<1xf32>
    %470 = vector.multi_reduction <add>, %467, %cst_257 [1] : vector<1x32xf32> to vector<1xf32>
    %471 = vector.shape_cast %470 : vector<1xf32> to vector<1x1xf32>
    %cst_258 = arith.constant 3.200000e+01 : f32
    %472 = vector.broadcast %cst_258 : f32 to vector<1x1xf32>
    %473 = arith.divf %471, %472 : vector<1x1xf32>
    %474 = vector.broadcast %473 : vector<1x1xf32> to vector<1x32xf32>
    %475 = arith.subf %467, %474 : vector<1x32xf32>
    %476 = arith.mulf %475, %475 : vector<1x32xf32>
    %cst_259 = arith.constant dense<0.000000e+00> : vector<1xf32>
    %477 = vector.multi_reduction <add>, %476, %cst_259 [1] : vector<1x32xf32> to vector<1xf32>
    %478 = vector.shape_cast %477 : vector<1xf32> to vector<1x1xf32>
    %cst_260 = arith.constant 3.200000e+01 : f32
    %479 = vector.broadcast %cst_260 : f32 to vector<1x1xf32>
    %480 = arith.divf %478, %479 : vector<1x1xf32>
    %481 = vector.broadcast %473 : vector<1x1xf32> to vector<1x32xf32>
    %482 = arith.subf %467, %481 : vector<1x32xf32>
    %cst_261 = arith.constant 9.99999974E-6 : f32
    %483 = vector.broadcast %cst_261 : f32 to vector<1x1xf32>
    %484 = arith.addf %480, %483 : vector<1x1xf32>
    %485 = math.rsqrt %484 : vector<1x1xf32>
    %486 = vector.broadcast %485 : vector<1x1xf32> to vector<1x32xf32>
    %487 = arith.mulf %482, %486 : vector<1x32xf32>
    %488 = arith.mulf %487, %468 : vector<1x32xf32>
    %489 = arith.addf %488, %469 : vector<1x32xf32>
    %c0_262 = arith.constant 0 : index
    %c0_263 = arith.constant 0 : index
    %490 = vector.load %arg33[%c0_262, %c0_263] : memref<32x124xf32, #tpu.memory_space<vmem>>, vector<32x124xf32>
    %cst_264 = arith.constant dense<0.000000e+00> : vector<1x124xf32>
    %491 = tpu.matmul %489, %490, %cst_264 {dimension_numbers = #tpu.dot_dimension_numbers<[1], [0], [0], [1], [0, 0, 1, 1], [], []>} : vector<1x32xf32>, vector<32x124xf32>, vector<1x124xf32> -> vector<1x124xf32>
    %c0_265 = arith.constant 0 : index
    %c0_266 = arith.constant 0 : index
    %492 = vector.load %arg34[%c0_265, %c0_266] : memref<1x124xf32, #tpu.memory_space<vmem>>, vector<1x124xf32>
    %493 = arith.addf %491, %492 : vector<1x124xf32>
    %cst_267 = arith.constant dense<0xFF800000> : vector<1xf32>
    %494 = vector.multi_reduction <maximumf>, %493, %cst_267 [1] : vector<1x124xf32> to vector<1xf32>
    %495 = vector.shape_cast %494 : vector<1xf32> to vector<1x1xf32>
    %496 = vector.broadcast %495 : vector<1x1xf32> to vector<1x124xf32>
    %497 = arith.subf %493, %496 : vector<1x124xf32>
    %498 = math.exp %497 : vector<1x124xf32>
    %cst_268 = arith.constant dense<0.000000e+00> : vector<1xf32>
    %499 = vector.multi_reduction <add>, %498, %cst_268 [1] : vector<1x124xf32> to vector<1xf32>
    %500 = vector.shape_cast %499 : vector<1xf32> to vector<1x1xf32>
    %501 = vector.broadcast %500 : vector<1x1xf32> to vector<1x124xf32>
    %502 = arith.divf %498, %501 : vector<1x124xf32>
    %c0_269 = arith.constant 0 : index
    %c0_270 = arith.constant 0 : index
    %c0_271 = arith.constant 0 : index
    %503 = vector.load %arg35[%c0_269, %c0_270, %c0_271] : memref<1x1x124xf32, #tpu.memory_space<vmem>>, vector<1x1x124xf32>
    %504 = vector.shape_cast %503 : vector<1x1x124xf32> to vector<1x124xf32>
    %505 = vector.shape_cast %502 : vector<1x124xf32> to vector<1x1x124xf32>
    tpu.vector_store %arg35[%c0_269, %c0_270, %c0_271], %505 {strides = array<i32>} : memref<1x1x124xf32, #tpu.memory_space<vmem>>, vector<1x1x124xf32>,
    return
  }
  func.func @transform_0(%arg0: i32) -> (i32, i32, i32, i32) {
    %c0_i32 = arith.constant 0 : i32
    %c0_i32_0 = arith.constant 0 : i32
    %c0_i32_1 = arith.constant 0 : i32
    %c0_i32_2 = arith.constant 0 : i32
    return %arg0, %c0_i32, %c0_i32_0, %c0_i32_1 : i32, i32, i32, i32
  }
  func.func @transform_1(%arg0: i32) -> (i32, i32, i32, i32) {
    %c0_i32 = arith.constant 0 : i32
    %c0_i32_0 = arith.constant 0 : i32
    %c0_i32_1 = arith.constant 0 : i32
    %c0_i32_2 = arith.constant 0 : i32
    %c0_i32_3 = arith.constant 0 : i32
    return %c0_i32, %c0_i32_0, %c0_i32_1, %c0_i32_2 : i32, i32, i32, i32
  }
  func.func @transform_2(%arg0: i32) -> (i32, i32) {
    %c0_i32 = arith.constant 0 : i32
    %c0_i32_0 = arith.constant 0 : i32
    %c0_i32_1 = arith.constant 0 : i32
    return %c0_i32, %c0_i32_0 : i32, i32
  }
  func.func @transform_3(%arg0: i32) -> (i32, i32) {
    %c0_i32 = arith.constant 0 : i32
    %c0_i32_0 = arith.constant 0 : i32
    %c0_i32_1 = arith.constant 0 : i32
    return %c0_i32, %c0_i32_0 : i32, i32
  }
  func.func @transform_4(%arg0: i32) -> (i32, i32) {
    %c0_i32 = arith.constant 0 : i32
    %c0_i32_0 = arith.constant 0 : i32
    %c0_i32_1 = arith.constant 0 : i32
    return %c0_i32, %c0_i32_0 : i32, i32
  }
  func.func @transform_5(%arg0: i32) -> (i32, i32) {
    %c0_i32 = arith.constant 0 : i32
    %c0_i32_0 = arith.constant 0 : i32
    %c0_i32_1 = arith.constant 0 : i32
    return %c0_i32, %c0_i32_0 : i32, i32
  }
  func.func @transform_6(%arg0: i32) -> (i32, i32) {
    %c0_i32 = arith.constant 0 : i32
    %c0_i32_0 = arith.constant 0 : i32
    %c0_i32_1 = arith.constant 0 : i32
    return %c0_i32, %c0_i32_0 : i32, i32
  }
  func.func @transform_7(%arg0: i32) -> (i32, i32) {
    %c0_i32 = arith.constant 0 : i32
    %c0_i32_0 = arith.constant 0 : i32
    %c0_i32_1 = arith.constant 0 : i32
    return %c0_i32, %c0_i32_0 : i32, i32
  }
  func.func @transform_8(%arg0: i32) -> (i32, i32, i32) {
    %c0_i32 = arith.constant 0 : i32
    %c0_i32_0 = arith.constant 0 : i32
    %c0_i32_1 = arith.constant 0 : i32
    %c0_i32_2 = arith.constant 0 : i32
    return %c0_i32, %c0_i32_0, %c0_i32_1 : i32, i32, i32
  }
  func.func @transform_9(%arg0: i32) -> (i32, i32, i32) {
    %c0_i32 = arith.constant 0 : i32
    %c0_i32_0 = arith.constant 0 : i32
    %c0_i32_1 = arith.constant 0 : i32
    %c0_i32_2 = arith.constant 0 : i32
    return %c0_i32, %c0_i32_0, %c0_i32_1 : i32, i32, i32
  }
  func.func @transform_10(%arg0: i32) -> (i32, i32, i32, i32) {
    %c0_i32 = arith.constant 0 : i32
    %c0_i32_0 = arith.constant 0 : i32
    %c0_i32_1 = arith.constant 0 : i32
    %c0_i32_2 = arith.constant 0 : i32
    %c0_i32_3 = arith.constant 0 : i32
    return %c0_i32, %c0_i32_0, %c0_i32_1, %c0_i32_2 : i32, i32, i32, i32
  }
  func.func @transform_11(%arg0: i32) -> (i32, i32, i32, i32) {
    %c0_i32 = arith.constant 0 : i32
    %c0_i32_0 = arith.constant 0 : i32
    %c0_i32_1 = arith.constant 0 : i32
    %c0_i32_2 = arith.constant 0 : i32
    %c0_i32_3 = arith.constant 0 : i32
    return %c0_i32, %c0_i32_0, %c0_i32_1, %c0_i32_2 : i32, i32, i32, i32
  }
  func.func @transform_12(%arg0: i32) -> (i32, i32, i32, i32) {
    %c0_i32 = arith.constant 0 : i32
    %c0_i32_0 = arith.constant 0 : i32
    %c0_i32_1 = arith.constant 0 : i32
    %c0_i32_2 = arith.constant 0 : i32
    %c0_i32_3 = arith.constant 0 : i32
    return %c0_i32, %c0_i32_0, %c0_i32_1, %c0_i32_2 : i32, i32, i32, i32
  }
  func.func @transform_13(%arg0: i32) -> (i32, i32, i32, i32) {
    %c0_i32 = arith.constant 0 : i32
    %c0_i32_0 = arith.constant 0 : i32
    %c0_i32_1 = arith.constant 0 : i32
    %c0_i32_2 = arith.constant 0 : i32
    %c0_i32_3 = arith.constant 0 : i32
    return %c0_i32, %c0_i32_0, %c0_i32_1, %c0_i32_2 : i32, i32, i32, i32
  }
  func.func @transform_14(%arg0: i32) -> (i32, i32, i32) {
    %c0_i32 = arith.constant 0 : i32
    %c0_i32_0 = arith.constant 0 : i32
    %c0_i32_1 = arith.constant 0 : i32
    %c0_i32_2 = arith.constant 0 : i32
    return %c0_i32, %c0_i32_0, %c0_i32_1 : i32, i32, i32
  }
  func.func @transform_15(%arg0: i32) -> (i32, i32, i32) {
    %c0_i32 = arith.constant 0 : i32
    %c0_i32_0 = arith.constant 0 : i32
    %c0_i32_1 = arith.constant 0 : i32
    %c0_i32_2 = arith.constant 0 : i32
    return %c0_i32, %c0_i32_0, %c0_i32_1 : i32, i32, i32
  }
  func.func @transform_16(%arg0: i32) -> (i32, i32, i32) {
    %c0_i32 = arith.constant 0 : i32
    %c0_i32_0 = arith.constant 0 : i32
    %c0_i32_1 = arith.constant 0 : i32
    %c0_i32_2 = arith.constant 0 : i32
    return %c0_i32, %c0_i32_0, %c0_i32_1 : i32, i32, i32
  }
  func.func @transform_17(%arg0: i32) -> (i32, i32, i32) {
    %c0_i32 = arith.constant 0 : i32
    %c0_i32_0 = arith.constant 0 : i32
    %c0_i32_1 = arith.constant 0 : i32
    %c0_i32_2 = arith.constant 0 : i32
    return %c0_i32, %c0_i32_0, %c0_i32_1 : i32, i32, i32
  }
  func.func @transform_18(%arg0: i32) -> (i32, i32, i32) {
    %c0_i32 = arith.constant 0 : i32
    %c0_i32_0 = arith.constant 0 : i32
    %c0_i32_1 = arith.constant 0 : i32
    %c0_i32_2 = arith.constant 0 : i32
    return %c0_i32, %c0_i32_0, %c0_i32_1 : i32, i32, i32
  }
  func.func @transform_19(%arg0: i32) -> (i32, i32, i32) {
    %c0_i32 = arith.constant 0 : i32
    %c0_i32_0 = arith.constant 0 : i32
    %c0_i32_1 = arith.constant 0 : i32
    %c0_i32_2 = arith.constant 0 : i32
    return %c0_i32, %c0_i32_0, %c0_i32_1 : i32, i32, i32
  }
  func.func @transform_20(%arg0: i32) -> (i32, i32, i32) {
    %c0_i32 = arith.constant 0 : i32
    %c0_i32_0 = arith.constant 0 : i32
    %c0_i32_1 = arith.constant 0 : i32
    %c0_i32_2 = arith.constant 0 : i32
    return %c0_i32, %c0_i32_0, %c0_i32_1 : i32, i32, i32
  }
  func.func @transform_21(%arg0: i32) -> (i32, i32, i32) {
    %c0_i32 = arith.constant 0 : i32
    %c0_i32_0 = arith.constant 0 : i32
    %c0_i32_1 = arith.constant 0 : i32
    %c0_i32_2 = arith.constant 0 : i32
    return %c0_i32, %c0_i32_0, %c0_i32_1 : i32, i32, i32
  }
  func.func @transform_22(%arg0: i32) -> (i32, i32, i32) {
    %c0_i32 = arith.constant 0 : i32
    %c0_i32_0 = arith.constant 0 : i32
    %c0_i32_1 = arith.constant 0 : i32
    %c0_i32_2 = arith.constant 0 : i32
    return %c0_i32, %c0_i32_0, %c0_i32_1 : i32, i32, i32
  }
  func.func @transform_23(%arg0: i32) -> (i32, i32, i32, i32) {
    %c0_i32 = arith.constant 0 : i32
    %c0_i32_0 = arith.constant 0 : i32
    %c0_i32_1 = arith.constant 0 : i32
    %c0_i32_2 = arith.constant 0 : i32
    %c0_i32_3 = arith.constant 0 : i32
    return %c0_i32, %c0_i32_0, %c0_i32_1, %c0_i32_2 : i32, i32, i32, i32
  }
  func.func @transform_24(%arg0: i32) -> (i32, i32, i32, i32) {
    %c0_i32 = arith.constant 0 : i32
    %c0_i32_0 = arith.constant 0 : i32
    %c0_i32_1 = arith.constant 0 : i32
    %c0_i32_2 = arith.constant 0 : i32
    %c0_i32_3 = arith.constant 0 : i32
    return %c0_i32, %c0_i32_0, %c0_i32_1, %c0_i32_2 : i32, i32, i32, i32
  }
  func.func @transform_25(%arg0: i32) -> (i32, i32, i32, i32) {
    %c0_i32 = arith.constant 0 : i32
    %c0_i32_0 = arith.constant 0 : i32
    %c0_i32_1 = arith.constant 0 : i32
    %c0_i32_2 = arith.constant 0 : i32
    %c0_i32_3 = arith.constant 0 : i32
    return %c0_i32, %c0_i32_0, %c0_i32_1, %c0_i32_2 : i32, i32, i32, i32
  }
  func.func @transform_26(%arg0: i32) -> (i32, i32, i32, i32) {
    %c0_i32 = arith.constant 0 : i32
    %c0_i32_0 = arith.constant 0 : i32
    %c0_i32_1 = arith.constant 0 : i32
    %c0_i32_2 = arith.constant 0 : i32
    %c0_i32_3 = arith.constant 0 : i32
    return %c0_i32, %c0_i32_0, %c0_i32_1, %c0_i32_2 : i32, i32, i32, i32
  }
  func.func @transform_27(%arg0: i32) -> (i32, i32, i32) {
    %c0_i32 = arith.constant 0 : i32
    %c0_i32_0 = arith.constant 0 : i32
    %c0_i32_1 = arith.constant 0 : i32
    %c0_i32_2 = arith.constant 0 : i32
    return %c0_i32, %c0_i32_0, %c0_i32_1 : i32, i32, i32
  }
  func.func @transform_28(%arg0: i32) -> (i32, i32) {
    %c0_i32 = arith.constant 0 : i32
    %c0_i32_0 = arith.constant 0 : i32
    %c0_i32_1 = arith.constant 0 : i32
    return %c0_i32, %c0_i32_0 : i32, i32
  }
  func.func @transform_29(%arg0: i32) -> (i32, i32) {
    %c0_i32 = arith.constant 0 : i32
    %c0_i32_0 = arith.constant 0 : i32
    %c0_i32_1 = arith.constant 0 : i32
    return %c0_i32, %c0_i32_0 : i32, i32
  }
  func.func @transform_30(%arg0: i32) -> (i32, i32) {
    %c0_i32 = arith.constant 0 : i32
    %c0_i32_0 = arith.constant 0 : i32
    %c0_i32_1 = arith.constant 0 : i32
    return %c0_i32, %c0_i32_0 : i32, i32
  }
  func.func @transform_31(%arg0: i32) -> (i32, i32) {
    %c0_i32 = arith.constant 0 : i32
    %c0_i32_0 = arith.constant 0 : i32
    %c0_i32_1 = arith.constant 0 : i32
    return %c0_i32, %c0_i32_0 : i32, i32
  }
  func.func @transform_32(%arg0: i32) -> (i32, i32) {
    %c0_i32 = arith.constant 0 : i32
    %c0_i32_0 = arith.constant 0 : i32
    %c0_i32_1 = arith.constant 0 : i32
    return %c0_i32, %c0_i32_0 : i32, i32
  }
  func.func @transform_33(%arg0: i32) -> (i32, i32) {
    %c0_i32 = arith.constant 0 : i32
    %c0_i32_0 = arith.constant 0 : i32
    %c0_i32_1 = arith.constant 0 : i32
    return %c0_i32, %c0_i32_0 : i32, i32
  }
  func.func @transform_34(%arg0: i32) -> (i32, i32, i32) {
    %c0_i32 = arith.constant 0 : i32
    %c0_i32_0 = arith.constant 0 : i32
    %c0_i32_1 = arith.constant 0 : i32
    return %arg0, %c0_i32, %c0_i32_0 : i32, i32, i32
  }
}

</mosaic_0001>

<bundles_post_ra>
// kernel: tpu_custom_call.1
= control target key start
LH: loop header
LB: loop body
LE: loop exit
PB: predicated region body
PF: predicated region fallthrough
CT: control target
= control target key end

     0   :  { %s18217_s6 = smov 1   ;;  %s18218_s10 = smov 2   ;;  %s20355_s0 = inlined_call_operand.smem [shape: u32[35], index: -1, kind: input, shape index: {}] }
   0x1   :  { %s18263_s5 = sld [smem:[%s20355_s0]]   ;;  %s18219_s14 = smov 3  }
   0x2   :  { %s18268_s9 = sld [smem:[%s20355_s0 + %s18217_s6]]   ;;  %s18220_s18 = smov 4  }
   0x3   :  { %s18273_s13 = sld [smem:[%s20355_s0 + %s18218_s10]]   ;;  %s18221_s22 = smov 5  }
   0x4   :  { %s18278_s17 = sld [smem:[%s20355_s0 + %s18219_s14]]   ;;  %s18222_s26 = smov 6  }
   0x5   :  { %s18283_s21 = sld [smem:[%s20355_s0 + %s18220_s18]]   ;;  %s18223_s30 = smov 7  }
   0x6   :  { %s18288_s25 = sld [smem:[%s20355_s0 + %s18221_s22]]   ;;  %s18224_s4 = smov 8  }
   0x7   :  { %20382 = sst [smem:[#allocation5_spill]] %s18263_s5  ;;  %s18225_s10 = smov 9  }
   0x8   :  { %20383 = sst [smem:[#allocation6_spill]] %s18268_s9  ;;  %s18226_s15 = smov 10  }
   0x9   :  { %20384 = sst [smem:[#allocation7_spill]] %s18273_s13  ;;  %s18227_s20 = smov 11  }
   0xa   :  { %20385 = sst [smem:[#allocation8_spill]] %s18278_s17  ;;  %s18229_s1 = smov 13  }
   0xb   :  { %20386 = sst [smem:[#allocation9_spill]] %s18283_s21  ;;  %s18230_s7 = smov 14  }
   0xc   :  { %20387 = sst [smem:[#allocation10_spill]] %s18288_s25  ;;  %s18232_s22 = smov 16  }
   0xd   :  { %s18293_s29 = sld [smem:[%s20355_s0 + %s18222_s26]]   ;;  %s18228_s26 = smov 12  }
   0xe   :  { %s18298_s3 = sld [smem:[%s20355_s0 + %s18223_s30]]   ;;  %s18233_s28 = smov 17  }
   0xf   :  { %s18303_s8 = sld [smem:[%s20355_s0 + %s18224_s4]]  }
  0x10   :  { %s18308_s14 = sld [smem:[%s20355_s0 + %s18225_s10]]  }
  0x11   :  { %s18313_s19 = sld [smem:[%s20355_s0 + %s18226_s15]]   ;;  %s18231_s15 = smov 15  }
  0x12   :  { %s18318_s24 = sld [smem:[%s20355_s0 + %s18227_s20]]  }
  0x13   :  { %20388 = sst [smem:[#allocation11_spill]] %s18293_s29 }
  0x14   :  { %20389 = sst [smem:[#allocation12_spill]] %s18298_s3 }
  0x15   :  { %20390 = sst [smem:[#allocation13_spill]] %s18303_s8 }
  0x16   :  { %s18323_s30 = sld [smem:[%s20355_s0 + %s18228_s26]]  }
  0x17   :  { %s18328_s6 = sld [smem:[%s20355_s0 + %s18229_s1]]  }
  0x18   :  { %s18333_s12 = sld [smem:[%s20355_s0 + %s18230_s7]]   ;;  %s18234_s7 = smov 18  }
  0x19   :  { %s18338_s20 = sld [smem:[%s20355_s0 + %s18231_s15]]   ;;  %s18235_s15 = smov 19  }
  0x1a   :  { %s18343_s27 = sld [smem:[%s20355_s0 + %s18232_s22]]   ;;  %s18236_s22 = smov 20  }
  0x1b   :  { %s18348_s4 = sld [smem:[%s20355_s0 + %s18233_s28]]   ;;  %s18237_s28 = smov 21  }
  0x1d   :  { %20391 = sst [smem:[#allocation14_spill]] %s18328_s6 }
  0x1e   :  { %20392 = sst [smem:[#allocation15_spill]] %s18333_s12 }
  0x1f   :  { %20393 = sst [smem:[#allocation16_spill]] %s18338_s20 }
  0x20   :  { %20394 = sst [smem:[#allocation17_spill]] %s18343_s27 }
  0x21   :  { %20395 = sst [smem:[#allocation18_spill]] %s18348_s4 }
  0x22   :  { %s18353_s12 = sld [smem:[%s20355_s0 + %s18234_s7]]   ;;  %s18238_s7 = smov 22  }
  0x23   :  { %s18358_s20 = sld [smem:[%s20355_s0 + %s18235_s15]]   ;;  %s18239_s15 = smov 23  }
  0x24   :  { %s18363_s27 = sld [smem:[%s20355_s0 + %s18236_s22]]   ;;  %s18240_s22 = smov 24  }
  0x25   :  { %s18368_s4 = sld [smem:[%s20355_s0 + %s18237_s28]]   ;;  %s18241_s28 = smov 25  }
  0x28   :  { %20396 = sst [smem:[#allocation19_spill]] %s18353_s12 }
  0x29   :  { %20397 = sst [smem:[#allocation20_spill]] %s18358_s20 }
  0x2a   :  { %20398 = sst [smem:[#allocation21_spill]] %s18363_s27 }
  0x2b   :  { %20399 = sst [smem:[#allocation22_spill]] %s18368_s4 }
  0x2c   :  { %s18373_s12 = sld [smem:[%s20355_s0 + %s18238_s7]]   ;;  %s18242_s7 = smov 26  }
  0x2d   :  { %s18378_s20 = sld [smem:[%s20355_s0 + %s18239_s15]]   ;;  %s18243_s15 = smov 27  }
  0x2e   :  { %s18383_s27 = sld [smem:[%s20355_s0 + %s18240_s22]]   ;;  %s18244_s22 = smov 28  }
  0x2f   :  { %s18388_s4 = sld [smem:[%s20355_s0 + %s18241_s28]]   ;;  %s18245_s28 = smov 29  }
  0x32   :  { %20400 = sst [smem:[#allocation23_spill]] %s18373_s12 }
  0x33   :  { %20401 = sst [smem:[#allocation24_spill]] %s18378_s20 }
  0x34   :  { %20402 = sst [smem:[#allocation25_spill]] %s18383_s27 }
  0x35   :  { %20403 = sst [smem:[#allocation26_spill]] %s18388_s4 }
  0x36   :  { %s18393_s12 = sld [smem:[%s20355_s0 + %s18242_s7]]   ;;  %s18246_s7 = smov 30  }
  0x37   :  { %s18398_s20 = sld [smem:[%s20355_s0 + %s18243_s15]]   ;;  %s18247_s15 = smov 31  }
  0x38   :  { %s18403_s27 = sld [smem:[%s20355_s0 + %s18244_s22]]   ;;  %s18248_s22 = smov 32  }
  0x39   :  { %s18408_s4 = sld [smem:[%s20355_s0 + %s18245_s28]]   ;;  %s18249_s28 = smov 33  }
  0x3c   :  { %20404 = sst [smem:[#allocation27_spill]] %s18393_s12 }
  0x3d   :  { %20405 = sst [smem:[#allocation28_spill]] %s18398_s20 }
  0x3e   :  { %20406 = sst [smem:[#allocation29_spill]] %s18403_s27 }
  0x3f   :  { %20407 = sst [smem:[#allocation30_spill]] %s18408_s4 }
  0x40   :  { %s18413_s12 = sld [smem:[%s20355_s0 + %s18246_s7]]   ;;  %s18250_s7 = smov 34  }
  0x41   :  { %s18418_s20 = sld [smem:[%s20355_s0 + %s18247_s15]]  }
  0x42   :  { %s18423_s27 = sld [smem:[%s20355_s0 + %s18248_s22]]  }
  0x43   :  { %s18428_s4 = sld [smem:[%s20355_s0 + %s18249_s28]]  }
  0x46   :  { %20408 = sst [smem:[#allocation31_spill]] %s18413_s12 }
  0x47   :  { %s18433_s12 = sld [smem:[%s20355_s0 + %s18250_s7]]  }
  0x49   :  { %20409 = sst [smem:[#allocation32_spill]] %s18428_s4 }
  0x4a   :  { %74 = vsyncpa [#allocation3], 0 }
  0x4b   :  { %76 = vsyncpa [#allocation3 + $0x1], 0  ;;  %s18435_s15 = smov 0   ;;  %s18437_s16 = smov 0  }
  0x4c   :  { %s18439_s18 = smov 0   ;;  %s18441_s22 = smov 0  }
  0x4d LB: > { %s20410_s8 = sld [smem:[#allocation13_spill]]  ;;  %s20411_s6 = sld [smem:[#allocation14_spill]]  ;;  %s18215_s22 = sphi %s18441_s22, %s20444_s22   ;;  %s18211_s18 = sphi %s18439_s18, %s20446_s18   ;;  %s18207_s16 = sphi %s18437_s16, %s20448_s16   ;;  %s18203_s15 = sphi %s18435_s15, %s20447_s15  }
  0x4e   : > { %s20412_s21 = sld [smem:[#allocation9_spill]]  ;;  %s20413_s9 = sld [smem:[#allocation6_spill]] }
  0x4f   : > { %20414 = sst [smem:[#allocation33_spill]] %s18211_s18  ;;  %s18456_s0 = sadd.s32 4294967295, %s18215_s22  }
  0x50   : > { %s14838_s23 = sadd.s32 4294967294, %s18215_s22   ;;  %s18460_s26 = sadd.s32 1, %s18215_s22  }
  0x51   : > { %20415 = sst [smem:[#allocation34_spill]] %s18460_s26  ;;  %s808_s28 = sadd.s32 1, %s18211_s18 }
  0x52   : > { %s805_s1 = ssub.s32 %s18215_s22, %s18460_s26  ;;  %p818_p0 = scmp.ne.s32.totalorder %s18211_s18, %s18207_s16 }
  0x53   : > { %p806_p1 = scmp.eq.s32.totalorder %s805_s1, 0  ;;  %p819_p2 = scmp.eq.s32.totalorder %s18456_s0, 1 }
  0x54   : > { %p824_p3 = scmp.ne.s32.totalorder %s18207_s16, %s18203_s15  ;;  %p825_p4 = scmp.eq.s32.totalorder %s14838_s23, 1 }
  0x55   : > { %s18471_s2 = scalar_select %p806_p1, %s18211_s18, %s808_s28  }
  0x56   : > { %p18473_p5 = por %p819_p2, %p818_p0  ;;  %p18477_p6 = por %p825_p4, %p824_p3 }
  0x57   : > { %20416 = sst [smem:[#allocation35_spill]] %s18471_s2  ;;  %p14841_p7 = scmp.ge.s32.totalorder %s18215_s22, 1 }
  0x58   : > { %p950_p8 = scmp.lt.s32.totalorder %s18215_s22, 3 }
  0x5a   : > { %p951_p9 = pnand %p14841_p7, %p950_p8 }
  0x5b   : > { %s20419_s5 = sld [smem:[#allocation5_spill]] (!%p951_p9)  ;;  %p1035_p10 = scmp.lt.s32.totalorder (!%p951_p9), %s18456_s0, 1  ;;  %vm1050_vm0 = vcmask (!%p951_p9), 261120   ;;  %v1044_v28 = vld [vmem:[%s20412_s21] sm:$0xff] (!%p951_p9)  ;;  %v1045_v29 = vld [vmem:[%s20412_s21 + $0x8] sm:$0xff] (!%p951_p9)  ;;  %v18251_v31 = vmov (!%p951_p9), 0.0|0.0  }
  0x5c   : > { %954 = sbr.rel (%p951_p9) target bundleno = 9547 (0x254b), region = 156  ;;  %v17326_v30 = vpack.c.bf16 (!%p951_p9), %v1045_v29, %v1044_v28  ;;  %17325 = vmatprep.subr.bf16.mxu0 (!%p951_p9), %v18251_v31  ;;  %17331 = vmatprep.subr.bf16.mxu1 (!%p951_p9), %v18251_v31  ;;  %v1046_v32 = vld [vmem:[%s20412_s21 + $0x10] sm:$0xff] (!%p951_p9)  ;;  %v1047_v33 = vld [vmem:[%s20412_s21 + $0x18] sm:$0xff] (!%p951_p9)  ;;  %vm18252_vm1 = vmmov (!%p951_p9), 0   ;;  %v18253_v35 = vmov (!%p951_p9), 0.0   ;;  %s20420_s13 = sld [smem:[#allocation7_spill]] (!%p951_p9) }
  0x5d   : > { %v17329_v34 = vpack.c.bf16 (!%p951_p9), %v1047_v33, %v1046_v32  ;;  %15862 = vmatprep.mubr.msk.f32.mxu0 (!%p951_p9), %vm18252_vm1, %v18253_v35  ;;  %15873 = vmatprep.mubr.msk.f32.mxu1 (!%p951_p9), %vm18252_vm1, %v18253_v35  ;;  %s20421_s17 = sld [smem:[#allocation8_spill]] (!%p951_p9)  ;;  %s20422_s25 = sld [smem:[#allocation10_spill]] (!%p951_p9)  ;;  %vm5004_vm2 = vcmask (!%p951_p9), 64512   ;;  %vm6237_vm3 = vcmask (!%p951_p9), 57344   ;;  %vm8750_vm4 = vcmask (!%p951_p9), 253952  }
  0x5e   : > { %17327 = vmatpush3.bf16.msra.mxu0 (!%p951_p9), %v17326_v30  ;;  %17333 = vmatpush3.bf16.msra.mxu1 (!%p951_p9), %v17326_v30  ;;  %s20423_s29 = sld [smem:[#allocation11_spill]] (!%p951_p9)  ;;  %s20424_s3 = sld [smem:[#allocation12_spill]] (!%p951_p9)  ;;  %vm8816_vm5 = vcmask (!%p951_p9), 1041409   ;;  %vm8819_vm6 = vcmask (!%p951_p9), 1042434   ;;  %vm8822_vm7 = vcmask (!%p951_p9), 1043459   ;;  %vm8825_vm8 = vcmask (!%p951_p9), 257024  }
  0x5f   : > { %17328 = vmatprep.subr.bf16.mxu0 (!%p951_p9), %v18251_v31  ;;  %17334 = vmatprep.subr.bf16.mxu1 (!%p951_p9), %v18251_v31  ;;  %s20425_s1 = sld [smem:[#allocation15_spill]] (!%p951_p9)  ;;  %s20434_s21 = sld [smem:[#allocation22_spill]] (!%p951_p9)  ;;  %vm10347_vm9 = vcmask (!%p951_p9), 1043456   ;;  %vm10298_vm10 = vcmask (!%p951_p9), 27648   ;;  %vm10343_vm11 = vcmask (!%p951_p9), 31744   ;;  %vm12196_vm12 = vcmask (!%p951_p9), 24576  }
  0x60   : > { %s20437_s2 = sld [smem:[#allocation27_spill]] (!%p951_p9)  ;;  %s20438_s18 = sld [smem:[#allocation28_spill]] (!%p951_p9)  ;;  %vm14008_vm13 = vcmask (!%p951_p9), 1040384   ;;  %vm14004_vm14 = vcmask (!%p951_p9), 7168   ;;  %vm14723_vm15 = vcmask (!%p951_p9), 1007616  }
  0x61   : > { %s20443_s4 = sld [smem:[#allocation32_spill]] (!%p951_p9) }
  0x62   : > { %17330 = vmatpush3.bf16.msra.mxu0 (!%p951_p9), %v17329_v34  ;;  %17336 = vmatpush3.bf16.msra.mxu1 (!%p951_p9), %v17329_v34  ;;  %v14844_v49 = vld [vmem:[%s20420_s13] ss:$0 sm:$0xff] (!%p951_p9)  ;;  %s20432_s13 = sld [smem:[#allocation24_spill]] (!%p951_p9) }
  0x63   : > { %s1036_s11 = scalar_select %p1035_p10, %s18456_s0, 1  ;;  %17337 = vmatprep.subr.bf16.mxu0 %v18251_v31  ;;  %17343 = vmatprep.subr.bf16.mxu1 %v18251_v31  ;;  %v14845_v51 = vld [vmem:[%s20421_s17] ss:$0 sm:$0xff] }
  0x64   : > { %s20433_s17 = sld [smem:[#allocation25_spill]] }
  0x65   : > { %s15204_s23 = sshll.u32 %s1036_s11, 5  ;;  %s20426_s11 = sld [smem:[#allocation18_spill]] }
  0x66   : > { %s1039_s28 = scalar_lea.vmem %s20419_s5, %s15204_s23  ;;  %s20427_s23 = sld [smem:[#allocation20_spill]] }
  0x67   : > { %v1040_v0 = vld [vmem:[%s1039_s28] sm:$0xff]  ;;  %v1042_v1 = vld [vmem:[%s1039_s28 + $0x10] sm:$0xff]  ;;  %v1041_v2 = vld [vmem:[%s1039_s28 + $0x8] sm:$0xff]  ;;  %s20430_s5 = sld [smem:[#allocation19_spill]]  ;;  %s20439_s26 = smov %s20438_s18 }
  0x68   : > { %v1051_v3 = vsel %vm1050_vm0, %v1040_v0, 0.0  ;;  %v1057_v4 = vsel %vm1050_vm0, %v1042_v1, 0.0  ;;  %v1043_v5 = vld [vmem:[%s1039_s28 + $0x18] sm:$0xff]  ;;  %v1054_v6 = vsel %vm1050_vm0, %v1041_v2, 0.0  ;;  %s20428_s28 = sld [smem:[#allocation16_spill]] }
  0x69   : > { %1052 = vadd.xlane.f32.xlu0 %v1051_v3  ;;  %1058 = vadd.xlane.f32.xlu1 %v1057_v4  ;;  %v1060_v7 = vsel %vm1050_vm0, %v1043_v5, 0.0 }
  0x6d   : > { %1055 = vadd.xlane.f32.xlu0 %v1054_v6  ;;  %1061 = vadd.xlane.f32.xlu1 %v1060_v7 }
  0xf6   : > { %v1053_v8 = vpop.xlane.xlu0 %1052  ;;  %v1059_v9 = vpop.xlane.xlu1 %1058 }
  0xf7   : > { %v1064_v10 = vmul.f32 0.03125, %v1053_v8  ;;  %v1066_v11 = vmul.f32 0.03125, %v1059_v9 }
  0xf9   : > { %v1068_v12 = vsub.f32 %v1040_v0, %v1064_v10  ;;  %v18490_v13 = vsub.f32 %v1042_v1, %v1066_v11 }
  0xfa   : > { %v1056_v14 = vpop.xlane.xlu0 %1055  ;;  %v1062_v15 = vpop.xlane.xlu1 %1061 }
  0xfb   : > { %v1065_v16 = vmul.f32 0.03125, %v1056_v14  ;;  %v1067_v17 = vmul.f32 0.03125, %v1062_v15  ;;  %v1072_v18 = vmul.f32 %v1068_v12, %v1068_v12  ;;  %v1074_v19 = vmul.f32 %v18490_v13, %v18490_v13 }
  0xfd   : > { %v1069_v20 = vsub.f32 %v1041_v2, %v1065_v16  ;;  %v18494_v21 = vsub.f32 %v1043_v5, %v1067_v17  ;;  %v1076_v22 = vsel %vm1050_vm0, %v1072_v18, 0.0  ;;  %v1082_v23 = vsel %vm1050_vm0, %v1074_v19, 0.0  ;;  %v14846_v2 = vld [vmem:[%s20422_s25] ss:$0 sm:$0xff]  ;;  %s20435_s25 = sld [smem:[#allocation23_spill]] }
  0xfe   : > { %1077 = vadd.xlane.f32.xlu0 %v1076_v22 }
  0xff   : > { %v1073_v24 = vmul.f32 %v1069_v20, %v1069_v20  ;;  %v1075_v25 = vmul.f32 %v18494_v21, %v18494_v21 }
 0x101   : > { %v1079_v26 = vsel %vm1050_vm0, %v1073_v24, 0.0  ;;  %v1085_v27 = vsel %vm1050_vm0, %v1075_v25, 0.0 }
 0x102   : > { %1083 = vadd.xlane.f32.xlu0 %v1082_v23  ;;  %1080 = vadd.xlane.f32.xlu1 %v1079_v26 }
 0x106   : > { %1086 = vadd.xlane.f32.xlu1 %v1085_v27 }
 0x18b   : > { %v1078_v36 = vpop.xlane.xlu0 %1077 }
 0x18c   : > { %v1088_v37 = vmul.f32 0.03125, %v1078_v36 }
 0x18e   : > { %v1092_v38 = vadd.f32 1e-05, %v1088_v37 }
 0x18f   : > { %v1081_v39 = vpop.xlane.xlu1 %1080  ;;  %v1084_v40 = vpop.xlane.xlu0 %1083 }
 0x190   : > { %17995 = vrsqrt.f32 %v1092_v38  ;;  %v1089_v41 = vmul.f32 0.03125, %v1081_v39  ;;  %v1090_v42 = vmul.f32 0.03125, %v1084_v40 }
 0x192   : > { %v1093_v43 = vadd.f32 1e-05, %v1089_v41  ;;  %v1094_v44 = vadd.f32 1e-05, %v1090_v42 }
 0x193   : > { %v1087_v45 = vpop.xlane.xlu1 %1086 }
 0x194   : > { %17997 = vrsqrt.f32 %v1093_v43  ;;  %v1091_v46 = vmul.f32 0.03125, %v1087_v45 }
 0x195   : > { %17999 = vrsqrt.f32 %v1094_v44 }
 0x196   : > { %v1095_v47 = vadd.f32 1e-05, %v1091_v46 }
 0x198   : > { %18001 = vrsqrt.f32 %v1095_v47 }
 0x19a   : > { %v17996_v48 = vpop.eup %17995 }
 0x19b   : > { %v1100_v50 = vmul.f32 %v17996_v48, %v1068_v12 }
 0x19d   : > { %v1110_v52 = vmul.f32 %v14844_v49, %v1100_v50 }
 0x19e   : > { %v17998_v53 = vpop.eup %17997 }
 0x19f   : > { %v18000_v54 = vpop.eup %17999  ;;  %v1120_v55 = vadd.f32 %v14845_v51, %v1110_v52  ;;  %v1101_v56 = vmul.f32 %v17998_v53, %v1069_v20 }
 0x1a0   : > { %v1102_v57 = vmul.f32 %v18000_v54, %v18490_v13  ;;  %v14851_v54 = vld [vmem:[%s20423_s29] ss:$0 sm:$0xff]  ;;  %s20436_s29 = sld [smem:[#allocation26_spill]] }
 0x1a1   : > { %15863 = vmatmul.mubr.msk.f32.vlgmr.msra.gmra.mrb[0].mxu0 %vm1050_vm0, %v1120_v55  ;;  %v1111_v58 = vmul.f32 %v14844_v49, %v1101_v56  ;;  %v14852_v56 = vld [vmem:[%s20424_s3] ss:$0 sm:$0xff]  ;;  %s20429_s3 = sld [smem:[#allocation17_spill]] }
 0x1a2   : > { %v18002_v59 = vpop.eup %18001  ;;  %17339 = vmatpush3.bf16.msra.mxu0 %v17326_v30  ;;  %15884 = vmatprep.mubr.msk.f32.mxu0 %vm18252_vm1, %v18253_v35  ;;  %v1112_v62 = vmul.f32 %v14844_v49, %v1102_v57 }
 0x1a3   : > { %v1103_v60 = vmul.f32 %v18002_v59, %v18494_v21  ;;  %17340 = vmatprep.subr.bf16.mxu0 %v18251_v31  ;;  %v1121_v61 = vadd.f32 %v14845_v51, %v1111_v58  ;;  %v1497_v59 = vld [vmem:[%s20413_s9] sm:$0xff] }
 0x1a4   : > { %v1122_v63 = vadd.f32 %v14845_v51, %v1112_v62 }
 0x1a5   : > { %15874 = vmatmul.mubr.msk.f32.vlgmr.msra.gmra.mrb[0].mxu1 %vm1050_vm0, %v1121_v61  ;;  %v1113_v0 = vmul.f32 %v14844_v49, %v1103_v60 }
 0x1a6   : > { %17342 = vmatpush3.bf16.msra.mxu0 %v17329_v34  ;;  %17345 = vmatpush3.bf16.msra.mxu1 %v17326_v30 }
 0x1a7   : > { %17346 = vmatprep.subr.bf16.mxu1 %v18251_v31  ;;  %15895 = vmatprep.mubr.msk.f32.mxu1 %vm18252_vm1, %v18253_v35  ;;  %v1123_v1 = vadd.f32 %v14845_v51, %v1113_v0 }
 0x1a8   : > { %17349 = vmatprep.subr.bf16.mxu0 %v18251_v31 }
 0x1a9   : > { %15885 = vmatmul.mubr.msk.f32.vlgmr.msra.gmra.mrb[2].mxu0 %vm1050_vm0, %v1122_v63 }
 0x1aa   : > { %17348 = vmatpush3.bf16.msra.mxu1 %v17329_v34  ;;  %15906 = vmatprep.mubr.msk.f32.mxu0 %vm18252_vm1, %v18253_v35 }
 0x1ab   : > { %17355 = vmatprep.subr.bf16.mxu1 %v18251_v31 }
 0x1ad   : > { %15896 = vmatmul.mubr.msk.f32.vlgmr.msra.gmra.mrb[2].mxu1 %vm1050_vm0, %v1123_v1  ;;  %v1498_v1 = vld [vmem:[%s20413_s9 + $0x8] sm:$0xff] }
 0x1ae   : > { %15917 = vmatprep.mubr.msk.f32.mxu1 %vm18252_vm1, %v18253_v35 }
 0x274   : > { %v1200_v3 = vpop.f32.mrb[0].mxu0 }
 0x275   : > { %v1201_v4 = vadd.f32 %v14846_v2, %v1200_v3  ;;  %v15864_v5 = vpop.f32.mrb[1].mxu0 }
 0x277   : > { %v1425_v6 = vsel %vm1050_vm0, %v1201_v4, 0.0 }
 0x278   : > { %v1273_v7 = vpop.f32.mrb[0].mxu1  ;;  %1426 = vadd.xlane.f32.xlu0 %v1425_v6 }
 0x279   : > { %v1274_v8 = vadd.f32 %v14846_v2, %v1273_v7  ;;  %v15875_v9 = vpop.f32.mrb[1].mxu1 }
 0x27b   : > { %v1428_v10 = vsel %vm1050_vm0, %v1274_v8, 0.0 }
 0x27c   : > { %v1346_v11 = vpop.f32.mrb[2].mxu0  ;;  %1429 = vadd.xlane.f32.xlu1 %v1428_v10 }
 0x27d   : > { %v1347_v12 = vadd.f32 %v14846_v2, %v1346_v11  ;;  %v15886_v13 = vpop.f32.mrb[3].mxu0 }
 0x27f   : > { %v1431_v14 = vsel %vm1050_vm0, %v1347_v12, 0.0 }
 0x280   : > { %v1419_v15 = vpop.f32.mrb[2].mxu1  ;;  %1432 = vadd.xlane.f32.xlu0 %v1431_v14  ;;  %v1500_v14 = vld [vmem:[%s20413_s9 + $0x18] sm:$0xff] }
 0x281   : > { %v1420_v16 = vadd.f32 %v14846_v2, %v1419_v15  ;;  %v15897_v17 = vpop.f32.mrb[3].mxu1 }
 0x283   : > { %v1434_v18 = vsel %vm1050_vm0, %v1420_v16, 0.0 }
 0x284   : > { %1435 = vadd.xlane.f32.xlu1 %v1434_v18 }
 0x305   : > { %v1427_v19 = vpop.xlane.xlu0 %1426 }
 0x306   : > { %v1437_v20 = vmul.f32 0.03125, %v1427_v19 }
 0x308   : > { %v1441_v21 = vsub.f32 %v1201_v4, %v1437_v20 }
 0x309   : > { %v1430_v22 = vpop.xlane.xlu1 %1429 }
 0x30a   : > { %v1438_v23 = vmul.f32 0.03125, %v1430_v22  ;;  %v1445_v24 = vmul.f32 %v1441_v21, %v1441_v21 }
 0x30c   : > { %v1442_v25 = vsub.f32 %v1274_v8, %v1438_v23  ;;  %v1449_v26 = vsel %vm1050_vm0, %v1445_v24, 0.0  ;;  %v1499_v8 = vld [vmem:[%s20413_s9 + $0x10] sm:$0xff]  ;;  %s20431_s9 = sld [smem:[#allocation21_spill]] }
 0x30d   : > { %v1433_v27 = vpop.xlane.xlu0 %1432  ;;  %1450 = vadd.xlane.f32.xlu0 %v1449_v26 }
 0x30e   : > { %v1439_v28 = vmul.f32 0.03125, %v1433_v27  ;;  %v1446_v29 = vmul.f32 %v1442_v25, %v1442_v25 }
 0x310   : > { %v1443_v30 = vsub.f32 %v1347_v12, %v1439_v28  ;;  %v1452_v32 = vsel %vm1050_vm0, %v1446_v29, 0.0 }
 0x311   : > { %v1436_v33 = vpop.xlane.xlu1 %1435  ;;  %1453 = vadd.xlane.f32.xlu1 %v1452_v32 }
 0x312   : > { %v1440_v34 = vmul.f32 0.03125, %v1436_v33  ;;  %v1447_v36 = vmul.f32 %v1443_v30, %v1443_v30 }
 0x314   : > { %v1444_v37 = vsub.f32 %v1420_v16, %v1440_v34  ;;  %v1455_v38 = vsel %vm1050_vm0, %v1447_v36, 0.0 }
 0x315   : > { %1456 = vadd.xlane.f32.xlu0 %v1455_v38 }
 0x316   : > { %v1448_v39 = vmul.f32 %v1444_v37, %v1444_v37 }
 0x318   : > { %v1458_v40 = vsel %vm1050_vm0, %v1448_v39, 0.0 }
 0x319   : > { %1459 = vadd.xlane.f32.xlu1 %v1458_v40 }
 0x39a   : > { %v1451_v41 = vpop.xlane.xlu0 %1450 }
 0x39b   : > { %v1461_v42 = vmul.f32 0.03125, %v1451_v41  ;;  %v1523_v41 = vld [vmem:[%s18318_s24] sm:$0xff] }
 0x39d   : > { %v1465_v43 = vadd.f32 1e-05, %v1461_v42  ;;  %v1524_v42 = vld [vmem:[%s18318_s24 + $0x8] sm:$0xff] }
 0x39e   : > { %v1454_v44 = vpop.xlane.xlu1 %1453 }
 0x39f   : > { %18003 = vrsqrt.f32 %v1465_v43  ;;  %v1462_v45 = vmul.f32 0.03125, %v1454_v44  ;;  %v1527_v43 = vld [vmem:[%s18318_s24 + $0x20] sm:$0xff]  ;;  %v18590_v44 = vpack.c.bf16 %v1524_v42, %v1523_v41 }
 0x3a1   : > { %v1466_v46 = vadd.f32 1e-05, %v1462_v45  ;;  %v1528_v45 = vld [vmem:[%s18318_s24 + $0x28] sm:$0xff]  ;;  %17351 = vmatpush3.bf16.msra.mxu0 %v18590_v44 }
 0x3a2   : > { %v1457_v47 = vpop.xlane.xlu0 %1456  ;;  %17352 = vmatprep.subr.bf16.mxu0 %v18251_v31 }
 0x3a3   : > { %18005 = vrsqrt.f32 %v1466_v46  ;;  %v1463_v48 = vmul.f32 0.03125, %v1457_v47  ;;  %v18593_v46 = vpack.c.bf16 %v1528_v45, %v1527_v43  ;;  %v1525_v47 = vld [vmem:[%s18318_s24 + $0x10] sm:$0xff] }
 0x3a4   : > { %v1541_v43 = vld [vmem:[%s18323_s30 + $0x10] sm:$0xff] }
 0x3a5   : > { %v1467_v49 = vadd.f32 1e-05, %v1463_v48  ;;  %17357 = vmatpush3.bf16.msra.mxu1 %v18593_v46  ;;  %v1526_v48 = vld [vmem:[%s18318_s24 + $0x18] sm:$0xff]  ;;  %v1545_v45 = vld [vmem:[%s18323_s30 + $0x30] sm:$0xff] }
 0x3a6   : > { %v1460_v50 = vpop.xlane.xlu1 %1459  ;;  %17358 = vmatprep.subr.bf16.mxu1 %v18251_v31 }
 0x3a7   : > { %18007 = vrsqrt.f32 %v1467_v49  ;;  %v1464_v51 = vmul.f32 0.03125, %v1460_v50  ;;  %v1529_v49 = vld [vmem:[%s18318_s24 + $0x30] sm:$0xff]  ;;  %v18602_v50 = vpack.c.bf16 %v1526_v48, %v1525_v47 }
 0x3a9   : > { %v18004_v52 = vpop.eup %18003  ;;  %v1468_v53 = vadd.f32 1e-05, %v1464_v51  ;;  %v1530_v51 = vld [vmem:[%s18318_s24 + $0x38] sm:$0xff]  ;;  %17354 = vmatpush3.bf16.msra.mxu0 %v18602_v50 }
 0x3aa   : > { %v1473_v55 = vmul.f32 %v18004_v52, %v1441_v21  ;;  %v18605_v52 = vpack.c.bf16 %v1530_v51, %v1529_v49  ;;  %17361 = vmatprep.subr.bf16.mxu0 %v18251_v31  ;;  %v1547_v49 = vld [vmem:[%s18323_s30 + $0x40] sm:$0xff] }
 0x3ab   : > { %18009 = vrsqrt.f32 %v1468_v53  ;;  %v1551_v51 = vld [vmem:[%s18323_s30 + $0x60] sm:$0xff] }
 0x3ac   : > { %v1483_v57 = vmul.f32 %v14851_v54, %v1473_v55  ;;  %17360 = vmatpush3.bf16.msra.mxu1 %v18605_v52 }
 0x3ad   : > { %v18006_v58 = vpop.eup %18005  ;;  %17367 = vmatprep.subr.bf16.mxu1 %v18251_v31 }
 0x3ae   : > { %v1493_v60 = vadd.f32 %v14852_v56, %v1483_v57  ;;  %v1474_v61 = vmul.f32 %v18006_v58, %v1442_v25 }
 0x3b0   : > { %v18548_v62 = vadd.f32 %v1497_v59, %v1493_v60  ;;  %v1484_v63 = vmul.f32 %v14851_v54, %v1474_v61  ;;  %v18612_v60 = vld [vmem:[%s20410_s8] ss:$0 sm:$0xff] }
 0x3b1   : > { %v18008_v0 = vpop.eup %18007  ;;  %v1531_v61 = vld [vmem:[%s18318_s24 + $0x40] sm:$0xff] }
 0x3b2   : > { %v1560_v2 = vsel %vm1050_vm0, %v18548_v62, 0.0  ;;  %v1494_v3 = vadd.f32 %v14852_v56, %v1484_v63  ;;  %v1475_v4 = vmul.f32 %v18008_v0, %v1443_v30  ;;  %v1532_v0 = vld [vmem:[%s18318_s24 + $0x48] sm:$0xff] }
 0x3b3   : > { %1561 = vadd.xlane.f32.xlu0 %v1560_v2  ;;  %v1536_v2 = vld [vmem:[%s18318_s24 + $0x68] sm:$0xff] }
 0x3b4   : > { %v18553_v5 = vadd.f32 %v1498_v1, %v1494_v3  ;;  %v1485_v6 = vmul.f32 %v14851_v54, %v1475_v4  ;;  %v1535_v1 = vld [vmem:[%s18318_s24 + $0x60] sm:$0xff] }
 0x3b5   : > { %v18010_v7 = vpop.eup %18009  ;;  %v18619_v3 = vld [vmem:[%s18308_s14] ss:$0 sm:$0xff] }
 0x3b6   : > { %v1563_v9 = vsel %vm1050_vm0, %v18553_v5, 0.0  ;;  %v1495_v10 = vadd.f32 %v14852_v56, %v1485_v6  ;;  %v1476_v11 = vmul.f32 %v18010_v7, %v1444_v37  ;;  %v18622_v6 = vpack.c.bf16 %v1532_v0, %v1531_v61  ;;  %v1507_v61 = vld [vmem:[%s18313_s19] sm:$0xff] }
 0x3b7   : > { %1564 = vadd.xlane.f32.xlu1 %v1563_v9  ;;  %v18624_v7 = vpack.c.bf16 %v1536_v2, %v1535_v1  ;;  %v1511_v0 = vld [vmem:[%s18313_s19 + $0x20] sm:$0xff]  ;;  %v1512_v1 = vld [vmem:[%s18313_s19 + $0x28] sm:$0xff] }
 0x3b8   : > { %v18558_v12 = vadd.f32 %v1499_v8, %v1495_v10  ;;  %v1486_v13 = vmul.f32 %v14851_v54, %v1476_v11  ;;  %v1533_v8 = vld [vmem:[%s18318_s24 + $0x50] sm:$0xff]  ;;  %v1534_v11 = vld [vmem:[%s18318_s24 + $0x58] sm:$0xff] }
 0x3ba   : > { %v1566_v15 = vsel %vm1050_vm0, %v18558_v12, 0.0  ;;  %v1496_v16 = vadd.f32 %v14852_v56, %v1486_v13  ;;  %v1537_v13 = vld [vmem:[%s18318_s24 + $0x70] sm:$0xff] }
 0x3bb   : > { %1567 = vadd.xlane.f32.xlu0 %v1566_v15 }
 0x3bc   : > { %v18563_v17 = vadd.f32 %v1500_v14, %v1496_v16  ;;  %v1538_v14 = vld [vmem:[%s18318_s24 + $0x78] sm:$0xff]  ;;  %v18639_v16 = vpack.c.bf16 %v1534_v11, %v1533_v8 }
 0x3bd   : > { %v1514_v8 = vld [vmem:[%s18313_s19 + $0x38] sm:$0xff] }
 0x3be   : > { %v1569_v18 = vsel %vm1050_vm0, %v18563_v17, 0.0 }
 0x3bf   : > { %1570 = vadd.xlane.f32.xlu1 %v1569_v18  ;;  %v18641_v18 = vpack.c.bf16 %v1538_v14, %v1537_v13  ;;  %v1515_v13 = vld [vmem:[%s18313_s19 + $0x40] sm:$0xff]  ;;  %v1516_v14 = vld [vmem:[%s18313_s19 + $0x48] sm:$0xff] }
 0x440   : > { %v1562_v19 = vpop.xlane.xlu0 %1561 }
 0x441   : > { %v1572_v20 = vmul.f32 0.03125, %v1562_v19 }
 0x443   : > { %v1576_v21 = vsub.f32 %v18548_v62, %v1572_v20 }
 0x444   : > { %v1565_v22 = vpop.xlane.xlu1 %1564 }
 0x445   : > { %v1573_v23 = vmul.f32 0.03125, %v1565_v22  ;;  %v1580_v24 = vmul.f32 %v1576_v21, %v1576_v21 }
 0x447   : > { %v18569_v25 = vsub.f32 %v18553_v5, %v1573_v23  ;;  %v1584_v26 = vsel %vm1050_vm0, %v1580_v24, 0.0 }
 0x448   : > { %v1568_v27 = vpop.xlane.xlu0 %1567  ;;  %1585 = vadd.xlane.f32.xlu0 %v1584_v26 }
 0x449   : > { %v1574_v28 = vmul.f32 0.03125, %v1568_v27  ;;  %v1581_v29 = vmul.f32 %v18569_v25, %v18569_v25 }
 0x44b   : > { %v18575_v30 = vsub.f32 %v18558_v12, %v1574_v28  ;;  %v1587_v32 = vsel %vm1050_vm0, %v1581_v29, 0.0 }
 0x44c   : > { %v1571_v33 = vpop.xlane.xlu1 %1570  ;;  %1588 = vadd.xlane.f32.xlu1 %v1587_v32 }
 0x44d   : > { %v1575_v34 = vmul.f32 0.03125, %v1571_v33  ;;  %v1582_v36 = vmul.f32 %v18575_v30, %v18575_v30 }
 0x44f   : > { %v18581_v37 = vsub.f32 %v18563_v17, %v1575_v34  ;;  %v1590_v38 = vsel %vm1050_vm0, %v1582_v36, 0.0 }
 0x450   : > { %1591 = vadd.xlane.f32.xlu0 %v1590_v38  ;;  %v1540_v38 = vld [vmem:[%s18323_s30 + $0x8] sm:$0xff] }
 0x451   : > { %v1583_v39 = vmul.f32 %v18581_v37, %v18581_v37 }
 0x453   : > { %v1593_v40 = vsel %vm1050_vm0, %v1583_v39, 0.0  ;;  %v1543_v39 = vld [vmem:[%s18323_s30 + $0x20] sm:$0xff] }
 0x454   : > { %1594 = vadd.xlane.f32.xlu1 %v1593_v40  ;;  %v1544_v40 = vld [vmem:[%s18323_s30 + $0x28] sm:$0xff] }
 0x455   : > { %v18768_v42 = vpack.c.bf16 %v1544_v40, %v1543_v39 }
 0x4d5   : > { %v1586_v53 = vpop.xlane.xlu0 %1585 }
 0x4d6   : > { %v1596_v54 = vmul.f32 0.03125, %v1586_v53 }
 0x4d8   : > { %v1600_v55 = vadd.f32 1e-05, %v1596_v54 }
 0x4d9   : > { %v1589_v56 = vpop.xlane.xlu1 %1588 }
 0x4da   : > { %18011 = vrsqrt.f32 %v1600_v55  ;;  %v1597_v57 = vmul.f32 0.03125, %v1589_v56  ;;  %v1549_v55 = vld [vmem:[%s18323_s30 + $0x50] sm:$0xff]  ;;  %v1550_v56 = vld [vmem:[%s18323_s30 + $0x58] sm:$0xff] }
 0x4dc   : > { %v1601_v58 = vadd.f32 1e-05, %v1597_v57  ;;  %v1553_v57 = vld [vmem:[%s18323_s30 + $0x70] sm:$0xff] }
 0x4dd   : > { %v1592_v10 = vpop.xlane.xlu0 %1591 }
 0x4de   : > { %18013 = vrsqrt.f32 %v1601_v58  ;;  %v1598_v15 = vmul.f32 0.03125, %v1592_v10  ;;  %v1554_v58 = vld [vmem:[%s18323_s30 + $0x78] sm:$0xff] }
 0x4e0   : > { %v1602_v20 = vadd.f32 1e-05, %v1598_v15  ;;  %v1519_v15 = vld [vmem:[%s18313_s19 + $0x60] sm:$0xff] }
 0x4e1   : > { %v1595_v24 = vpop.xlane.xlu1 %1594 }
 0x4e2   : > { %18015 = vrsqrt.f32 %v1602_v20  ;;  %v1517_v20 = vld [vmem:[%s18313_s19 + $0x50] sm:$0xff] }
 0x4e4   : > { %v18012_v59 = vpop.eup %18011 }
 0x4e5   : > { %v1608_v63 = vmul.f32 %v18012_v59, %v1576_v21  ;;  %v18814_v59 = vpack.c.bf16 %v1550_v56, %v1549_v55 }
 0x4e7   : > { %v1618_v4 = vmul.f32 %v18612_v60, %v1608_v63  ;;  %v1508_v63 = vld [vmem:[%s18313_s19 + $0x8] sm:$0xff] }
 0x4e8   : > { %v18014_v19 = vpop.eup %18013  ;;  %v18926_v2 = vpack.c.bf16 %v1508_v63, %v1507_v61 }
 0x4e9   : > { %v18628_v9 = vadd.f32 %v18619_v3, %v1618_v4  ;;  %v1609_v21 = vmul.f32 %v18014_v19, %v18569_v25  ;;  %v1599_v25 = vmul.f32 0.03125, %v1595_v24  ;;  %v1509_v4 = vld [vmem:[%s18313_s19 + $0x10] sm:$0xff]  ;;  %v1522_v24 = vld [vmem:[%s18313_s19 + $0x78] sm:$0xff] }
 0x4eb   : > { %15907 = vmatmul.mubr.msk.f32.vlgmr.msra.gmra.mrb[4].mxu0 %vm1050_vm0, %v18628_v9  ;;  %15918 = vmatmul.mubr.msk.f32.vlgmr.msra.gmra.mrb[4].mxu1 %vm1050_vm0, %v18628_v9  ;;  %v1619_v22 = vmul.f32 %v18612_v60, %v1609_v21  ;;  %v1603_v27 = vadd.f32 1e-05, %v1599_v25  ;;  %v1518_v21 = vld [vmem:[%s18313_s19 + $0x58] sm:$0xff] }
 0x4ec   : > { %17363 = vmatpush3.bf16.msra.mxu0 %v18622_v6  ;;  %17369 = vmatpush3.bf16.msra.mxu1 %v18624_v7  ;;  %v18016_v26 = vpop.eup %18015  ;;  %v18974_v25 = vpack.c.bf16 %v1518_v21, %v1517_v20 }
 0x4ed   : > { %17364 = vmatprep.subr.bf16.mxu0 %v18251_v31  ;;  %17370 = vmatprep.subr.bf16.mxu1 %v18251_v31  ;;  %v18670_v23 = vadd.f32 %v18619_v3, %v1619_v22  ;;  %v1610_v28 = vmul.f32 %v18016_v26, %v18575_v30  ;;  %18017 = vrsqrt.f32 %v1603_v27  ;;  %v1521_v22 = vld [vmem:[%s18313_s19 + $0x70] sm:$0xff] }
 0x4ee   : > { %15928 = vmatprep.mubr.msk.f32.mxu0 %vm18252_vm1, %v18253_v35  ;;  %15939 = vmatprep.mubr.msk.f32.mxu1 %vm18252_vm1, %v18253_v35  ;;  %v18976_v26 = vpack.c.bf16 %v1522_v24, %v1521_v22 }
 0x4ef   : > { %v1620_v29 = vmul.f32 %v18612_v60, %v1610_v28 }
 0x4f0   : > { %17366 = vmatpush3.bf16.msra.mxu0 %v18639_v16  ;;  %17372 = vmatpush3.bf16.msra.mxu1 %v18641_v18 }
 0x4f1   : > { %17373 = vmatprep.subr.bf16.mxu0 %v18251_v31  ;;  %17379 = vmatprep.subr.bf16.mxu1 %v18251_v31  ;;  %v18707_v30 = vadd.f32 %v18619_v3, %v1620_v29 }
 0x4f3   : > { %15929 = vmatmul.mubr.msk.f32.vlgmr.msra.gmra.mrb[6].mxu0 %vm1050_vm0, %v18628_v9  ;;  %15940 = vmatmul.mubr.msk.f32.vlgmr.msra.gmra.mrb[6].mxu1 %vm1050_vm0, %v18628_v9 }
 0x4f4   : > { %17375 = vmatpush3.bf16.msra.mxu0 %v18590_v44  ;;  %17381 = vmatpush3.bf16.msra.mxu1 %v18593_v46 }
 0x4f5   : > { %17376 = vmatprep.subr.bf16.mxu0 %v18251_v31  ;;  %17382 = vmatprep.subr.bf16.mxu1 %v18251_v31 }
 0x4f6   : > { %15950 = vmatprep.mubr.msk.f32.mxu0 %vm18252_vm1, %v18253_v35  ;;  %15961 = vmatprep.mubr.msk.f32.mxu1 %vm18252_vm1, %v18253_v35 }
 0x4f7   : > { %v18018_v32 = vpop.eup %18017 }
 0x4f8   : > { %17378 = vmatpush3.bf16.msra.mxu0 %v18602_v50  ;;  %17384 = vmatpush3.bf16.msra.mxu1 %v18605_v52  ;;  %v1611_v33 = vmul.f32 %v18018_v32, %v18581_v37  ;;  %v1539_v37 = vld [vmem:[%s18323_s30] sm:$0xff] }
 0x4f9   : > { %17385 = vmatprep.subr.bf16.mxu0 %v18251_v31  ;;  %17391 = vmatprep.subr.bf16.mxu1 %v18251_v31  ;;  %v18766_v41 = vpack.c.bf16 %v1540_v38, %v1539_v37 }
 0x4fa   : > { %v1621_v34 = vmul.f32 %v18612_v60, %v1611_v33  ;;  %v18816_v60 = vpack.c.bf16 %v1554_v58, %v1553_v57 }
 0x4fb   : > { %15951 = vmatmul.mubr.msk.f32.vlgmr.msra.gmra.mrb[8].mxu0 %vm1050_vm0, %v18670_v23  ;;  %15962 = vmatmul.mubr.msk.f32.vlgmr.msra.gmra.mrb[8].mxu1 %vm1050_vm0, %v18670_v23 }
 0x4fc   : > { %17387 = vmatpush3.bf16.msra.mxu0 %v18622_v6  ;;  %17393 = vmatpush3.bf16.msra.mxu1 %v18624_v7  ;;  %v18744_v36 = vadd.f32 %v18619_v3, %v1621_v34  ;;  %v18928_v3 = vpack.c.bf16 %v1512_v1, %v1511_v0 }
 0x4fd   : > { %17388 = vmatprep.subr.bf16.mxu0 %v18251_v31  ;;  %17394 = vmatprep.subr.bf16.mxu1 %v18251_v31 }
 0x4fe   : > { %15972 = vmatprep.mubr.msk.f32.mxu0 %vm18252_vm1, %v18253_v35  ;;  %15983 = vmatprep.mubr.msk.f32.mxu1 %vm18252_vm1, %v18253_v35 }
 0x500   : > { %17390 = vmatpush3.bf16.msra.mxu0 %v18639_v16  ;;  %17396 = vmatpush3.bf16.msra.mxu1 %v18641_v18 }
 0x501   : > { %17397 = vmatprep.subr.bf16.mxu0 %v18251_v31  ;;  %17403 = vmatprep.subr.bf16.mxu1 %v18251_v31 }
 0x503   : > { %15973 = vmatmul.mubr.msk.f32.vlgmr.msra.gmra.mrb[10].mxu0 %vm1050_vm0, %v18670_v23  ;;  %15984 = vmatmul.mubr.msk.f32.vlgmr.msra.gmra.mrb[10].mxu1 %vm1050_vm0, %v18670_v23 }
 0x504   : > { %17399 = vmatpush3.bf16.msra.mxu0 %v18590_v44  ;;  %17405 = vmatpush3.bf16.msra.mxu1 %v18593_v46 }
 0x505   : > { %17400 = vmatprep.subr.bf16.mxu0 %v18251_v31  ;;  %17406 = vmatprep.subr.bf16.mxu1 %v18251_v31 }
 0x506   : > { %15994 = vmatprep.mubr.msk.f32.mxu0 %vm18252_vm1, %v18253_v35  ;;  %16005 = vmatprep.mubr.msk.f32.mxu1 %vm18252_vm1, %v18253_v35 }
 0x508   : > { %17402 = vmatpush3.bf16.msra.mxu0 %v18602_v50  ;;  %17408 = vmatpush3.bf16.msra.mxu1 %v18605_v52 }
 0x509   : > { %17409 = vmatprep.subr.bf16.mxu0 %v18251_v31  ;;  %17415 = vmatprep.subr.bf16.mxu1 %v18251_v31 }
 0x50b   : > { %15995 = vmatmul.mubr.msk.f32.vlgmr.msra.gmra.mrb[12].mxu0 %vm1050_vm0, %v18707_v30  ;;  %16006 = vmatmul.mubr.msk.f32.vlgmr.msra.gmra.mrb[12].mxu1 %vm1050_vm0, %v18707_v30 }
 0x50c   : > { %17411 = vmatpush3.bf16.msra.mxu0 %v18622_v6  ;;  %17417 = vmatpush3.bf16.msra.mxu1 %v18624_v7 }
 0x50d   : > { %17412 = vmatprep.subr.bf16.mxu0 %v18251_v31  ;;  %17418 = vmatprep.subr.bf16.mxu1 %v18251_v31 }
 0x50e   : > { %16016 = vmatprep.mubr.msk.f32.mxu0 %vm18252_vm1, %v18253_v35  ;;  %16027 = vmatprep.mubr.msk.f32.mxu1 %vm18252_vm1, %v18253_v35 }
 0x510   : > { %17414 = vmatpush3.bf16.msra.mxu0 %v18639_v16  ;;  %17420 = vmatpush3.bf16.msra.mxu1 %v18641_v18 }
 0x511   : > { %17421 = vmatprep.subr.bf16.mxu0 %v18251_v31  ;;  %17427 = vmatprep.subr.bf16.mxu1 %v18251_v31 }
 0x513   : > { %16017 = vmatmul.mubr.msk.f32.vlgmr.msra.gmra.mrb[14].mxu0 %vm1050_vm0, %v18707_v30  ;;  %16028 = vmatmul.mubr.msk.f32.vlgmr.msra.gmra.mrb[14].mxu1 %vm1050_vm0, %v18707_v30 }
 0x514   : > { %17423 = vmatpush3.bf16.msra.mxu0 %v18590_v44  ;;  %17429 = vmatpush3.bf16.msra.mxu1 %v18593_v46  ;;  %v1542_v44 = vld [vmem:[%s18323_s30 + $0x18] sm:$0xff] }
 0x515   : > { %17424 = vmatprep.subr.bf16.mxu0 %v18251_v31  ;;  %17430 = vmatprep.subr.bf16.mxu1 %v18251_v31  ;;  %v1546_v46 = vld [vmem:[%s18323_s30 + $0x38] sm:$0xff]  ;;  %v18782_v47 = vpack.c.bf16 %v1542_v44, %v1541_v43 }
 0x516   : > { %16038 = vmatprep.mubr.msk.f32.mxu0 %vm18252_vm1, %v18253_v35  ;;  %16049 = vmatprep.mubr.msk.f32.mxu1 %vm18252_vm1, %v18253_v35  ;;  %v18784_v48 = vpack.c.bf16 %v1546_v46, %v1545_v45 }
 0x518   : > { %17426 = vmatpush3.bf16.msra.mxu0 %v18602_v50  ;;  %17432 = vmatpush3.bf16.msra.mxu1 %v18605_v52  ;;  %v1548_v50 = vld [vmem:[%s18323_s30 + $0x48] sm:$0xff] }
 0x519   : > { %17433 = vmatprep.subr.bf16.mxu0 %v18251_v31  ;;  %17439 = vmatprep.subr.bf16.mxu1 %v18251_v31  ;;  %v1552_v52 = vld [vmem:[%s18323_s30 + $0x68] sm:$0xff]  ;;  %v18798_v53 = vpack.c.bf16 %v1548_v50, %v1547_v49 }
 0x51a   : > { %v18800_v54 = vpack.c.bf16 %v1552_v52, %v1551_v51 }
 0x51b   : > { %16039 = vmatmul.mubr.msk.f32.vlgmr.msra.gmra.mrb[16].mxu0 %vm1050_vm0, %v18744_v36  ;;  %16050 = vmatmul.mubr.msk.f32.vlgmr.msra.gmra.mrb[16].mxu1 %vm1050_vm0, %v18744_v36 }
 0x51c   : > { %17435 = vmatpush3.bf16.msra.mxu0 %v18622_v6  ;;  %17441 = vmatpush3.bf16.msra.mxu1 %v18624_v7  ;;  %v1510_v6 = vld [vmem:[%s18313_s19 + $0x18] sm:$0xff]  ;;  %v1513_v7 = vld [vmem:[%s18313_s19 + $0x30] sm:$0xff] }
 0x51d   : > { %17436 = vmatprep.subr.bf16.mxu0 %v18251_v31  ;;  %17442 = vmatprep.subr.bf16.mxu1 %v18251_v31  ;;  %v18942_v10 = vpack.c.bf16 %v1510_v6, %v1509_v4  ;;  %v18944_v11 = vpack.c.bf16 %v1514_v8, %v1513_v7 }
 0x51e   : > { %16060 = vmatprep.mubr.msk.f32.mxu0 %vm18252_vm1, %v18253_v35  ;;  %16071 = vmatprep.mubr.msk.f32.mxu1 %vm18252_vm1, %v18253_v35 }
 0x520   : > { %17438 = vmatpush3.bf16.msra.mxu0 %v18639_v16  ;;  %17444 = vmatpush3.bf16.msra.mxu1 %v18641_v18  ;;  %v1520_v16 = vld [vmem:[%s18313_s19 + $0x68] sm:$0xff]  ;;  %v18958_v18 = vpack.c.bf16 %v1516_v14, %v1515_v13 }
 0x521   : > { %17445 = vmatprep.subr.bf16.mxu0 %v18251_v31  ;;  %17451 = vmatprep.subr.bf16.mxu1 %v18251_v31  ;;  %v18960_v19 = vpack.c.bf16 %v1520_v16, %v1519_v15 }
 0x523   : > { %16061 = vmatmul.mubr.msk.f32.vlgmr.msra.gmra.mrb[18].mxu0 %vm1050_vm0, %v18744_v36  ;;  %16072 = vmatmul.mubr.msk.f32.vlgmr.msra.gmra.mrb[18].mxu1 %vm1050_vm0, %v18744_v36 }
 0x524   : > { %17447 = vmatpush3.bf16.msra.mxu0 %v18766_v41  ;;  %17453 = vmatpush3.bf16.msra.mxu1 %v18768_v42 }
 0x525   : > { %17448 = vmatprep.subr.bf16.mxu0 %v18251_v31  ;;  %17454 = vmatprep.subr.bf16.mxu1 %v18251_v31 }
 0x526   : > { %16082 = vmatprep.mubr.msk.f32.mxu0 %vm18252_vm1, %v18253_v35  ;;  %16093 = vmatprep.mubr.msk.f32.mxu1 %vm18252_vm1, %v18253_v35 }
 0x528   : > { %17450 = vmatpush3.bf16.msra.mxu0 %v18782_v47  ;;  %17456 = vmatpush3.bf16.msra.mxu1 %v18784_v48 }
 0x529   : > { %17457 = vmatprep.subr.bf16.mxu0 %v18251_v31  ;;  %17463 = vmatprep.subr.bf16.mxu1 %v18251_v31 }
 0x52b   : > { %16083 = vmatmul.mubr.msk.f32.vlgmr.msra.gmra.mrb[20].mxu0 %vm1050_vm0, %v18628_v9  ;;  %16094 = vmatmul.mubr.msk.f32.vlgmr.msra.gmra.mrb[20].mxu1 %vm1050_vm0, %v18628_v9 }
 0x52c   : > { %17459 = vmatpush3.bf16.msra.mxu0 %v18798_v53  ;;  %17465 = vmatpush3.bf16.msra.mxu1 %v18800_v54 }
 0x52d   : > { %17460 = vmatprep.subr.bf16.mxu0 %v18251_v31  ;;  %17466 = vmatprep.subr.bf16.mxu1 %v18251_v31 }
 0x52e   : > { %16104 = vmatprep.mubr.msk.f32.mxu0 %vm18252_vm1, %v18253_v35  ;;  %16115 = vmatprep.mubr.msk.f32.mxu1 %vm18252_vm1, %v18253_v35 }
 0x530   : > { %17462 = vmatpush3.bf16.msra.mxu0 %v18814_v59  ;;  %17468 = vmatpush3.bf16.msra.mxu1 %v18816_v60 }
 0x531   : > { %17469 = vmatprep.subr.bf16.mxu0 %v18251_v31  ;;  %17475 = vmatprep.subr.bf16.mxu1 %v18251_v31 }
 0x533   : > { %16105 = vmatmul.mubr.msk.f32.vlgmr.msra.gmra.mrb[22].mxu0 %vm1050_vm0, %v18628_v9  ;;  %16116 = vmatmul.mubr.msk.f32.vlgmr.msra.gmra.mrb[22].mxu1 %vm1050_vm0, %v18628_v9 }
 0x534   : > { %17471 = vmatpush3.bf16.msra.mxu0 %v18766_v41  ;;  %17477 = vmatpush3.bf16.msra.mxu1 %v18768_v42 }
 0x535   : > { %17472 = vmatprep.subr.bf16.mxu0 %v18251_v31  ;;  %17478 = vmatprep.subr.bf16.mxu1 %v18251_v31 }
 0x536   : > { %16126 = vmatprep.mubr.msk.f32.mxu0 %vm18252_vm1, %v18253_v35  ;;  %16137 = vmatprep.mubr.msk.f32.mxu1 %vm18252_vm1, %v18253_v35 }
 0x538   : > { %17474 = vmatpush3.bf16.msra.mxu0 %v18782_v47  ;;  %17480 = vmatpush3.bf16.msra.mxu1 %v18784_v48 }
 0x539   : > { %17481 = vmatprep.subr.bf16.mxu0 %v18251_v31  ;;  %17487 = vmatprep.subr.bf16.mxu1 %v18251_v31 }
 0x53b   : > { %16127 = vmatmul.mubr.msk.f32.vlgmr.msra.gmra.mrb[24].mxu0 %vm1050_vm0, %v18670_v23  ;;  %16138 = vmatmul.mubr.msk.f32.vlgmr.msra.gmra.mrb[24].mxu1 %vm1050_vm0, %v18670_v23 }
 0x53c   : > { %17483 = vmatpush3.bf16.msra.mxu0 %v18798_v53  ;;  %17489 = vmatpush3.bf16.msra.mxu1 %v18800_v54 }
 0x53d   : > { %17484 = vmatprep.subr.bf16.mxu0 %v18251_v31  ;;  %17490 = vmatprep.subr.bf16.mxu1 %v18251_v31 }
 0x53e   : > { %16148 = vmatprep.mubr.msk.f32.mxu0 %vm18252_vm1, %v18253_v35  ;;  %16159 = vmatprep.mubr.msk.f32.mxu1 %vm18252_vm1, %v18253_v35 }
 0x540   : > { %17486 = vmatpush3.bf16.msra.mxu0 %v18814_v59  ;;  %17492 = vmatpush3.bf16.msra.mxu1 %v18816_v60 }
 0x541   : > { %17493 = vmatprep.subr.bf16.mxu0 %v18251_v31  ;;  %17499 = vmatprep.subr.bf16.mxu1 %v18251_v31 }
 0x543   : > { %16149 = vmatmul.mubr.msk.f32.vlgmr.msra.gmra.mrb[26].mxu0 %vm1050_vm0, %v18670_v23  ;;  %16160 = vmatmul.mubr.msk.f32.vlgmr.msra.gmra.mrb[26].mxu1 %vm1050_vm0, %v18670_v23 }
 0x544   : > { %17495 = vmatpush3.bf16.msra.mxu0 %v18766_v41  ;;  %17501 = vmatpush3.bf16.msra.mxu1 %v18768_v42 }
 0x545   : > { %17496 = vmatprep.subr.bf16.mxu0 %v18251_v31  ;;  %17502 = vmatprep.subr.bf16.mxu1 %v18251_v31 }
 0x546   : > { %16170 = vmatprep.mubr.msk.f32.mxu0 %vm18252_vm1, %v18253_v35  ;;  %16181 = vmatprep.mubr.msk.f32.mxu1 %vm18252_vm1, %v18253_v35 }
 0x548   : > { %17498 = vmatpush3.bf16.msra.mxu0 %v18782_v47  ;;  %17504 = vmatpush3.bf16.msra.mxu1 %v18784_v48 }
 0x549   : > { %17505 = vmatprep.subr.bf16.mxu0 %v18251_v31  ;;  %17511 = vmatprep.subr.bf16.mxu1 %v18251_v31 }
 0x54b   : > { %16171 = vmatmul.mubr.msk.f32.vlgmr.msra.gmra.mrb[28].mxu0 %vm1050_vm0, %v18707_v30  ;;  %16182 = vmatmul.mubr.msk.f32.vlgmr.msra.gmra.mrb[28].mxu1 %vm1050_vm0, %v18707_v30 }
 0x54c   : > { %17507 = vmatpush3.bf16.msra.mxu0 %v18798_v53  ;;  %17513 = vmatpush3.bf16.msra.mxu1 %v18800_v54 }
 0x54d   : > { %17508 = vmatprep.subr.bf16.mxu0 %v18251_v31  ;;  %17514 = vmatprep.subr.bf16.mxu1 %v18251_v31 }
 0x54e   : > { %16192 = vmatprep.mubr.msk.f32.mxu0 %vm18252_vm1, %v18253_v35  ;;  %16203 = vmatprep.mubr.msk.f32.mxu1 %vm18252_vm1, %v18253_v35 }
 0x550   : > { %17510 = vmatpush3.bf16.msra.mxu0 %v18814_v59  ;;  %17516 = vmatpush3.bf16.msra.mxu1 %v18816_v60 }
 0x551   : > { %17517 = vmatprep.subr.bf16.mxu0 %v18251_v31  ;;  %17523 = vmatprep.subr.bf16.mxu1 %v18251_v31 }
 0x553   : > { %16193 = vmatmul.mubr.msk.f32.vlgmr.msra.gmra.mrb[30].mxu0 %vm1050_vm0, %v18707_v30  ;;  %16204 = vmatmul.mubr.msk.f32.vlgmr.msra.gmra.mrb[30].mxu1 %vm1050_vm0, %v18707_v30 }
 0x554   : > { %17519 = vmatpush3.bf16.msra.mxu0 %v18766_v41  ;;  %17525 = vmatpush3.bf16.msra.mxu1 %v18768_v42 }
 0x555   : > { %17520 = vmatprep.subr.bf16.mxu0 %v18251_v31  ;;  %17526 = vmatprep.subr.bf16.mxu1 %v18251_v31 }
 0x556   : > { %16214 = vmatprep.mubr.msk.f32.mxu0 %vm18252_vm1, %v18253_v35  ;;  %16225 = vmatprep.mubr.msk.f32.mxu1 %vm18252_vm1, %v18253_v35 }
 0x558   : > { %17522 = vmatpush3.bf16.msra.mxu0 %v18782_v47  ;;  %17528 = vmatpush3.bf16.msra.mxu1 %v18784_v48 }
 0x559   : > { %17529 = vmatprep.subr.bf16.mxu0 %v18251_v31  ;;  %17535 = vmatprep.subr.bf16.mxu1 %v18251_v31 }
 0x55b   : > { %16215 = vmatmul.mubr.msk.f32.vlgmr.msra.gmra.mrb[32].mxu0 %vm1050_vm0, %v18744_v36  ;;  %16226 = vmatmul.mubr.msk.f32.vlgmr.msra.gmra.mrb[32].mxu1 %vm1050_vm0, %v18744_v36 }
 0x55c   : > { %17531 = vmatpush3.bf16.msra.mxu0 %v18798_v53  ;;  %17537 = vmatpush3.bf16.msra.mxu1 %v18800_v54 }
 0x55d   : > { %17532 = vmatprep.subr.bf16.mxu0 %v18251_v31  ;;  %17538 = vmatprep.subr.bf16.mxu1 %v18251_v31 }
 0x55e   : > { %16236 = vmatprep.mubr.msk.f32.mxu0 %vm18252_vm1, %v18253_v35  ;;  %16247 = vmatprep.mubr.msk.f32.mxu1 %vm18252_vm1, %v18253_v35 }
 0x560   : > { %17534 = vmatpush3.bf16.msra.mxu0 %v18814_v59  ;;  %17540 = vmatpush3.bf16.msra.mxu1 %v18816_v60 }
 0x561   : > { %17541 = vmatprep.subr.bf16.mxu0 %v18251_v31  ;;  %17547 = vmatprep.subr.bf16.mxu1 %v18251_v31 }
 0x563   : > { %16237 = vmatmul.mubr.msk.f32.vlgmr.msra.gmra.mrb[34].mxu0 %vm1050_vm0, %v18744_v36  ;;  %16248 = vmatmul.mubr.msk.f32.vlgmr.msra.gmra.mrb[34].mxu1 %vm1050_vm0, %v18744_v36 }
 0x564   : > { %17543 = vmatpush3.bf16.msra.mxu0 %v18926_v2  ;;  %17549 = vmatpush3.bf16.msra.mxu1 %v18928_v3 }
 0x565   : > { %17544 = vmatprep.subr.bf16.mxu0 %v18251_v31  ;;  %17550 = vmatprep.subr.bf16.mxu1 %v18251_v31 }
 0x566   : > { %16258 = vmatprep.mubr.msk.f32.mxu0 %vm18252_vm1, %v18253_v35  ;;  %16269 = vmatprep.mubr.msk.f32.mxu1 %vm18252_vm1, %v18253_v35 }
 0x568   : > { %17546 = vmatpush3.bf16.msra.mxu0 %v18942_v10  ;;  %17552 = vmatpush3.bf16.msra.mxu1 %v18944_v11 }
 0x569   : > { %17553 = vmatprep.subr.bf16.mxu0 %v18251_v31  ;;  %17559 = vmatprep.subr.bf16.mxu1 %v18251_v31 }
 0x56b   : > { %16259 = vmatmul.mubr.msk.f32.vlgmr.msra.gmra.mrb[36].mxu0 %vm1050_vm0, %v18628_v9  ;;  %16270 = vmatmul.mubr.msk.f32.vlgmr.msra.gmra.mrb[36].mxu1 %vm1050_vm0, %v18628_v9 }
 0x56c   : > { %17555 = vmatpush3.bf16.msra.mxu0 %v18958_v18  ;;  %17561 = vmatpush3.bf16.msra.mxu1 %v18960_v19 }
 0x56d   : > { %17556 = vmatprep.subr.bf16.mxu0 %v18251_v31  ;;  %17562 = vmatprep.subr.bf16.mxu1 %v18251_v31 }
 0x56e   : > { %16280 = vmatprep.mubr.msk.f32.mxu0 %vm18252_vm1, %v18253_v35  ;;  %16291 = vmatprep.mubr.msk.f32.mxu1 %vm18252_vm1, %v18253_v35 }
 0x570   : > { %17558 = vmatpush3.bf16.msra.mxu0 %v18974_v25  ;;  %17564 = vmatpush3.bf16.msra.mxu1 %v18976_v26 }
 0x571   : > { %17565 = vmatprep.subr.bf16.mxu0 %v18251_v31  ;;  %17571 = vmatprep.subr.bf16.mxu1 %v18251_v31 }
 0x573   : > { %16281 = vmatmul.mubr.msk.f32.vlgmr.msra.gmra.mrb[38].mxu0 %vm1050_vm0, %v18628_v9  ;;  %16292 = vmatmul.mubr.msk.f32.vlgmr.msra.gmra.mrb[38].mxu1 %vm1050_vm0, %v18628_v9 }
 0x574   : > { %17567 = vmatpush3.bf16.msra.mxu0 %v18926_v2  ;;  %17573 = vmatpush3.bf16.msra.mxu1 %v18928_v3 }
 0x575   : > { %17568 = vmatprep.subr.bf16.mxu0 %v18251_v31  ;;  %17574 = vmatprep.subr.bf16.mxu1 %v18251_v31 }
 0x576   : > { %16302 = vmatprep.mubr.msk.f32.mxu0 %vm18252_vm1, %v18253_v35  ;;  %16313 = vmatprep.mubr.msk.f32.mxu1 %vm18252_vm1, %v18253_v35 }
 0x578   : > { %17570 = vmatpush3.bf16.msra.mxu0 %v18942_v10  ;;  %17576 = vmatpush3.bf16.msra.mxu1 %v18944_v11 }
 0x579   : > { %17577 = vmatprep.subr.bf16.mxu0 %v18251_v31  ;;  %17583 = vmatprep.subr.bf16.mxu1 %v18251_v31 }
 0x57b   : > { %16303 = vmatmul.mubr.msk.f32.vlgmr.msra.gmra.mrb[40].mxu0 %vm1050_vm0, %v18670_v23  ;;  %16314 = vmatmul.mubr.msk.f32.vlgmr.msra.gmra.mrb[40].mxu1 %vm1050_vm0, %v18670_v23 }
 0x57c   : > { %17579 = vmatpush3.bf16.msra.mxu0 %v18958_v18  ;;  %17585 = vmatpush3.bf16.msra.mxu1 %v18960_v19 }
 0x57d   : > { %17580 = vmatprep.subr.bf16.mxu0 %v18251_v31  ;;  %17586 = vmatprep.subr.bf16.mxu1 %v18251_v31 }
 0x57e   : > { %16324 = vmatprep.mubr.msk.f32.mxu0 %vm18252_vm1, %v18253_v35  ;;  %16335 = vmatprep.mubr.msk.f32.mxu1 %vm18252_vm1, %v18253_v35 }
 0x580   : > { %17582 = vmatpush3.bf16.msra.mxu0 %v18974_v25  ;;  %17588 = vmatpush3.bf16.msra.mxu1 %v18976_v26 }
 0x581   : > { %17589 = vmatprep.subr.bf16.mxu0 %v18251_v31  ;;  %17595 = vmatprep.subr.bf16.mxu1 %v18251_v31 }
 0x583   : > { %16325 = vmatmul.mubr.msk.f32.vlgmr.msra.gmra.mrb[42].mxu0 %vm1050_vm0, %v18670_v23  ;;  %16336 = vmatmul.mubr.msk.f32.vlgmr.msra.gmra.mrb[42].mxu1 %vm1050_vm0, %v18670_v23 }
 0x584   : > { %17591 = vmatpush3.bf16.msra.mxu0 %v18926_v2  ;;  %17597 = vmatpush3.bf16.msra.mxu1 %v18928_v3 }
 0x585   : > { %17592 = vmatprep.subr.bf16.mxu0 %v18251_v31  ;;  %17598 = vmatprep.subr.bf16.mxu1 %v18251_v31 }
 0x586   : > { %16346 = vmatprep.mubr.msk.f32.mxu0 %vm18252_vm1, %v18253_v35  ;;  %16357 = vmatprep.mubr.msk.f32.mxu1 %vm18252_vm1, %v18253_v35 }
 0x588   : > { %17594 = vmatpush3.bf16.msra.mxu0 %v18942_v10  ;;  %17600 = vmatpush3.bf16.msra.mxu1 %v18944_v11 }
 0x589   : > { %17601 = vmatprep.subr.bf16.mxu0 %v18251_v31  ;;  %17607 = vmatprep.subr.bf16.mxu1 %v18251_v31 }
 0x58b   : > { %16347 = vmatmul.mubr.msk.f32.vlgmr.msra.gmra.mrb[44].mxu0 %vm1050_vm0, %v18707_v30  ;;  %16358 = vmatmul.mubr.msk.f32.vlgmr.msra.gmra.mrb[44].mxu1 %vm1050_vm0, %v18707_v30 }
 0x58c   : > { %17603 = vmatpush3.bf16.msra.mxu0 %v18958_v18  ;;  %17609 = vmatpush3.bf16.msra.mxu1 %v18960_v19 }
 0x58d   : > { %17604 = vmatprep.subr.bf16.mxu0 %v18251_v31  ;;  %17610 = vmatprep.subr.bf16.mxu1 %v18251_v31 }
 0x58e   : > { %16368 = vmatprep.mubr.msk.f32.mxu0 %vm18252_vm1, %v18253_v35  ;;  %16379 = vmatprep.mubr.msk.f32.mxu1 %vm18252_vm1, %v18253_v35 }
 0x590   : > { %17606 = vmatpush3.bf16.msra.mxu0 %v18974_v25  ;;  %17612 = vmatpush3.bf16.msra.mxu1 %v18976_v26 }
 0x591   : > { %17613 = vmatprep.subr.bf16.mxu0 %v18251_v31  ;;  %17619 = vmatprep.subr.bf16.mxu1 %v18251_v31 }
 0x593   : > { %16369 = vmatmul.mubr.msk.f32.vlgmr.msra.gmra.mrb[46].mxu0 %vm1050_vm0, %v18707_v30  ;;  %16380 = vmatmul.mubr.msk.f32.vlgmr.msra.gmra.mrb[46].mxu1 %vm1050_vm0, %v18707_v30 }
 0x594   : > { %17615 = vmatpush3.bf16.msra.mxu0 %v18926_v2  ;;  %17621 = vmatpush3.bf16.msra.mxu1 %v18928_v3 }
 0x595   : > { %17616 = vmatprep.subr.bf16.mxu0 %v18251_v31  ;;  %17622 = vmatprep.subr.bf16.mxu1 %v18251_v31 }
 0x596   : > { %16390 = vmatprep.mubr.msk.f32.mxu0 %vm18252_vm1, %v18253_v35  ;;  %16401 = vmatprep.mubr.msk.f32.mxu1 %vm18252_vm1, %v18253_v35 }
 0x598   : > { %17618 = vmatpush3.bf16.msra.mxu0 %v18942_v10  ;;  %17624 = vmatpush3.bf16.msra.mxu1 %v18944_v11 }
 0x599   : > { %17625 = vmatprep.subr.bf16.mxu0 %v18251_v31  ;;  %17631 = vmatprep.subr.bf16.mxu1 %v18251_v31 }
 0x59b   : > { %16391 = vmatmul.mubr.msk.f32.vlgmr.msra.gmra.mrb[48].mxu0 %vm1050_vm0, %v18744_v36  ;;  %16402 = vmatmul.mubr.msk.f32.vlgmr.msra.gmra.mrb[48].mxu1 %vm1050_vm0, %v18744_v36 }
 0x59c   : > { %17627 = vmatpush3.bf16.msra.mxu0 %v18958_v18  ;;  %17633 = vmatpush3.bf16.msra.mxu1 %v18960_v19 }
 0x59d   : > { %17628 = vmatprep.subr.bf16.mxu0 %v18251_v31  ;;  %17634 = vmatprep.subr.bf16.mxu1 %v18251_v31 }
 0x59e   : > { %16412 = vmatprep.mubr.msk.f32.mxu0 %vm18252_vm1, %v18253_v35  ;;  %16423 = vmatprep.mubr.msk.f32.mxu1 %vm18252_vm1, %v18253_v35 }
 0x5a0   : > { %17630 = vmatpush3.bf16.msra.mxu0 %v18974_v25  ;;  %17636 = vmatpush3.bf16.msra.mxu1 %v18976_v26 }
 0x5a1   : > { %16426 = vmatprep.subr.mxu1 %v18253_v35  ;;  %16436 = vmatprep.subr.mxu0 %v18253_v35 }
 0x5a3   : > { %16413 = vmatmul.mubr.msk.f32.vlgmr.msra.gmra.mrb[50].mxu0 %vm1050_vm0, %v18744_v36  ;;  %16424 = vmatmul.mubr.msk.f32.vlgmr.msra.gmra.mrb[50].mxu1 %vm1050_vm0, %v18744_v36 }
 0x5a4   : > { %16428 = vmatprep.mubr.msk.f32.mxu1 %vm18252_vm1, %v18253_v35  ;;  %16438 = vmatprep.mubr.msk.f32.mxu0 %vm18252_vm1, %v18253_v35 }
 0x5be   : > { %v1701_v9 = vpop.f32.mrb[4].mxu0  ;;  %v19092_v23 = vpop.f32.mrb[4].mxu1 }
 0x5bf   : > { %v15908_v27 = vpop.f32.mrb[5].mxu0  ;;  %v15919_v28 = vpop.f32.mrb[5].mxu1  ;;  %16427 = vmatpush3.xpose.msk.msra.mxu1 %vm5004_vm2, %v1701_v9 }
 0x5c0   : > { %16431 = vmatprep.subr.mxu1 %v18253_v35 }
 0x5c6   : > { %v1841_v29 = vpop.f32.mrb[6].mxu0  ;;  %v19096_v30 = vpop.f32.mrb[6].mxu1 }
 0x5c7   : > { %v15930_v32 = vpop.f32.mrb[7].mxu0  ;;  %v15941_v33 = vpop.f32.mrb[7].mxu1  ;;  %16437 = vmatpush3.xpose.msk.msra.mxu0 %vm5004_vm2, %v1841_v29 }
 0x5c8   : > { %16446 = vmatprep.subr.mxu0 %v18253_v35 }
 0x5ce   : > { %v19100_v34 = vpop.f32.mrb[8].mxu0  ;;  %v19102_v36 = vpop.f32.mrb[8].mxu1 }
 0x5cf   : > { %v15952_v37 = vpop.f32.mrb[9].mxu0  ;;  %v15963_v38 = vpop.f32.mrb[9].mxu1 }
 0x5d6   : > { %v19104_v39 = vpop.f32.mrb[10].mxu0  ;;  %v19106_v40 = vpop.f32.mrb[10].mxu1 }
 0x5d7   : > { %v15974_v41 = vpop.f32.mrb[11].mxu0  ;;  %v15985_v42 = vpop.f32.mrb[11].mxu1 }
 0x5de   : > { %v19108_v43 = vpop.f32.mrb[12].mxu0  ;;  %v19110_v44 = vpop.f32.mrb[12].mxu1 }
 0x5df   : > { %v15996_v45 = vpop.f32.mrb[13].mxu0  ;;  %v16007_v46 = vpop.f32.mrb[13].mxu1 }
 0x5e6   : > { %v19112_v47 = vpop.f32.mrb[14].mxu0  ;;  %v19114_v48 = vpop.f32.mrb[14].mxu1 }
 0x5e7   : > { %v16018_v49 = vpop.f32.mrb[15].mxu0  ;;  %v16029_v50 = vpop.f32.mrb[15].mxu1 }
 0x5ee   : > { %v19116_v51 = vpop.f32.mrb[16].mxu0  ;;  %v19118_v52 = vpop.f32.mrb[16].mxu1 }
 0x5ef   : > { %v16040_v53 = vpop.f32.mrb[17].mxu0  ;;  %v16051_v54 = vpop.f32.mrb[17].mxu1 }
 0x5f6   : > { %v19120_v55 = vpop.f32.mrb[18].mxu0  ;;  %v19122_v56 = vpop.f32.mrb[18].mxu1 }
 0x5f7   : > { %v16062_v57 = vpop.f32.mrb[19].mxu0  ;;  %v16073_v58 = vpop.f32.mrb[19].mxu1 }
 0x5fe   : > { %v19124_v59 = vpop.f32.mrb[20].mxu0  ;;  %v19126_v60 = vpop.f32.mrb[20].mxu1 }
 0x5ff   : > { %v16084_v61 = vpop.f32.mrb[21].mxu0  ;;  %v16095_v63 = vpop.f32.mrb[21].mxu1 }
 0x606   : > { %v19128_v0 = vpop.f32.mrb[22].mxu0  ;;  %v19130_v1 = vpop.f32.mrb[22].mxu1 }
 0x607   : > { %v16106_v2 = vpop.f32.mrb[23].mxu0  ;;  %v16117_v3 = vpop.f32.mrb[23].mxu1 }
 0x60e   : > { %v19132_v4 = vpop.f32.mrb[24].mxu0  ;;  %v19134_v6 = vpop.f32.mrb[24].mxu1 }
 0x60f   : > { %v16128_v7 = vpop.f32.mrb[25].mxu0  ;;  %v16139_v8 = vpop.f32.mrb[25].mxu1 }
 0x616   : > { %v19136_v10 = vpop.f32.mrb[26].mxu0  ;;  %v19138_v11 = vpop.f32.mrb[26].mxu1 }
 0x617   : > { %v16150_v13 = vpop.f32.mrb[27].mxu0  ;;  %v16161_v14 = vpop.f32.mrb[27].mxu1 }
 0x61e   : > { %v19140_v15 = vpop.f32.mrb[28].mxu0  ;;  %v19142_v16 = vpop.f32.mrb[28].mxu1 }
 0x61f   : > { %v16172_v18 = vpop.f32.mrb[29].mxu0  ;;  %v16183_v19 = vpop.f32.mrb[29].mxu1 }
 0x626   : > { %v19144_v20 = vpop.f32.mrb[30].mxu0  ;;  %v19146_v21 = vpop.f32.mrb[30].mxu1 }
 0x627   : > { %v16194_v22 = vpop.f32.mrb[31].mxu0  ;;  %v16205_v24 = vpop.f32.mrb[31].mxu1 }
 0x62e   : > { %v19148_v25 = vpop.f32.mrb[32].mxu0  ;;  %v19150_v26 = vpop.f32.mrb[32].mxu1 }
 0x62f   : > { %v16216_v9 = vpop.f32.mrb[33].mxu0  ;;  %v16227_v27 = vpop.f32.mrb[33].mxu1 }
 0x636   : > { %v19152_v28 = vpop.f32.mrb[34].mxu0  ;;  %v19154_v29 = vpop.f32.mrb[34].mxu1 }
 0x637   : > { %v16238_v32 = vpop.f32.mrb[35].mxu0  ;;  %v16249_v33 = vpop.f32.mrb[35].mxu1 }
 0x63e   : > { %v3950_v37 = vpop.f32.mrb[36].mxu0  ;;  %v4020_v38 = vpop.f32.mrb[36].mxu1 }
 0x63f   : > { %v16260_v41 = vpop.f32.mrb[37].mxu0  ;;  %v16271_v42 = vpop.f32.mrb[37].mxu1  ;;  %16429 = vmatmul.mubr.msk.f32.vlgmr.msra.gmra.mrb[52].mxu1 %vm5004_vm2, %v3950_v37 }
 0x640   : > { %16432 = vmatpush3.xpose.msk.msra.mxu1 %vm5004_vm2, %v19092_v23  ;;  %16433 = vmatprep.mubr.msk.f32.mxu1 %vm18252_vm1, %v18253_v35 }
 0x641   : > { %16441 = vmatprep.subr.mxu1 %v18253_v35 }
 0x643   : > { %16434 = vmatmul.mubr.msk.f32.vlgmr.msra.gmra.mrb[54].mxu1 %vm5004_vm2, %v4020_v38 }
 0x644   : > { %16442 = vmatpush3.xpose.msk.msra.mxu1 %vm5004_vm2, %v19096_v30  ;;  %16443 = vmatprep.mubr.msk.f32.mxu1 %vm18252_vm1, %v18253_v35 }
 0x645   : > { %16451 = vmatprep.subr.mxu1 %v18253_v35 }
 0x646   : > { %v4090_v45 = vpop.f32.mrb[38].mxu0  ;;  %v4160_v46 = vpop.f32.mrb[38].mxu1 }
 0x647   : > { %v16282_v49 = vpop.f32.mrb[39].mxu0  ;;  %v16293_v50 = vpop.f32.mrb[39].mxu1  ;;  %16439 = vmatmul.mubr.msk.f32.vlgmr.msra.gmra.mrb[52].mxu0 %vm5004_vm2, %v4090_v45  ;;  %16444 = vmatmul.mubr.msk.f32.vlgmr.msra.gmra.mrb[56].mxu1 %vm5004_vm2, %v4160_v46 }
 0x648   : > { %16447 = vmatpush3.xpose.msk.msra.mxu0 %vm5004_vm2, %v19100_v34  ;;  %16452 = vmatpush3.xpose.msk.msra.mxu1 %vm5004_vm2, %v19102_v36 }
 0x649   : > { %16448 = vmatprep.mubr.msk.f32.mxu0 %vm18252_vm1, %v18253_v35  ;;  %16453 = vmatprep.mubr.msk.f32.mxu1 %vm18252_vm1, %v18253_v35 }
 0x64a   : > { %16456 = vmatprep.subr.mxu0 %v18253_v35  ;;  %16461 = vmatprep.subr.mxu1 %v18253_v35 }
 0x64e   : > { %v4230_v23 = vpop.f32.mrb[40].mxu0  ;;  %v4300_v30 = vpop.f32.mrb[40].mxu1 }
 0x64f   : > { %v16304_v53 = vpop.f32.mrb[41].mxu0  ;;  %v16315_v54 = vpop.f32.mrb[41].mxu1  ;;  %16449 = vmatmul.mubr.msk.f32.vlgmr.msra.gmra.mrb[54].mxu0 %vm5004_vm2, %v4230_v23  ;;  %16454 = vmatmul.mubr.msk.f32.vlgmr.msra.gmra.mrb[58].mxu1 %vm5004_vm2, %v4300_v30 }
 0x650   : > { %16457 = vmatpush3.xpose.msk.msra.mxu0 %vm5004_vm2, %v19104_v39  ;;  %16462 = vmatpush3.xpose.msk.msra.mxu1 %vm5004_vm2, %v19106_v40 }
 0x651   : > { %16458 = vmatprep.mubr.msk.f32.mxu0 %vm18252_vm1, %v18253_v35  ;;  %16463 = vmatprep.mubr.msk.f32.mxu1 %vm18252_vm1, %v18253_v35 }
 0x652   : > { %16466 = vmatprep.subr.mxu0 %v18253_v35  ;;  %16471 = vmatprep.subr.mxu1 %v18253_v35 }
 0x656   : > { %v4370_v34 = vpop.f32.mrb[42].mxu0  ;;  %v4440_v36 = vpop.f32.mrb[42].mxu1 }
 0x657   : > { %v16326_v57 = vpop.f32.mrb[43].mxu0  ;;  %v16337_v58 = vpop.f32.mrb[43].mxu1  ;;  %16459 = vmatmul.mubr.msk.f32.vlgmr.msra.gmra.mrb[56].mxu0 %vm5004_vm2, %v4370_v34  ;;  %16464 = vmatmul.mubr.msk.f32.vlgmr.msra.gmra.mrb[60].mxu1 %vm5004_vm2, %v4440_v36 }
 0x658   : > { %16467 = vmatpush3.xpose.msk.msra.mxu0 %vm5004_vm2, %v19108_v43  ;;  %16472 = vmatpush3.xpose.msk.msra.mxu1 %vm5004_vm2, %v19110_v44 }
 0x659   : > { %16468 = vmatprep.mubr.msk.f32.mxu0 %vm18252_vm1, %v18253_v35  ;;  %16473 = vmatprep.mubr.msk.f32.mxu1 %vm18252_vm1, %v18253_v35 }
 0x65a   : > { %16476 = vmatprep.subr.mxu0 %v18253_v35  ;;  %16481 = vmatprep.subr.mxu1 %v18253_v35 }
 0x65e   : > { %v4510_v39 = vpop.f32.mrb[44].mxu0  ;;  %v4580_v40 = vpop.f32.mrb[44].mxu1 }
 0x65f   : > { %v16348_v61 = vpop.f32.mrb[45].mxu0  ;;  %v16359_v63 = vpop.f32.mrb[45].mxu1  ;;  %16469 = vmatmul.mubr.msk.f32.vlgmr.msra.gmra.mrb[58].mxu0 %vm5004_vm2, %v4510_v39  ;;  %16474 = vmatmul.mubr.msk.f32.vlgmr.msra.gmra.mrb[62].mxu1 %vm5004_vm2, %v4580_v40 }
 0x660   : > { %16477 = vmatpush3.xpose.msk.msra.mxu0 %vm5004_vm2, %v19112_v47  ;;  %16482 = vmatpush3.xpose.msk.msra.mxu1 %vm5004_vm2, %v19114_v48 }
 0x661   : > { %16478 = vmatprep.mubr.msk.f32.mxu0 %vm18252_vm1, %v18253_v35  ;;  %16483 = vmatprep.mubr.msk.f32.mxu1 %vm18252_vm1, %v18253_v35 }
 0x662   : > { %16486 = vmatprep.subr.mxu0 %v18253_v35  ;;  %16491 = vmatprep.subr.mxu1 %v18253_v35 }
 0x666   : > { %v4650_v43 = vpop.f32.mrb[46].mxu0  ;;  %v4720_v44 = vpop.f32.mrb[46].mxu1 }
 0x667   : > { %v16370_v2 = vpop.f32.mrb[47].mxu0  ;;  %v16381_v3 = vpop.f32.mrb[47].mxu1  ;;  %16479 = vmatmul.mubr.msk.f32.vlgmr.msra.gmra.mrb[60].mxu0 %vm5004_vm2, %v4650_v43  ;;  %16484 = vmatmul.mubr.msk.f32.vlgmr.msra.gmra.mrb[64].mxu1 %vm5004_vm2, %v4720_v44 }
 0x668   : > { %16487 = vmatpush3.xpose.msk.msra.mxu0 %vm5004_vm2, %v19116_v51  ;;  %16492 = vmatpush3.xpose.msk.msra.mxu1 %vm5004_vm2, %v19118_v52 }
 0x669   : > { %16488 = vmatprep.mubr.msk.f32.mxu0 %vm18252_vm1, %v18253_v35  ;;  %16493 = vmatprep.mubr.msk.f32.mxu1 %vm18252_vm1, %v18253_v35 }
 0x66a   : > { %16496 = vmatprep.subr.mxu0 %v18253_v35  ;;  %16501 = vmatprep.subr.mxu1 %v18253_v35 }
 0x66e   : > { %v4790_v47 = vpop.f32.mrb[48].mxu0  ;;  %v4860_v48 = vpop.f32.mrb[48].mxu1 }
 0x66f   : > { %v16392_v7 = vpop.f32.mrb[49].mxu0  ;;  %v16403_v8 = vpop.f32.mrb[49].mxu1  ;;  %16489 = vmatmul.mubr.msk.f32.vlgmr.msra.gmra.mrb[62].mxu0 %vm5004_vm2, %v4790_v47  ;;  %16494 = vmatmul.mubr.msk.f32.vlgmr.msra.gmra.mrb[66].mxu1 %vm5004_vm2, %v4860_v48 }
 0x670   : > { %16497 = vmatpush3.xpose.msk.msra.mxu0 %vm5004_vm2, %v19120_v55  ;;  %16502 = vmatpush3.xpose.msk.msra.mxu1 %vm5004_vm2, %v19122_v56 }
 0x671   : > { %16498 = vmatprep.mubr.msk.f32.mxu0 %vm18252_vm1, %v18253_v35  ;;  %16503 = vmatprep.mubr.msk.f32.mxu1 %vm18252_vm1, %v18253_v35 }
 0x672   : > { %16506 = vmatprep.subr.mxu0 %v18253_v35  ;;  %16511 = vmatprep.subr.mxu1 %v18253_v35 }
 0x676   : > { %v4930_v51 = vpop.f32.mrb[50].mxu0  ;;  %v5000_v52 = vpop.f32.mrb[50].mxu1 }
 0x677   : > { %v16414_v13 = vpop.f32.mrb[51].mxu0  ;;  %v16425_v14 = vpop.f32.mrb[51].mxu1  ;;  %16499 = vmatmul.mubr.msk.f32.vlgmr.msra.gmra.mrb[64].mxu0 %vm5004_vm2, %v4930_v51  ;;  %16504 = vmatmul.mubr.msk.f32.vlgmr.msra.gmra.mrb[68].mxu1 %vm5004_vm2, %v5000_v52 }
 0x678   : > { %16507 = vmatpush3.msra.mxu0 %v19124_v59  ;;  %16512 = vmatpush3.msra.mxu1 %v19126_v60 }
 0x679   : > { %16508 = vmatprep.mubr.msk.f32.mxu0 %vm18252_vm1, %v18253_v35  ;;  %16516 = vmatprep.subr.mxu0 %v18253_v35 }
 0x67a   : > { %16513 = vmatprep.mubr.msk.f32.mxu1 %vm18252_vm1, %v18253_v35  ;;  %16521 = vmatprep.subr.mxu1 %v18253_v35 }
 0x712   : > { %v5077_v55 = vpop.f32.mrb[52].mxu1 }
 0x713   : > { %v19250_v56 = vmul.f32 0.35355338, %v5077_v55  ;;  %v16430_v18 = vpop.f32.mrb[53].mxu1 }
 0x715   : > { %v6238_v59 = vsel %vm6237_vm3, %v19250_v56, -inf }
 0x716   : > { %6239 = vmax.xlane.f32.xlu0 %v6238_v59  ;;  %v5153_v60 = vpop.f32.mrb[54].mxu1 }
 0x717   : > { %v19254_v19 = vmul.f32 0.35355338, %v5153_v60  ;;  %v16435_v22 = vpop.f32.mrb[55].mxu1 }
 0x719   : > { %v6241_v24 = vsel %vm6237_vm3, %v19254_v19, -inf }
 0x71a   : > { %6242 = vmax.xlane.f32.xlu1 %v6241_v24  ;;  %v5229_v9 = vpop.f32.mrb[52].mxu0  ;;  %v5305_v27 = vpop.f32.mrb[56].mxu1 }
 0x71b   : > { %v19258_v32 = vmul.f32 0.35355338, %v5229_v9  ;;  %v19260_v33 = vmul.f32 0.35355338, %v5305_v27  ;;  %v16440_v37 = vpop.f32.mrb[53].mxu0  ;;  %v16445_v38 = vpop.f32.mrb[57].mxu1 }
 0x71d   : > { %v6247_v41 = vsel %vm6237_vm3, %v19260_v33, -inf  ;;  %v6244_v42 = vsel %vm6237_vm3, %v19258_v32, -inf }
 0x71e   : > { %6248 = vmax.xlane.f32.xlu1 %v6247_v41  ;;  %6245 = vmax.xlane.f32.xlu0 %v6244_v42 }
 0x722   : > { %v5381_v45 = vpop.f32.mrb[54].mxu0  ;;  %v5457_v46 = vpop.f32.mrb[58].mxu1 }
 0x723   : > { %v19266_v49 = vmul.f32 0.35355338, %v5381_v45  ;;  %v19268_v50 = vmul.f32 0.35355338, %v5457_v46  ;;  %v16450_v23 = vpop.f32.mrb[55].mxu0  ;;  %v16455_v30 = vpop.f32.mrb[59].mxu1 }
 0x725   : > { %v6253_v53 = vsel %vm6237_vm3, %v19268_v50, -inf  ;;  %v6250_v54 = vsel %vm6237_vm3, %v19266_v49, -inf }
 0x726   : > { %6254 = vmax.xlane.f32.xlu1 %v6253_v53  ;;  %6251 = vmax.xlane.f32.xlu0 %v6250_v54 }
 0x72a   : > { %v5533_v34 = vpop.f32.mrb[56].mxu0  ;;  %v5609_v36 = vpop.f32.mrb[60].mxu1 }
 0x72b   : > { %v19274_v57 = vmul.f32 0.35355338, %v5533_v34  ;;  %v19276_v58 = vmul.f32 0.35355338, %v5609_v36  ;;  %v16460_v39 = vpop.f32.mrb[57].mxu0  ;;  %v16465_v40 = vpop.f32.mrb[61].mxu1 }
 0x72d   : > { %v6259_v61 = vsel %vm6237_vm3, %v19276_v58, -inf  ;;  %v6256_v63 = vsel %vm6237_vm3, %v19274_v57, -inf }
 0x72e   : > { %6260 = vmax.xlane.f32.xlu1 %v6259_v61  ;;  %6257 = vmax.xlane.f32.xlu0 %v6256_v63 }
 0x732   : > { %v5685_v43 = vpop.f32.mrb[58].mxu0  ;;  %v5761_v44 = vpop.f32.mrb[62].mxu1 }
 0x733   : > { %v19282_v2 = vmul.f32 0.35355338, %v5685_v43  ;;  %v19284_v3 = vmul.f32 0.35355338, %v5761_v44  ;;  %v16470_v47 = vpop.f32.mrb[59].mxu0  ;;  %v16475_v48 = vpop.f32.mrb[63].mxu1 }
 0x735   : > { %v6265_v7 = vsel %vm6237_vm3, %v19284_v3, -inf  ;;  %v6262_v8 = vsel %vm6237_vm3, %v19282_v2, -inf }
 0x736   : > { %6266 = vmax.xlane.f32.xlu1 %v6265_v7  ;;  %6263 = vmax.xlane.f32.xlu0 %v6262_v8 }
 0x73a   : > { %v5837_v51 = vpop.f32.mrb[60].mxu0  ;;  %v5913_v52 = vpop.f32.mrb[64].mxu1 }
 0x73b   : > { %v19290_v13 = vmul.f32 0.35355338, %v5837_v51  ;;  %v19292_v14 = vmul.f32 0.35355338, %v5913_v52  ;;  %v16480_v55 = vpop.f32.mrb[61].mxu0  ;;  %v16485_v18 = vpop.f32.mrb[65].mxu1 }
 0x73d   : > { %v6271_v59 = vsel %vm6237_vm3, %v19292_v14, -inf  ;;  %v6268_v60 = vsel %vm6237_vm3, %v19290_v13, -inf }
 0x73e   : > { %6272 = vmax.xlane.f32.xlu1 %v6271_v59  ;;  %6269 = vmax.xlane.f32.xlu0 %v6268_v60 }
 0x742   : > { %v5989_v22 = vpop.f32.mrb[62].mxu0  ;;  %v6065_v24 = vpop.f32.mrb[66].mxu1 }
 0x743   : > { %v19298_v9 = vmul.f32 0.35355338, %v5989_v22  ;;  %v19300_v27 = vmul.f32 0.35355338, %v6065_v24  ;;  %v16490_v37 = vpop.f32.mrb[63].mxu0  ;;  %v16495_v38 = vpop.f32.mrb[67].mxu1 }
 0x745   : > { %v6277_v41 = vsel %vm6237_vm3, %v19300_v27, -inf  ;;  %v6274_v42 = vsel %vm6237_vm3, %v19298_v9, -inf }
 0x746   : > { %6278 = vmax.xlane.f32.xlu1 %v6277_v41  ;;  %6275 = vmax.xlane.f32.xlu0 %v6274_v42 }
 0x74a   : > { %v6141_v45 = vpop.f32.mrb[64].mxu0  ;;  %v6217_v46 = vpop.f32.mrb[68].mxu1 }
 0x74b   : > { %v19306_v23 = vmul.f32 0.35355338, %v6141_v45  ;;  %v19308_v30 = vmul.f32 0.35355338, %v6217_v46  ;;  %v16500_v53 = vpop.f32.mrb[65].mxu0  ;;  %v16505_v54 = vpop.f32.mrb[69].mxu1 }
 0x74d   : > { %v6283_v34 = vsel %vm6237_vm3, %v19308_v30, -inf  ;;  %v6280_v36 = vsel %vm6237_vm3, %v19306_v23, -inf }
 0x74e   : > { %6284 = vmax.xlane.f32.xlu1 %v6283_v34  ;;  %6281 = vmax.xlane.f32.xlu0 %v6280_v36 }
 0x7a3   : > { %v6240_v39 = vpop.xlane.xlu0 %6239 }
 0x7a4   : > { %v6286_v40 = vsub.f32 %v19250_v56, %v6240_v39 }
 0x7a6   : > { %v6302_v61 = vmul.f32 1.442695, %v6286_v40 }
 0x7a7   : > { %v6243_v63 = vpop.xlane.xlu1 %6242 }
 0x7a8   : > { %18019 = vpow2.f32 %v6302_v61  ;;  %v6287_v43 = vsub.f32 %v19254_v19, %v6243_v63 }
 0x7aa   : > { %v6304_v44 = vmul.f32 1.442695, %v6287_v43 }
 0x7ab   : > { %v6249_v47 = vpop.xlane.xlu1 %6248  ;;  %v6246_v48 = vpop.xlane.xlu0 %6245 }
 0x7ac   : > { %18021 = vpow2.f32 %v6304_v44  ;;  %v6289_v7 = vsub.f32 %v19260_v33, %v6249_v47  ;;  %v6288_v8 = vsub.f32 %v19258_v32, %v6246_v48 }
 0x7ae   : > { %v6308_v51 = vmul.f32 1.442695, %v6289_v7  ;;  %v6306_v52 = vmul.f32 1.442695, %v6288_v8 }
 0x7b0   : > { %18023 = vpow2.f32 %v6308_v51 }
 0x7b1   : > { %18025 = vpow2.f32 %v6306_v52 }
 0x7b2   : > { %v19318_v55 = vpop.eup %18019 }
 0x7b3   : > { %v6255_v56 = vpop.xlane.xlu1 %6254  ;;  %v6252_v18 = vpop.xlane.xlu0 %6251  ;;  %v6334_v59 = vsel %vm6237_vm3, %v19318_v55, 0.0 }
 0x7b4   : > { %v6291_v19 = vsub.f32 %v19268_v50, %v6255_v56  ;;  %v6290_v60 = vsub.f32 %v19266_v49, %v6252_v18  ;;  %6335 = vadd.xlane.f32.xlu0 %v6334_v59 }
 0x7b6   : > { %v19324_v22 = vpop.eup %18021  ;;  %v6312_v33 = vmul.f32 1.442695, %v6291_v19  ;;  %v6310_v32 = vmul.f32 1.442695, %v6290_v60 }
 0x7b7   : > { %v6337_v24 = vsel %vm6237_vm3, %v19324_v22, 0.0 }
 0x7b8   : > { %18027 = vpow2.f32 %v6312_v33  ;;  %6338 = vadd.xlane.f32.xlu1 %v6337_v24 }
 0x7b9   : > { %18029 = vpow2.f32 %v6310_v32 }
 0x7ba   : > { %v19328_v37 = vpop.eup %18023 }
 0x7bb   : > { %v19330_v38 = vpop.eup %18025  ;;  %v6261_v41 = vpop.xlane.xlu1 %6260  ;;  %v6343_v49 = vsel %vm6237_vm3, %v19328_v37, 0.0 }
 0x7bc   : > { %v6258_v42 = vpop.xlane.xlu0 %6257  ;;  %v6293_v50 = vsub.f32 %v19276_v58, %v6261_v41  ;;  %6344 = vadd.xlane.f32.xlu1 %v6343_v49  ;;  %v6340_v46 = vsel %vm6237_vm3, %v19330_v38, 0.0 }
 0x7bd   : > { %v6292_v45 = vsub.f32 %v19274_v57, %v6258_v42  ;;  %6341 = vadd.xlane.f32.xlu0 %v6340_v46 }
 0x7be   : > { %v6316_v53 = vmul.f32 1.442695, %v6293_v50 }
 0x7bf   : > { %v6314_v54 = vmul.f32 1.442695, %v6292_v45 }
 0x7c0   : > { %18031 = vpow2.f32 %v6316_v53 }
 0x7c1   : > { %18033 = vpow2.f32 %v6314_v54 }
 0x7c2   : > { %v19338_v34 = vpop.eup %18027 }
 0x7c3   : > { %v19340_v36 = vpop.eup %18029  ;;  %v6267_v39 = vpop.xlane.xlu1 %6266  ;;  %v6349_v58 = vsel %vm6237_vm3, %v19338_v34, 0.0 }
 0x7c4   : > { %v6264_v40 = vpop.xlane.xlu0 %6263  ;;  %v6295_v57 = vsub.f32 %v19284_v3, %v6267_v39  ;;  %6350 = vadd.xlane.f32.xlu1 %v6349_v58  ;;  %v6346_v63 = vsel %vm6237_vm3, %v19340_v36, 0.0 }
 0x7c5   : > { %v6294_v61 = vsub.f32 %v19282_v2, %v6264_v40  ;;  %6347 = vadd.xlane.f32.xlu0 %v6346_v63 }
 0x7c6   : > { %v6320_v43 = vmul.f32 1.442695, %v6295_v57 }
 0x7c7   : > { %v6318_v44 = vmul.f32 1.442695, %v6294_v61 }
 0x7c8   : > { %18035 = vpow2.f32 %v6320_v43 }
 0x7c9   : > { %18037 = vpow2.f32 %v6318_v44 }
 0x7ca   : > { %v19348_v47 = vpop.eup %18031 }
 0x7cb   : > { %v19350_v48 = vpop.eup %18033  ;;  %v6273_v7 = vpop.xlane.xlu1 %6272  ;;  %v6355_v3 = vsel %vm6237_vm3, %v19348_v47, 0.0 }
 0x7cc   : > { %v6270_v8 = vpop.xlane.xlu0 %6269  ;;  %v6297_v2 = vsub.f32 %v19292_v14, %v6273_v7  ;;  %6356 = vadd.xlane.f32.xlu1 %v6355_v3  ;;  %v6352_v52 = vsel %vm6237_vm3, %v19350_v48, 0.0 }
 0x7cd   : > { %v6296_v51 = vsub.f32 %v19290_v13, %v6270_v8  ;;  %6353 = vadd.xlane.f32.xlu0 %v6352_v52 }
 0x7ce   : > { %v6324_v56 = vmul.f32 1.442695, %v6297_v2 }
 0x7cf   : > { %v6322_v18 = vmul.f32 1.442695, %v6296_v51 }
 0x7d0   : > { %18039 = vpow2.f32 %v6324_v56 }
 0x7d1   : > { %18041 = vpow2.f32 %v6322_v18 }
 0x7d2   : > { %v19358_v59 = vpop.eup %18035 }
 0x7d3   : > { %v19360_v19 = vpop.eup %18037  ;;  %v6279_v60 = vpop.xlane.xlu1 %6278  ;;  %v6361_v14 = vsel %vm6237_vm3, %v19358_v59, 0.0 }
 0x7d4   : > { %v6276_v33 = vpop.xlane.xlu0 %6275  ;;  %v6299_v13 = vsub.f32 %v19300_v27, %v6279_v60  ;;  %6362 = vadd.xlane.f32.xlu1 %v6361_v14  ;;  %v6358_v24 = vsel %vm6237_vm3, %v19360_v19, 0.0 }
 0x7d5   : > { %v6298_v32 = vsub.f32 %v19298_v9, %v6276_v33  ;;  %6359 = vadd.xlane.f32.xlu0 %v6358_v24 }
 0x7d6   : > { %v6328_v41 = vmul.f32 1.442695, %v6299_v13 }
 0x7d7   : > { %v6326_v42 = vmul.f32 1.442695, %v6298_v32 }
 0x7d8   : > { %18043 = vpow2.f32 %v6328_v41 }
 0x7d9   : > { %18045 = vpow2.f32 %v6326_v42 }
 0x7da   : > { %v19368_v49 = vpop.eup %18039 }
 0x7db   : > { %v19370_v50 = vpop.eup %18041  ;;  %v6285_v45 = vpop.xlane.xlu1 %6284  ;;  %v6367_v27 = vsel %vm6237_vm3, %v19368_v49, 0.0 }
 0x7dc   : > { %v6282_v46 = vpop.xlane.xlu0 %6281  ;;  %v6301_v9 = vsub.f32 %v19308_v30, %v6285_v45  ;;  %6368 = vadd.xlane.f32.xlu1 %v6367_v27  ;;  %v6364_v54 = vsel %vm6237_vm3, %v19370_v50, 0.0 }
 0x7dd   : > { %v6300_v53 = vsub.f32 %v19306_v23, %v6282_v46  ;;  %6365 = vadd.xlane.f32.xlu0 %v6364_v54 }
 0x7de   : > { %v6332_v39 = vmul.f32 1.442695, %v6301_v9 }
 0x7df   : > { %v6330_v40 = vmul.f32 1.442695, %v6300_v53 }
 0x7e0   : > { %18047 = vpow2.f32 %v6332_v39 }
 0x7e1   : > { %18049 = vpow2.f32 %v6330_v40  ;;  %v19492_v40 = vld [vmem:[%s20411_s6 + $0x8] sm:$0xff] }
 0x7e2   : > { %v19378_v58 = vpop.eup %18043 }
 0x7e3   : > { %v19380_v57 = vpop.eup %18045  ;;  %v6373_v61 = vsel %vm6237_vm3, %v19378_v58, 0.0 }
 0x7e4   : > { %6374 = vadd.xlane.f32.xlu1 %v6373_v61  ;;  %v6370_v23 = vsel %vm6237_vm3, %v19380_v57, 0.0 }
 0x7e5   : > { %6371 = vadd.xlane.f32.xlu0 %v6370_v23  ;;  %v19504_v23 = vld [vmem:[%s20411_s6 + $0x18] sm:$0xff] }
 0x7ea   : > { %v19386_v30 = vpop.eup %18047 }
 0x7eb   : > { %v19388_v63 = vpop.eup %18049  ;;  %v6379_v43 = vsel %vm6237_vm3, %v19386_v30, 0.0 }
 0x7ec   : > { %6380 = vadd.xlane.f32.xlu1 %v6379_v43  ;;  %v6376_v44 = vsel %vm6237_vm3, %v19388_v63, 0.0 }
 0x7ed   : > { %6377 = vadd.xlane.f32.xlu0 %v6376_v44 }
 0x841   : > { %v6336_v7 = vpop.xlane.xlu0 %6335 }
 0x842   : > { %18051 = vrcp.f32 %v6336_v7 }
 0x845   : > { %v6339_v8 = vpop.xlane.xlu1 %6338 }
 0x846   : > { %18053 = vrcp.f32 %v6339_v8 }
 0x849   : > { %v6345_v3 = vpop.xlane.xlu1 %6344 }
 0x84a   : > { %18055 = vrcp.f32 %v6345_v3  ;;  %v6342_v2 = vpop.xlane.xlu0 %6341 }
 0x84b   : > { %18057 = vrcp.f32 %v6342_v2 }
 0x84c   : > { %v18052_v51 = vpop.eup %18051 }
 0x84d   : > { %v6398_v52 = vmul.f32 %v18052_v51, %v19318_v55 }
 0x84f   : > { %16509 = vmatmul.mubr.msk.f32.vlgmr.msra.gmra.mrb[66].mxu0 %vm5004_vm2, %v6398_v52 }
 0x850   : > { %v18054_v56 = vpop.eup %18053  ;;  %16517 = vmatpush3.msra.mxu0 %v19128_v0  ;;  %16518 = vmatprep.mubr.msk.f32.mxu0 %vm18252_vm1, %v18253_v35 }
 0x851   : > { %v6399_v18 = vmul.f32 %v18054_v56, %v19324_v22  ;;  %v6351_v60 = vpop.xlane.xlu1 %6350  ;;  %16526 = vmatprep.subr.mxu0 %v18253_v35 }
 0x852   : > { %18059 = vrcp.f32 %v6351_v60  ;;  %v6348_v33 = vpop.xlane.xlu0 %6347 }
 0x853   : > { %18061 = vrcp.f32 %v6348_v33  ;;  %16514 = vmatmul.mubr.msk.f32.vlgmr.msra.gmra.mrb[70].mxu1 %vm5004_vm2, %v6399_v18 }
 0x854   : > { %v18056_v14 = vpop.eup %18055  ;;  %16522 = vmatpush3.msra.mxu1 %v19130_v1  ;;  %16523 = vmatprep.mubr.msk.f32.mxu1 %vm18252_vm1, %v18253_v35 }
 0x855   : > { %v18058_v0 = vpop.eup %18057  ;;  %v6401_v55 = vmul.f32 %v18056_v14, %v19328_v37  ;;  %16531 = vmatprep.subr.mxu1 %v18253_v35 }
 0x856   : > { %v6400_v22 = vmul.f32 %v18058_v0, %v19330_v38 }
 0x857   : > { %16524 = vmatmul.mubr.msk.f32.vlgmr.msra.gmra.mrb[72].mxu1 %vm5004_vm2, %v6401_v55 }
 0x858   : > { %16519 = vmatmul.mubr.msk.f32.vlgmr.msra.gmra.mrb[68].mxu0 %vm5004_vm2, %v6400_v22  ;;  %16532 = vmatpush3.msra.mxu1 %v19134_v6 }
 0x859   : > { %16527 = vmatpush3.msra.mxu0 %v19132_v4  ;;  %v6357_v13 = vpop.xlane.xlu1 %6356  ;;  %16528 = vmatprep.mubr.msk.f32.mxu0 %vm18252_vm1, %v18253_v35 }
 0x85a   : > { %18063 = vrcp.f32 %v6357_v13  ;;  %v6354_v1 = vpop.xlane.xlu0 %6353  ;;  %16533 = vmatprep.mubr.msk.f32.mxu1 %vm18252_vm1, %v18253_v35  ;;  %16536 = vmatprep.subr.mxu0 %v18253_v35 }
 0x85b   : > { %18065 = vrcp.f32 %v6354_v1  ;;  %16541 = vmatprep.subr.mxu1 %v18253_v35 }
 0x85c   : > { %v18060_v37 = vpop.eup %18059 }
 0x85d   : > { %v18062_v38 = vpop.eup %18061  ;;  %v6403_v6 = vmul.f32 %v18060_v37, %v19338_v34 }
 0x85e   : > { %v6402_v4 = vmul.f32 %v18062_v38, %v19340_v36 }
 0x85f   : > { %16534 = vmatmul.mubr.msk.f32.vlgmr.msra.gmra.mrb[74].mxu1 %vm5004_vm2, %v6403_v6 }
 0x860   : > { %16529 = vmatmul.mubr.msk.f32.vlgmr.msra.gmra.mrb[70].mxu0 %vm5004_vm2, %v6402_v4  ;;  %16542 = vmatpush3.msra.mxu1 %v19138_v11 }
 0x861   : > { %16537 = vmatpush3.msra.mxu0 %v19136_v10  ;;  %v6363_v32 = vpop.xlane.xlu1 %6362  ;;  %16538 = vmatprep.mubr.msk.f32.mxu0 %vm18252_vm1, %v18253_v35 }
 0x862   : > { %18067 = vrcp.f32 %v6363_v32  ;;  %v6360_v24 = vpop.xlane.xlu0 %6359  ;;  %16543 = vmatprep.mubr.msk.f32.mxu1 %vm18252_vm1, %v18253_v35  ;;  %16546 = vmatprep.subr.mxu0 %v18253_v35 }
 0x863   : > { %18069 = vrcp.f32 %v6360_v24  ;;  %16551 = vmatprep.subr.mxu1 %v18253_v35 }
 0x864   : > { %v18064_v34 = vpop.eup %18063 }
 0x865   : > { %v18066_v36 = vpop.eup %18065  ;;  %v6405_v11 = vmul.f32 %v18064_v34, %v19348_v47 }
 0x866   : > { %v6404_v10 = vmul.f32 %v18066_v36, %v19350_v48 }
 0x867   : > { %16544 = vmatmul.mubr.msk.f32.vlgmr.msra.gmra.mrb[76].mxu1 %vm5004_vm2, %v6405_v11 }
 0x868   : > { %16539 = vmatmul.mubr.msk.f32.vlgmr.msra.gmra.mrb[72].mxu0 %vm5004_vm2, %v6404_v10  ;;  %16552 = vmatpush3.msra.mxu1 %v19142_v16 }
 0x869   : > { %16547 = vmatpush3.msra.mxu0 %v19140_v15  ;;  %v6369_v41 = vpop.xlane.xlu1 %6368  ;;  %16548 = vmatprep.mubr.msk.f32.mxu0 %vm18252_vm1, %v18253_v35 }
 0x86a   : > { %18071 = vrcp.f32 %v6369_v41  ;;  %v6366_v42 = vpop.xlane.xlu0 %6365  ;;  %16553 = vmatprep.mubr.msk.f32.mxu1 %vm18252_vm1, %v18253_v35  ;;  %16556 = vmatprep.subr.mxu0 %v18253_v35 }
 0x86b   : > { %18073 = vrcp.f32 %v6366_v42  ;;  %16561 = vmatprep.subr.mxu1 %v18253_v35 }
 0x86c   : > { %v18068_v47 = vpop.eup %18067 }
 0x86d   : > { %v18070_v48 = vpop.eup %18069  ;;  %v6407_v16 = vmul.f32 %v18068_v47, %v19358_v59 }
 0x86e   : > { %v6406_v15 = vmul.f32 %v18070_v48, %v19360_v19 }
 0x86f   : > { %16554 = vmatmul.mubr.msk.f32.vlgmr.msra.gmra.mrb[78].mxu1 %vm5004_vm2, %v6407_v16 }
 0x870   : > { %16549 = vmatmul.mubr.msk.f32.vlgmr.msra.gmra.mrb[74].mxu0 %vm5004_vm2, %v6406_v15  ;;  %16562 = vmatpush3.msra.mxu1 %v19146_v21 }
 0x871   : > { %16557 = vmatpush3.msra.mxu0 %v19144_v20  ;;  %v6375_v45 = vpop.xlane.xlu1 %6374  ;;  %16558 = vmatprep.mubr.msk.f32.mxu0 %vm18252_vm1, %v18253_v35 }
 0x872   : > { %18075 = vrcp.f32 %v6375_v45  ;;  %v6372_v46 = vpop.xlane.xlu0 %6371  ;;  %16563 = vmatprep.mubr.msk.f32.mxu1 %vm18252_vm1, %v18253_v35  ;;  %16566 = vmatprep.subr.mxu0 %v18253_v35 }
 0x873   : > { %18077 = vrcp.f32 %v6372_v46  ;;  %16571 = vmatprep.subr.mxu1 %v18253_v35 }
 0x874   : > { %v18072_v59 = vpop.eup %18071 }
 0x875   : > { %v18074_v19 = vpop.eup %18073  ;;  %v6409_v21 = vmul.f32 %v18072_v59, %v19368_v49 }
 0x876   : > { %v6408_v20 = vmul.f32 %v18074_v19, %v19370_v50 }
 0x877   : > { %16564 = vmatmul.mubr.msk.f32.vlgmr.msra.gmra.mrb[80].mxu1 %vm5004_vm2, %v6409_v21 }
 0x878   : > { %16559 = vmatmul.mubr.msk.f32.vlgmr.msra.gmra.mrb[76].mxu0 %vm5004_vm2, %v6408_v20  ;;  %16572 = vmatpush3.msra.mxu1 %v19150_v26 }
 0x879   : > { %16567 = vmatpush3.msra.mxu0 %v19148_v25  ;;  %v6381_v27 = vpop.xlane.xlu1 %6380  ;;  %16568 = vmatprep.mubr.msk.f32.mxu0 %vm18252_vm1, %v18253_v35 }
 0x87a   : > { %18079 = vrcp.f32 %v6381_v27  ;;  %v6378_v9 = vpop.xlane.xlu0 %6377  ;;  %16573 = vmatprep.mubr.msk.f32.mxu1 %vm18252_vm1, %v18253_v35  ;;  %16576 = vmatprep.subr.mxu0 %v18253_v35 }
 0x87b   : > { %18081 = vrcp.f32 %v6378_v9  ;;  %16581 = vmatprep.subr.mxu1 %v18253_v35 }
 0x87c   : > { %v18076_v49 = vpop.eup %18075 }
 0x87d   : > { %v18078_v50 = vpop.eup %18077  ;;  %v6411_v26 = vmul.f32 %v18076_v49, %v19378_v58  ;;  %v19497_v58 = vld [vmem:[%s20411_s6 + $0x10] sm:$0xff] }
 0x87e   : > { %v6410_v25 = vmul.f32 %v18078_v50, %v19380_v57 }
 0x87f   : > { %16574 = vmatmul.mubr.msk.f32.vlgmr.msra.gmra.mrb[82].mxu1 %vm5004_vm2, %v6411_v26 }
 0x880   : > { %16569 = vmatmul.mubr.msk.f32.vlgmr.msra.gmra.mrb[78].mxu0 %vm5004_vm2, %v6410_v25  ;;  %16582 = vmatpush3.msra.mxu1 %v19154_v29 }
 0x881   : > { %16577 = vmatpush3.msra.mxu0 %v19152_v28  ;;  %16578 = vmatprep.mubr.msk.f32.mxu0 %vm18252_vm1, %v18253_v35  ;;  %v19487_v28 = vld [vmem:[%s20411_s6] sm:$0xff] }
 0x882   : > { %16583 = vmatprep.mubr.msk.f32.mxu1 %vm18252_vm1, %v18253_v35  ;;  %16586 = vmatprep.subr.mxu0 %v18253_v35 }
 0x883   : > { %16591 = vmatprep.subr.mxu1 %v18253_v35 }
 0x884   : > { %v18080_v53 = vpop.eup %18079 }
 0x885   : > { %v18082_v54 = vpop.eup %18081  ;;  %v6413_v39 = vmul.f32 %v18080_v53, %v19386_v30 }
 0x886   : > { %v6412_v29 = vmul.f32 %v18082_v54, %v19388_v63 }
 0x887   : > { %16584 = vmatmul.mubr.msk.f32.vlgmr.msra.gmra.mrb[84].mxu1 %vm5004_vm2, %v6413_v39 }
 0x888   : > { %16579 = vmatmul.mubr.msk.f32.vlgmr.msra.gmra.mrb[80].mxu0 %vm5004_vm2, %v6412_v29  ;;  %16593 = vmatprep.mubr.msk.f32.mxu1 %vm18252_vm1, %v18253_v35 }
 0x889   : > { %16588 = vmatprep.mubr.msk.f32.mxu0 %vm18252_vm1, %v18253_v35  ;;  %16587 = vmatpush3.msra.mxu0 %v19487_v28 }
 0x88a   : > { %16596 = vmatprep.subr.mxu0 %v18253_v35  ;;  %16592 = vmatpush3.msra.mxu1 %v19492_v40 }
 0x88b   : > { %16601 = vmatprep.subr.mxu1 %v18253_v35 }
 0x922   : > { %v6483_v57 = vpop.f32.mrb[66].mxu0 }
 0x923   : > { %v16510_v61 = vpop.f32.mrb[67].mxu0  ;;  %16589 = vmatmul.mubr.msk.f32.vlgmr.msra.gmra.mrb[82].mxu0 %vm5004_vm2, %v6483_v57 }
 0x924   : > { %16597 = vmatpush3.msra.mxu0 %v19497_v58  ;;  %16598 = vmatprep.mubr.msk.f32.mxu0 %vm18252_vm1, %v18253_v35 }
 0x925   : > { %16606 = vmatprep.subr.mxu0 %v18253_v35 }
 0x926   : > { %v6556_v30 = vpop.f32.mrb[70].mxu1 }
 0x927   : > { %v16515_v63 = vpop.f32.mrb[71].mxu1  ;;  %16594 = vmatmul.mubr.msk.f32.vlgmr.msra.gmra.mrb[86].mxu1 %vm5004_vm2, %v6556_v30 }
 0x928   : > { %16602 = vmatpush3.msra.mxu1 %v19504_v23  ;;  %16603 = vmatprep.mubr.msk.f32.mxu1 %vm18252_vm1, %v18253_v35 }
 0x929   : > { %16611 = vmatprep.subr.mxu1 %v18253_v35 }
 0x92a   : > { %v6702_v43 = vpop.f32.mrb[72].mxu1 }
 0x92b   : > { %v6629_v44 = vpop.f32.mrb[68].mxu0  ;;  %v16525_v7 = vpop.f32.mrb[73].mxu1  ;;  %16604 = vmatmul.mubr.msk.f32.vlgmr.msra.gmra.mrb[88].mxu1 %vm5004_vm2, %v6702_v43 }
 0x92c   : > { %v16520_v8 = vpop.f32.mrb[69].mxu0  ;;  %16599 = vmatmul.mubr.msk.f32.vlgmr.msra.gmra.mrb[84].mxu0 %vm5004_vm2, %v6629_v44  ;;  %16612 = vmatpush3.msra.mxu1 %v19492_v40 }
 0x92d   : > { %16607 = vmatpush3.msra.mxu0 %v19487_v28  ;;  %16608 = vmatprep.mubr.msk.f32.mxu0 %vm18252_vm1, %v18253_v35 }
 0x92e   : > { %16613 = vmatprep.mubr.msk.f32.mxu1 %vm18252_vm1, %v18253_v35  ;;  %16616 = vmatprep.subr.mxu0 %v18253_v35 }
 0x92f   : > { %16621 = vmatprep.subr.mxu1 %v18253_v35 }
 0x932   : > { %v6848_v3 = vpop.f32.mrb[74].mxu1 }
 0x933   : > { %v6775_v2 = vpop.f32.mrb[70].mxu0  ;;  %v16535_v51 = vpop.f32.mrb[75].mxu1  ;;  %16614 = vmatmul.mubr.msk.f32.vlgmr.msra.gmra.mrb[90].mxu1 %vm5004_vm2, %v6848_v3 }
 0x934   : > { %v16530_v52 = vpop.f32.mrb[71].mxu0  ;;  %16609 = vmatmul.mubr.msk.f32.vlgmr.msra.gmra.mrb[86].mxu0 %vm5004_vm2, %v6775_v2  ;;  %16622 = vmatpush3.msra.mxu1 %v19504_v23 }
 0x935   : > { %16617 = vmatpush3.msra.mxu0 %v19497_v58  ;;  %16618 = vmatprep.mubr.msk.f32.mxu0 %vm18252_vm1, %v18253_v35 }
 0x936   : > { %16623 = vmatprep.mubr.msk.f32.mxu1 %vm18252_vm1, %v18253_v35  ;;  %16626 = vmatprep.subr.mxu0 %v18253_v35 }
 0x937   : > { %16631 = vmatprep.subr.mxu1 %v18253_v35 }
 0x93a   : > { %v6994_v56 = vpop.f32.mrb[76].mxu1 }
 0x93b   : > { %v6921_v18 = vpop.f32.mrb[72].mxu0  ;;  %v16545_v60 = vpop.f32.mrb[77].mxu1  ;;  %16624 = vmatmul.mubr.msk.f32.vlgmr.msra.gmra.mrb[92].mxu1 %vm5004_vm2, %v6994_v56 }
 0x93c   : > { %v16540_v33 = vpop.f32.mrb[73].mxu0  ;;  %16619 = vmatmul.mubr.msk.f32.vlgmr.msra.gmra.mrb[88].mxu0 %vm5004_vm2, %v6921_v18  ;;  %16632 = vmatpush3.msra.mxu1 %v19492_v40 }
 0x93d   : > { %16627 = vmatpush3.msra.mxu0 %v19487_v28  ;;  %16628 = vmatprep.mubr.msk.f32.mxu0 %vm18252_vm1, %v18253_v35 }
 0x93e   : > { %16633 = vmatprep.mubr.msk.f32.mxu1 %vm18252_vm1, %v18253_v35  ;;  %16636 = vmatprep.subr.mxu0 %v18253_v35 }
 0x93f   : > { %16641 = vmatprep.subr.mxu1 %v18253_v35 }
 0x942   : > { %v7140_v14 = vpop.f32.mrb[78].mxu1 }
 0x943   : > { %v7067_v0 = vpop.f32.mrb[74].mxu0  ;;  %v16555_v55 = vpop.f32.mrb[79].mxu1  ;;  %16634 = vmatmul.mubr.msk.f32.vlgmr.msra.gmra.mrb[94].mxu1 %vm5004_vm2, %v7140_v14 }
 0x944   : > { %v16550_v22 = vpop.f32.mrb[75].mxu0  ;;  %16629 = vmatmul.mubr.msk.f32.vlgmr.msra.gmra.mrb[90].mxu0 %vm5004_vm2, %v7067_v0  ;;  %16642 = vmatpush3.msra.mxu1 %v19504_v23 }
 0x945   : > { %16637 = vmatpush3.msra.mxu0 %v19497_v58  ;;  %16638 = vmatprep.mubr.msk.f32.mxu0 %vm18252_vm1, %v18253_v35 }
 0x946   : > { %16643 = vmatprep.mubr.msk.f32.mxu1 %vm18252_vm1, %v18253_v35  ;;  %16646 = vmatprep.subr.mxu0 %v18253_v35 }
 0x947   : > { %16651 = vmatprep.subr.mxu1 %v18253_v35 }
 0x94a   : > { %v7286_v13 = vpop.f32.mrb[80].mxu1 }
 0x94b   : > { %v7213_v1 = vpop.f32.mrb[76].mxu0  ;;  %v16565_v37 = vpop.f32.mrb[81].mxu1  ;;  %16644 = vmatmul.mubr.msk.f32.vlgmr.msra.gmra.mrb[96].mxu1 %vm5004_vm2, %v7286_v13 }
 0x94c   : > { %v16560_v38 = vpop.f32.mrb[77].mxu0  ;;  %16639 = vmatmul.mubr.msk.f32.vlgmr.msra.gmra.mrb[92].mxu0 %vm5004_vm2, %v7213_v1  ;;  %16652 = vmatpush3.msra.mxu1 %v19492_v40 }
 0x94d   : > { %16647 = vmatpush3.msra.mxu0 %v19487_v28  ;;  %16648 = vmatprep.mubr.msk.f32.mxu0 %vm18252_vm1, %v18253_v35 }
 0x94e   : > { %16653 = vmatprep.mubr.msk.f32.mxu1 %vm18252_vm1, %v18253_v35  ;;  %16656 = vmatprep.subr.mxu0 %v18253_v35 }
 0x94f   : > { %16661 = vmatprep.subr.mxu1 %v18253_v35 }
 0x952   : > { %v7432_v6 = vpop.f32.mrb[82].mxu1 }
 0x953   : > { %v7359_v4 = vpop.f32.mrb[78].mxu0  ;;  %v16575_v32 = vpop.f32.mrb[83].mxu1  ;;  %16654 = vmatmul.mubr.msk.f32.vlgmr.msra.gmra.mrb[98].mxu1 %vm5004_vm2, %v7432_v6 }
 0x954   : > { %v16570_v24 = vpop.f32.mrb[79].mxu0  ;;  %16649 = vmatmul.mubr.msk.f32.vlgmr.msra.gmra.mrb[94].mxu0 %vm5004_vm2, %v7359_v4  ;;  %16662 = vmatpush3.msra.mxu1 %v19504_v23  ;;  %v1559_v32 = vld [vmem:[%s20425_s1] sm:$0x1] }
 0x955   : > { %16657 = vmatpush3.msra.mxu0 %v19497_v58  ;;  %16658 = vmatprep.mubr.msk.f32.mxu0 %vm18252_vm1, %v18253_v35 }
 0x956   : > { %16663 = vmatprep.mubr.msk.f32.mxu1 %vm18252_vm1, %v18253_v35  ;;  %17637 = vmatprep.subr.bf16.mxu0 %v18251_v31 }
 0x957   : > { %17643 = vmatprep.subr.bf16.mxu1 %v18251_v31 }
 0x95a   : > { %v7578_v34 = vpop.f32.mrb[84].mxu1 }
 0x95b   : > { %v7505_v36 = vpop.f32.mrb[80].mxu0  ;;  %v16585_v11 = vpop.f32.mrb[85].mxu1  ;;  %16664 = vmatmul.mubr.msk.f32.vlgmr.msra.gmra.mrb[100].mxu1 %vm5004_vm2, %v7578_v34 }
 0x95c   : > { %v16580_v10 = vpop.f32.mrb[81].mxu0  ;;  %16659 = vmatmul.mubr.msk.f32.vlgmr.msra.gmra.mrb[96].mxu0 %vm5004_vm2, %v7505_v36  ;;  %16709 = vmatprep.mubr.msk.f32.mxu1 %vm18252_vm1, %v18253_v35 }
 0x95d   : > { %16674 = vmatprep.mubr.msk.f32.mxu0 %vm18252_vm1, %v18253_v35 }
 0x9f6   : > { %v7651_v41 = vpop.f32.mrb[82].mxu0 }
 0x9f7   : > { %v16590_v42 = vpop.f32.mrb[83].mxu0  ;;  %v8751_v48 = vsel %vm8750_vm4, %v7651_v41, 0.0 }
 0x9fa   : > { %v7724_v47 = vpop.f32.mrb[86].mxu1 }
 0x9fb   : > { %v8752_v16 = vsel %vm8750_vm4, %v7724_v47, 0.0  ;;  %v16595_v15 = vpop.f32.mrb[87].mxu1 }
 0x9fc   : > { %v8753_v45 = vadd.f32 %v8752_v16, %v8751_v48 }
 0x9fe   : > { %v7870_v46 = vpop.f32.mrb[88].mxu1 }
 0x9ff   : > { %v7797_v59 = vpop.f32.mrb[84].mxu0  ;;  %v16605_v19 = vpop.f32.mrb[89].mxu1  ;;  %v8756_v9 = vsel %vm8750_vm4, %v7870_v46, 0.0 }
 0xa00   : > { %v8754_v21 = vsel %vm8750_vm4, %v7797_v59, 0.0  ;;  %v16600_v20 = vpop.f32.mrb[85].mxu0 }
 0xa01   : > { %v8755_v27 = vadd.f32 %v8754_v21, %v8753_v45 }
 0xa03   : > { %v8757_v49 = vadd.f32 %v8756_v9, %v8755_v27 }
 0xa05   : > { %v8779_v45 = vadd.f32 %v8757_v49, %v1559_v32 }
 0xa06   : > { %v8016_v50 = vpop.f32.mrb[90].mxu1 }
 0xa07   : > { %v7943_v26 = vpop.f32.mrb[86].mxu0  ;;  %v8759_v25 = vsel %vm8750_vm4, %v8016_v50, 0.0  ;;  %v16615_v53 = vpop.f32.mrb[91].mxu1  ;;  %v8783_v20 = vadd.f32 %v8779_v45, %v18548_v62 }
 0xa08   : > { %v8758_v54 = vsel %vm8750_vm4, %v7943_v26, 0.0  ;;  %v16610_v39 = vpop.f32.mrb[87].mxu0 }
 0xa09   : > { %v8760_v29 = vadd.f32 %v8759_v25, %v8758_v54 }
 0xa0e   : > { %v8162_v28 = vpop.f32.mrb[92].mxu1 }
 0xa0f   : > { %v8089_v40 = vpop.f32.mrb[88].mxu0  ;;  %v16625_v58 = vpop.f32.mrb[93].mxu1  ;;  %v8763_v30 = vsel %vm8750_vm4, %v8162_v28, 0.0 }
 0xa10   : > { %v8761_v57 = vsel %vm8750_vm4, %v8089_v40, 0.0  ;;  %v16620_v61 = vpop.f32.mrb[89].mxu0 }
 0xa11   : > { %v8762_v23 = vadd.f32 %v8761_v57, %v8760_v29 }
 0xa13   : > { %v8764_v63 = vadd.f32 %v8763_v30, %v8762_v23 }
 0xa15   : > { %v8780_v24 = vadd.f32 %v8764_v63, %v1559_v32 }
 0xa16   : > { %v8308_v43 = vpop.f32.mrb[94].mxu1 }
 0xa17   : > { %v8235_v44 = vpop.f32.mrb[90].mxu0  ;;  %v8766_v7 = vsel %vm8750_vm4, %v8308_v43, 0.0  ;;  %v16635_v8 = vpop.f32.mrb[95].mxu1  ;;  %v8784_v47 = vadd.f32 %v8780_v24, %v18553_v5 }
 0xa18   : > { %v8765_v3 = vsel %vm8750_vm4, %v8235_v44, 0.0  ;;  %v16630_v2 = vpop.f32.mrb[91].mxu0 }
 0xa19   : > { %v8767_v51 = vadd.f32 %v8766_v7, %v8765_v3  ;;  %v8815_v59 = vrot.slane %v8784_v47, 7  ;;  %v8789_v3 = vld [vmem:[%s20426_s11] sm:$0xff]  ;;  %v8790_v2 = vld [vmem:[%s20426_s11 + $0x8] sm:$0xff] }
 0xa1b   : > { %v8817_v9 = vsel %vm8816_vm5, %v8815_v59, %v8783_v20 }
 0xa1e   : > { %v8454_v52 = vpop.f32.mrb[96].mxu1 }
 0xa1f   : > { %v8381_v56 = vpop.f32.mrb[92].mxu0  ;;  %v16645_v18 = vpop.f32.mrb[97].mxu1  ;;  %v8770_v0 = vsel %vm8750_vm4, %v8454_v52, 0.0  ;;  %v17638_v52 = vpack.c.bf16 %v8790_v2, %v8789_v3 }
 0xa20   : > { %v8768_v60 = vsel %vm8750_vm4, %v8381_v56, 0.0  ;;  %v16640_v33 = vpop.f32.mrb[93].mxu0  ;;  %v8792_v56 = vld [vmem:[%s20426_s11 + $0x18] sm:$0xff] }
 0xa21   : > { %v8769_v14 = vadd.f32 %v8768_v60, %v8767_v51  ;;  %v8791_v51 = vld [vmem:[%s20426_s11 + $0x10] sm:$0xff]  ;;  %17639 = vmatpush3.bf16.msra.mxu0 %v17638_v52  ;;  %v8794_v60 = vld [vmem:[%s20427_s23] sm:$0xff]  ;;  %v8795_v33 = vld [vmem:[%s20427_s23 + $0x8] sm:$0xff] }
 0xa22   : > { %v17641_v18 = vpack.c.bf16 %v8792_v56, %v8791_v51  ;;  %17640 = vmatprep.subr.bf16.mxu0 %v18251_v31 }
 0xa23   : > { %v8771_v55 = vadd.f32 %v8770_v0, %v8769_v14  ;;  %v8796_v14 = vld [vmem:[%s20427_s23 + $0x10] sm:$0xff]  ;;  %v17644_v0 = vpack.c.bf16 %v8795_v33, %v8794_v60 }
 0xa25   : > { %v8781_v34 = vadd.f32 %v8771_v55, %v1559_v32  ;;  %17642 = vmatpush3.bf16.msra.mxu0 %v17641_v18  ;;  %v8797_v55 = vld [vmem:[%s20427_s23 + $0x18] sm:$0xff]  ;;  %17645 = vmatpush3.bf16.msra.mxu1 %v17644_v0  ;;  %v14971_v18 = vld [vmem:[%s20431_s9] ss:$0 sm:$0xff] }
 0xa26   : > { %v8600_v22 = vpop.f32.mrb[98].mxu1  ;;  %17667 = vmatprep.subr.bf16.mxu0 %v18251_v31  ;;  %17646 = vmatprep.subr.bf16.mxu1 %v18251_v31 }
 0xa27   : > { %v8527_v13 = vpop.f32.mrb[94].mxu0  ;;  %v8773_v1 = vsel %vm8750_vm4, %v8600_v22, 0.0  ;;  %v16655_v37 = vpop.f32.mrb[99].mxu1  ;;  %v8785_v16 = vadd.f32 %v8781_v34, %v18558_v12  ;;  %v17647_v22 = vpack.c.bf16 %v8797_v55, %v8796_v14 }
 0xa28   : > { %v8772_v38 = vsel %vm8750_vm4, %v8527_v13, 0.0  ;;  %v16650_v6 = vpop.f32.mrb[95].mxu0  ;;  %v8798_v13 = vld [vmem:[%s20427_s23 + $0x20] sm:$0xff] }
 0xa29   : > { %v8774_v4 = vadd.f32 %v8773_v1, %v8772_v38  ;;  %v8818_v21 = vrot.slane %v8785_v16, 6  ;;  %v8799_v1 = vld [vmem:[%s20427_s23 + $0x28] sm:$0xff]  ;;  %17648 = vmatpush3.bf16.msra.mxu1 %v17647_v22 }
 0xa2a   : > { %v17650_v37 = vpack.c.bf16 %v8799_v1, %v8798_v13  ;;  %17649 = vmatprep.subr.bf16.mxu1 %v18251_v31 }
 0xa2b   : > { %v8820_v12 = vsel %vm8819_vm6, %v8818_v21, %v8817_v9 }
 0xa2d   : > { %17651 = vmatpush3.bf16.msra.mxu1 %v17650_v37 }
 0xa2e   : > { %v8746_v36 = vpop.f32.mrb[100].mxu1  ;;  %17652 = vmatprep.subr.bf16.mxu1 %v18251_v31 }
 0xa2f   : > { %v8673_v11 = vpop.f32.mrb[96].mxu0  ;;  %v16665_v10 = vpop.f32.mrb[101].mxu1  ;;  %v8777_v15 = vsel %vm8750_vm4, %v8746_v36, 0.0 }
 0xa30   : > { %v8775_v41 = vsel %vm8750_vm4, %v8673_v11, 0.0  ;;  %v16660_v42 = vpop.f32.mrb[97].mxu0  ;;  %v14967_v10 = vld [vmem:[%s20428_s28] ss:$0 sm:$0xff] }
 0xa31   : > { %v8776_v48 = vadd.f32 %v8775_v41, %v8774_v4 }
 0xa33   : > { %v8778_v46 = vadd.f32 %v8777_v15, %v8776_v48 }
 0xa35   : > { %v8782_v19 = vadd.f32 %v8778_v46, %v1559_v32  ;;  %v14968_v46 = vld [vmem:[%s20429_s3] ss:$0 sm:$0xff] }
 0xa37   : > { %v8786_v27 = vadd.f32 %v8782_v19, %v18563_v17 }
 0xa39   : > { %v8821_v5 = vrot.slane %v8786_v27, 5 }
 0xa3b   : > { %v19602_v50 = vsel %vm8822_vm7, %v8821_v5, %v8820_v12 }
 0xa3c   : > { %v8826_v49 = vsel %vm8825_vm8, %v19602_v50, 0.0 }
 0xa3d   : > { %8827 = vadd.xlane.f32.xlu0 %v8826_v49 }
 0xaca   : > { %v8828_v26 = vpop.xlane.xlu0 %8827 }
 0xacb   : > { %v8829_v25 = vmul.f32 0.03125, %v8828_v26 }
 0xacd   : > { %v8831_v62 = vrot.slane %v8829_v25, 1  ;;  %v8832_v53 = vrot.slane %v8829_v25, 2  ;;  %v8833_v17 = vrot.slane %v8829_v25, 3  ;;  %v8838_v54 = vsub.f32 %v8783_v20, %v8829_v25  ;;  %v8800_v25 = vld [vmem:[%s20427_s23 + $0x30] sm:$0xff] }
 0xacf   : > { %v8839_v39 = vsub.f32 %v8784_v47, %v8831_v62  ;;  %v8840_v29 = vsub.f32 %v8785_v16, %v8832_v53  ;;  %v8841_v28 = vsub.f32 %v8786_v27, %v8833_v17  ;;  %v8842_v61 = vmul.f32 %v8838_v54, %v8838_v54  ;;  %v8801_v62 = vld [vmem:[%s20427_s23 + $0x38] sm:$0xff]  ;;  %v8802_v17 = vld [vmem:[%s20427_s23 + $0x40] sm:$0xff] }
 0xad0   : > { %v17653_v53 = vpack.c.bf16 %v8801_v62, %v8800_v25  ;;  %v9074_v62 = vld [vmem:[%s20432_s13 + $0x38] sm:$0xff] }
 0xad1   : > { %v8843_v40 = vmul.f32 %v8839_v39, %v8839_v39  ;;  %v8844_v58 = vmul.f32 %v8840_v29, %v8840_v29  ;;  %v8845_v57 = vmul.f32 %v8841_v28, %v8841_v28 }
 0xad2   : > { %17654 = vmatpush3.bf16.msra.mxu1 %v17653_v53  ;;  %v9093_v53 = vld [vmem:[%s20433_s17 + $0x50] sm:$0xff] }
 0xad3   : > { %v8850_v23 = vrot.slane %v8843_v40, 7  ;;  %v8852_v30 = vrot.slane %v8844_v58, 6  ;;  %v8854_v43 = vrot.slane %v8845_v57, 5  ;;  %17655 = vmatprep.subr.bf16.mxu1 %v18251_v31  ;;  %v8806_v58 = vld [vmem:[%s20427_s23 + $0x60] sm:$0xff]  ;;  %v8807_v57 = vld [vmem:[%s20427_s23 + $0x68] sm:$0xff] }
 0xad5   : > { %v8851_v63 = vsel %vm8816_vm5, %v8850_v23, %v8842_v61  ;;  %v17662_v61 = vpack.c.bf16 %v8807_v57, %v8806_v58  ;;  %v8808_v23 = vld [vmem:[%s20427_s23 + $0x70] sm:$0xff]  ;;  %v9100_v58 = vld [vmem:[%s20436_s29 + $0x8] sm:$0xff] }
 0xad6   : > { %v8853_v44 = vsel %vm8819_vm6, %v8852_v30, %v8851_v63  ;;  %v8809_v30 = vld [vmem:[%s20427_s23 + $0x78] sm:$0xff] }
 0xad7   : > { %v8855_v7 = vsel %vm8822_vm7, %v8854_v43, %v8853_v44  ;;  %v17665_v63 = vpack.c.bf16 %v8809_v30, %v8808_v23  ;;  %v14969_v43 = vld [vmem:[%s20430_s5] ss:$0 sm:$0xff]  ;;  %v9077_v23 = vld [vmem:[%s20432_s13 + $0x50] sm:$0xff]  ;;  %v9078_v30 = vld [vmem:[%s20432_s13 + $0x58] sm:$0xff] }
 0xad8   : > { %v8857_v8 = vsel %vm8825_vm8, %v8855_v7, 0.0 }
 0xad9   : > { %8858 = vadd.xlane.f32.xlu1 %v8857_v8 }
 0xb66   : > { %v8859_v38 = vpop.xlane.xlu1 %8858 }
 0xb67   : > { %v8860_v6 = vmul.f32 0.03125, %v8859_v38 }
 0xb69   : > { %v8861_v4 = vadd.f32 1e-05, %v8860_v6  ;;  %v9067_v6 = vld [vmem:[%s20432_s13] sm:$0xff] }
 0xb6b   : > { %18083 = vrsqrt.f32 %v8861_v4  ;;  %v9068_v4 = vld [vmem:[%s20432_s13 + $0x8] sm:$0xff] }
 0xb75   : > { %v18084_v32 = vpop.eup %18083 }
 0xb76   : > { %v8864_v24 = vrot.slane %v18084_v32, 1  ;;  %v8865_v34 = vrot.slane %v18084_v32, 2  ;;  %v8866_v36 = vrot.slane %v18084_v32, 3  ;;  %v8871_v11 = vmul.f32 %v18084_v32, %v8838_v54  ;;  %v8803_v54 = vld [vmem:[%s20427_s23 + $0x48] sm:$0xff] }
 0xb77   : > { %v17668_v32 = vpack.c.bf16 %v9068_v4, %v9067_v6  ;;  %v9090_v6 = vld [vmem:[%s20433_s17 + $0x38] sm:$0xff] }
 0xb78   : > { %v8872_v41 = vmul.f32 %v8864_v24, %v8839_v39  ;;  %v8873_v42 = vmul.f32 %v8865_v34, %v8840_v29  ;;  %v8874_v47 = vmul.f32 %v8866_v36, %v8841_v28  ;;  %v8881_v48 = vmul.f32 %v14967_v10, %v8871_v11  ;;  %v8804_v29 = vld [vmem:[%s20427_s23 + $0x50] sm:$0xff]  ;;  %v8805_v28 = vld [vmem:[%s20427_s23 + $0x58] sm:$0xff]  ;;  %v9084_v24 = vld [vmem:[%s20433_s17 + $0x8] sm:$0xff] }
 0xb79   : > { %v17656_v39 = vpack.c.bf16 %v8803_v54, %v8802_v17  ;;  %v17659_v40 = vpack.c.bf16 %v8805_v28, %v8804_v29  ;;  %v9069_v36 = vld [vmem:[%s20432_s13 + $0x10] sm:$0xff]  ;;  %v9070_v11 = vld [vmem:[%s20432_s13 + $0x18] sm:$0xff]  ;;  %v9075_v29 = vld [vmem:[%s20432_s13 + $0x40] sm:$0xff] }
 0xb7a   : > { %v8882_v16 = vmul.f32 %v14967_v10, %v8872_v41  ;;  %v8883_v15 = vmul.f32 %v14967_v10, %v8873_v42  ;;  %v8884_v45 = vmul.f32 %v14967_v10, %v8874_v47  ;;  %v8891_v20 = vadd.f32 %v14968_v46, %v8881_v48  ;;  %v9085_v10 = vld [vmem:[%s20433_s17 + $0x10] sm:$0xff]  ;;  %v9086_v42 = vld [vmem:[%s20433_s17 + $0x18] sm:$0xff]  ;;  %v9076_v28 = vld [vmem:[%s20432_s13 + $0x48] sm:$0xff] }
 0xb7b   : > { %17657 = vmatpush3.bf16.msra.mxu1 %v17656_v39  ;;  %v17671_v41 = vpack.c.bf16 %v9070_v11, %v9069_v36  ;;  %v17695_v47 = vpack.c.bf16 %v9086_v42, %v9085_v10  ;;  %v9094_v17 = vld [vmem:[%s20433_s17 + $0x58] sm:$0xff]  ;;  %v17680_v57 = vpack.c.bf16 %v9076_v28, %v9075_v29  ;;  %v9103_v10 = vld [vmem:[%s20436_s29 + $0x20] sm:$0xff] }
 0xb7c   : > { %v8892_v59 = vadd.f32 %v14968_v46, %v8882_v16  ;;  %v8893_v19 = vadd.f32 %v14968_v46, %v8883_v15  ;;  %v8894_v21 = vadd.f32 %v14968_v46, %v8884_v45  ;;  %17658 = vmatprep.subr.bf16.mxu1 %v18251_v31  ;;  %v14972_v46 = vld [vmem:[%s20434_s21] ss:$0 sm:$0xff]  ;;  %v17707_v39 = vpack.c.bf16 %v9094_v17, %v9093_v53  ;;  %v9098_v36 = vld [vmem:[%s20433_s17 + $0x78] sm:$0xff] }
 0xb7e   : > { %v8905_v27 = vrot.slane %v8892_v59, 7  ;;  %v8907_v9 = vrot.slane %v8893_v19, 6  ;;  %v8909_v12 = vrot.slane %v8894_v21, 5  ;;  %v9071_v59 = vld [vmem:[%s20432_s13 + $0x20] sm:$0xff]  ;;  %v9072_v21 = vld [vmem:[%s20432_s13 + $0x28] sm:$0xff] }
 0xb7f   : > { %17660 = vmatpush3.bf16.msra.mxu1 %v17659_v40  ;;  %v9099_v40 = vld [vmem:[%s20436_s29] sm:$0xff] }
 0xb80   : > { %v8906_v5 = vsel %vm8816_vm5, %v8905_v27, %v8891_v20  ;;  %17661 = vmatprep.subr.bf16.mxu1 %v18251_v31  ;;  %v9091_v20 = vld [vmem:[%s20433_s17 + $0x40] sm:$0xff]  ;;  %v9092_v27 = vld [vmem:[%s20433_s17 + $0x48] sm:$0xff] }
 0xb81   : > { %v8908_v49 = vsel %vm8819_vm6, %v8907_v9, %v8906_v5  ;;  %v14973_v9 = vld [vmem:[%s20435_s25] ss:$0 sm:$0xff] }
 0xb82   : > { %v8910_v26 = vsel %vm8822_vm7, %v8909_v12, %v8908_v49  ;;  %v17674_v12 = vpack.c.bf16 %v9072_v21, %v9071_v59  ;;  %v17704_v49 = vpack.c.bf16 %v9092_v27, %v9091_v20  ;;  %v9113_v59 = vld [vmem:[%s20436_s29 + $0x70] sm:$0xff] }
 0xb83   : > { %16675 = vmatmul.mubr.msk.f32.vlgmr.msra.gmra.mrb[98].mxu0 %vm1050_vm0, %v8910_v26  ;;  %17663 = vmatpush3.bf16.msra.mxu1 %v17662_v61  ;;  %v9073_v26 = vld [vmem:[%s20432_s13 + $0x30] sm:$0xff]  ;;  %v17716_v61 = vpack.c.bf16 %v9100_v58, %v9099_v40 }
 0xb84   : > { %16720 = vmatprep.mubr.msk.f32.mxu0 %vm18252_vm1, %v18253_v35  ;;  %17664 = vmatprep.subr.bf16.mxu1 %v18251_v31  ;;  %v17677_v54 = vpack.c.bf16 %v9074_v62, %v9073_v26 }
 0xb85   : > { %17669 = vmatpush3.bf16.msra.mxu0 %v17668_v32  ;;  %v9096_v32 = vld [vmem:[%s20433_s17 + $0x68] sm:$0xff] }
 0xb86   : > { %17670 = vmatprep.subr.bf16.mxu0 %v18251_v31 }
 0xb87   : > { %17666 = vmatpush3.bf16.msra.mxu1 %v17665_v63  ;;  %v9101_v63 = vld [vmem:[%s20436_s29 + $0x10] sm:$0xff] }
 0xb88   : > { %17691 = vmatprep.subr.bf16.mxu1 %v18251_v31 }
 0xb89   : > { %17672 = vmatpush3.bf16.msra.mxu0 %v17671_v41  ;;  %v9104_v41 = vld [vmem:[%s20436_s29 + $0x28] sm:$0xff] }
 0xb8a   : > { %17673 = vmatprep.subr.bf16.mxu0 %v18251_v31  ;;  %v17722_v42 = vpack.c.bf16 %v9104_v41, %v9103_v10 }
 0xc56   : > { %v8979_v44 = vpop.f32.mrb[98].mxu0 }
 0xc57   : > { %v8980_v7 = vadd.f32 %v14969_v43, %v8979_v44  ;;  %v16676_v8 = vpop.f32.mrb[99].mxu0  ;;  %v9102_v43 = vld [vmem:[%s20436_s29 + $0x18] sm:$0xff]  ;;  %v17683_v44 = vpack.c.bf16 %v9078_v30, %v9077_v23 }
 0xc58   : > { %v9079_v8 = vld [vmem:[%s20432_s13 + $0x60] sm:$0xff] }
 0xc59   : > { %v8984_v3 = vmul.f32 0.70710677, %v8980_v7  ;;  %v8983_v51 = vmul.f32 0.5, %v8980_v7  ;;  %v17719_v7 = vpack.c.bf16 %v9102_v43, %v9101_v63 }
 0xc5b   : > { %18085 = verf.f32 %v8984_v3  ;;  %v9080_v3 = vld [vmem:[%s20432_s13 + $0x68] sm:$0xff] }
 0xc65   : > { %v18086_v2 = vpop.eup %18085 }
 0xc66   : > { %v8986_v52 = vadd.f32 1.0, %v18086_v2  ;;  %v9107_v2 = vld [vmem:[%s20436_s29 + $0x40] sm:$0xff] }
 0xc68   : > { %v8987_v56 = vmul.f32 %v8986_v52, %v8983_v51  ;;  %v9108_v51 = vld [vmem:[%s20436_s29 + $0x48] sm:$0xff]  ;;  %v17686_v52 = vpack.c.bf16 %v9080_v3, %v9079_v8 }
 0xc6a   : > { %16710 = vmatmul.mubr.f32.vlgmr.msra.gmra.mrb[102].mxu1 %v8987_v56  ;;  %v17728_v56 = vpack.c.bf16 %v9108_v51, %v9107_v2 }
 0xc6b   : > { %16764 = vmatprep.mubr.msk.f32.mxu1 %vm18252_vm1, %v18253_v35 }
 0xd3d   : > { %v9060_v60 = vpop.f32.mrb[102].mxu1 }
 0xd3e   : > { %v9061_v33 = vadd.f32 %v14971_v18, %v9060_v60  ;;  %v16711_v14 = vpop.f32.mrb[103].mxu1  ;;  %v9081_v18 = vld [vmem:[%s20432_s13 + $0x70] sm:$0xff]  ;;  %v9082_v60 = vld [vmem:[%s20432_s13 + $0x78] sm:$0xff] }
 0xd3f   : > { %v9110_v14 = vld [vmem:[%s20436_s29 + $0x58] sm:$0xff] }
 0xd40   : > { %v19653_v0 = vadd.f32 %v9061_v33, %v19602_v50  ;;  %v9083_v50 = vld [vmem:[%s20433_s17] sm:$0xff]  ;;  %v9109_v33 = vld [vmem:[%s20436_s29 + $0x50] sm:$0xff] }
 0xd41   : > { %v17692_v34 = vpack.c.bf16 %v9084_v24, %v9083_v50  ;;  %v9095_v50 = vld [vmem:[%s20433_s17 + $0x60] sm:$0xff] }
 0xd42   : > { %v9120_v55 = vsel %vm8825_vm8, %v19653_v0, 0.0  ;;  %v17710_v24 = vpack.c.bf16 %v9096_v32, %v9095_v50 }
 0xd43   : > { %9121 = vadd.xlane.f32.xlu0 %v9120_v55  ;;  %17693 = vmatpush3.bf16.msra.mxu1 %v17692_v34  ;;  %v17689_v55 = vpack.c.bf16 %v9082_v60, %v9081_v18  ;;  %v9097_v34 = vld [vmem:[%s20433_s17 + $0x70] sm:$0xff] }
 0xd44   : > { %17694 = vmatprep.subr.bf16.mxu1 %v18251_v31  ;;  %v17713_v11 = vpack.c.bf16 %v9098_v36, %v9097_v34 }
 0xd47   : > { %17696 = vmatpush3.bf16.msra.mxu1 %v17695_v47  ;;  %v9105_v47 = vld [vmem:[%s20436_s29 + $0x30] sm:$0xff] }
 0xd48   : > { %17703 = vmatprep.subr.bf16.mxu1 %v18251_v31 }
 0xdd0   : > { %v9122_v22 = vpop.xlane.xlu0 %9121 }
 0xdd1   : > { %v9123_v13 = vmul.f32 0.03125, %v9122_v22  ;;  %v17731_v22 = vpack.c.bf16 %v9110_v14, %v9109_v33 }
 0xdd3   : > { %v9124_v1 = vsub.f32 %v19653_v0, %v9123_v13  ;;  %v9087_v13 = vld [vmem:[%s20433_s17 + $0x20] sm:$0xff] }
 0xdd5   : > { %v9125_v37 = vmul.f32 %v9124_v1, %v9124_v1 }
 0xdd7   : > { %v9126_v38 = vsel %vm8825_vm8, %v9125_v37, 0.0 }
 0xdd8   : > { %9127 = vadd.xlane.f32.xlu1 %v9126_v38  ;;  %v9089_v38 = vld [vmem:[%s20433_s17 + $0x30] sm:$0xff] }
 0xdd9   : > { %v17701_v4 = vpack.c.bf16 %v9090_v6, %v9089_v38 }
 0xe65   : > { %v9128_v48 = vpop.xlane.xlu1 %9127 }
 0xe66   : > { %v9129_v16 = vmul.f32 0.03125, %v9128_v48  ;;  %v9106_v48 = vld [vmem:[%s20436_s29 + $0x38] sm:$0xff] }
 0xe68   : > { %v9130_v15 = vadd.f32 1e-05, %v9129_v16  ;;  %v17725_v16 = vpack.c.bf16 %v9106_v48, %v9105_v47 }
 0xe6a   : > { %18087 = vrsqrt.f32 %v9130_v15  ;;  %v9111_v15 = vld [vmem:[%s20436_s29 + $0x60] sm:$0xff] }
 0xe74   : > { %v18088_v45 = vpop.eup %18087 }
 0xe75   : > { %v9132_v19 = vmul.f32 %v18088_v45, %v9124_v1  ;;  %v9088_v1 = vld [vmem:[%s20433_s17 + $0x28] sm:$0xff] }
 0xe76   : > { %v17698_v37 = vpack.c.bf16 %v9088_v1, %v9087_v13  ;;  %v9112_v45 = vld [vmem:[%s20436_s29 + $0x68] sm:$0xff] }
 0xe77   : > { %v9139_v5 = vmul.f32 %v14972_v46, %v9132_v19  ;;  %v17734_v46 = vpack.c.bf16 %v9112_v45, %v9111_v15  ;;  %v9114_v19 = vld [vmem:[%s20436_s29 + $0x78] sm:$0xff] }
 0xe78   : > { %v17737_v21 = vpack.c.bf16 %v9114_v19, %v9113_v59 }
 0xe79   : > { %v19678_v25 = vadd.f32 %v14973_v9, %v9139_v5 }
 0xe7b   : > { %16721 = vmatmul.mubr.msk.f32.vlgmr.msra.gmra.mrb[100].mxu0 %vm1050_vm0, %v19678_v25  ;;  %16765 = vmatmul.mubr.msk.f32.vlgmr.msra.gmra.mrb[104].mxu1 %vm1050_vm0, %v19678_v25 }
 0xe7c   : > { %17675 = vmatpush3.bf16.msra.mxu0 %v17674_v12  ;;  %17705 = vmatpush3.bf16.msra.mxu1 %v17704_v49 }
 0xe7d   : > { %17676 = vmatprep.subr.bf16.mxu0 %v18251_v31  ;;  %17706 = vmatprep.subr.bf16.mxu1 %v18251_v31 }
 0xe7e   : > { %16731 = vmatprep.mubr.msk.f32.mxu0 %vm18252_vm1, %v18253_v35  ;;  %16786 = vmatprep.mubr.msk.f32.mxu1 %vm18252_vm1, %v18253_v35 }
 0xe80   : > { %17678 = vmatpush3.bf16.msra.mxu0 %v17677_v54  ;;  %17708 = vmatpush3.bf16.msra.mxu1 %v17707_v39 }
 0xe81   : > { %17679 = vmatprep.subr.bf16.mxu0 %v18251_v31  ;;  %17715 = vmatprep.subr.bf16.mxu1 %v18251_v31 }
 0xe83   : > { %16732 = vmatmul.mubr.msk.f32.vlgmr.msra.gmra.mrb[102].mxu0 %vm1050_vm0, %v19678_v25  ;;  %16787 = vmatmul.mubr.msk.f32.vlgmr.msra.gmra.mrb[106].mxu1 %vm1050_vm0, %v19678_v25 }
 0xe84   : > { %17681 = vmatpush3.bf16.msra.mxu0 %v17680_v57  ;;  %17717 = vmatpush3.bf16.msra.mxu1 %v17716_v61 }
 0xe85   : > { %17682 = vmatprep.subr.bf16.mxu0 %v18251_v31  ;;  %17718 = vmatprep.subr.bf16.mxu1 %v18251_v31 }
 0xe86   : > { %16742 = vmatprep.mubr.msk.f32.mxu0 %vm18252_vm1, %v18253_v35  ;;  %16808 = vmatprep.mubr.msk.f32.mxu1 %vm18252_vm1, %v18253_v35 }
 0xe88   : > { %17684 = vmatpush3.bf16.msra.mxu0 %v17683_v44  ;;  %17720 = vmatpush3.bf16.msra.mxu1 %v17719_v7 }
 0xe89   : > { %17685 = vmatprep.subr.bf16.mxu0 %v18251_v31  ;;  %17727 = vmatprep.subr.bf16.mxu1 %v18251_v31 }
 0xe8b   : > { %16743 = vmatmul.mubr.msk.f32.vlgmr.msra.gmra.mrb[104].mxu0 %vm1050_vm0, %v19678_v25  ;;  %16809 = vmatmul.mubr.msk.f32.vlgmr.msra.gmra.mrb[108].mxu1 %vm1050_vm0, %v19678_v25 }
 0xe8c   : > { %17687 = vmatpush3.bf16.msra.mxu0 %v17686_v52  ;;  %17729 = vmatpush3.bf16.msra.mxu1 %v17728_v56 }
 0xe8d   : > { %17688 = vmatprep.subr.bf16.mxu0 %v18251_v31  ;;  %17730 = vmatprep.subr.bf16.mxu1 %v18251_v31 }
 0xe8e   : > { %16753 = vmatprep.mubr.msk.f32.mxu0 %vm18252_vm1, %v18253_v35  ;;  %16830 = vmatprep.mubr.msk.f32.mxu1 %vm18252_vm1, %v18253_v35 }
 0xe90   : > { %17690 = vmatpush3.bf16.msra.mxu0 %v17689_v55  ;;  %17732 = vmatpush3.bf16.msra.mxu1 %v17731_v22 }
 0xe91   : > { %17697 = vmatprep.subr.bf16.mxu0 %v18251_v31  ;;  %16844 = vmatprep.subr.mxu1 %v18253_v35 }
 0xe93   : > { %16754 = vmatmul.mubr.msk.f32.vlgmr.msra.gmra.mrb[106].mxu0 %vm1050_vm0, %v19678_v25  ;;  %16831 = vmatmul.mubr.msk.f32.vlgmr.msra.gmra.mrb[110].mxu1 %vm1050_vm0, %v19678_v25 }
 0xe94   : > { %17699 = vmatpush3.bf16.msra.mxu0 %v17698_v37  ;;  %16775 = vmatprep.mubr.msk.f32.mxu0 %vm18252_vm1, %v18253_v35 }
 0xe95   : > { %17700 = vmatprep.subr.bf16.mxu0 %v18251_v31  ;;  %16846 = vmatprep.mubr.msk.f32.mxu1 %vm18252_vm1, %v18253_v35 }
 0xe98   : > { %17702 = vmatpush3.bf16.msra.mxu0 %v17701_v4 }
 0xe99   : > { %17709 = vmatprep.subr.bf16.mxu0 %v18251_v31 }
 0xe9b   : > { %16776 = vmatmul.mubr.msk.f32.vlgmr.msra.gmra.mrb[108].mxu0 %vm1050_vm0, %v19678_v25 }
 0xe9c   : > { %17711 = vmatpush3.bf16.msra.mxu0 %v17710_v24  ;;  %16797 = vmatprep.mubr.msk.f32.mxu0 %vm18252_vm1, %v18253_v35 }
 0xe9d   : > { %17712 = vmatprep.subr.bf16.mxu0 %v18251_v31 }
 0xea0   : > { %17714 = vmatpush3.bf16.msra.mxu0 %v17713_v11 }
 0xea1   : > { %17721 = vmatprep.subr.bf16.mxu0 %v18251_v31 }
 0xea3   : > { %16798 = vmatmul.mubr.msk.f32.vlgmr.msra.gmra.mrb[110].mxu0 %vm1050_vm0, %v19678_v25 }
 0xea4   : > { %17723 = vmatpush3.bf16.msra.mxu0 %v17722_v42  ;;  %16819 = vmatprep.mubr.msk.f32.mxu0 %vm18252_vm1, %v18253_v35 }
 0xea5   : > { %17724 = vmatprep.subr.bf16.mxu0 %v18251_v31 }
 0xea8   : > { %17726 = vmatpush3.bf16.msra.mxu0 %v17725_v16 }
 0xea9   : > { %17733 = vmatprep.subr.bf16.mxu0 %v18251_v31 }
 0xeab   : > { %16820 = vmatmul.mubr.msk.f32.vlgmr.msra.gmra.mrb[112].mxu0 %vm1050_vm0, %v19678_v25 }
 0xeac   : > { %17735 = vmatpush3.bf16.msra.mxu0 %v17734_v46  ;;  %16841 = vmatprep.mubr.msk.f32.mxu0 %vm18252_vm1, %v18253_v35 }
 0xead   : > { %17736 = vmatprep.subr.bf16.mxu0 %v18251_v31 }
 0xeb0   : > { %17738 = vmatpush3.bf16.msra.mxu0 %v17737_v21 }
 0xeb1   : > { %16854 = vmatprep.subr.mxu0 %v18253_v35 }
 0xeb3   : > { %16842 = vmatmul.mubr.msk.f32.vlgmr.msra.gmra.mrb[114].mxu0 %vm1050_vm0, %v19678_v25 }
 0xeb4   : > { %16856 = vmatprep.mubr.msk.f32.mxu0 %vm18252_vm1, %v18253_v35 }
 0xf4e   : > { %v9216_v20 = vpop.f32.mrb[100].mxu0  ;;  %v9496_v27 = vpop.f32.mrb[104].mxu1 }
 0xf4f   : > { %v16722_v9 = vpop.f32.mrb[101].mxu0  ;;  %v16766_v5 = vpop.f32.mrb[105].mxu1  ;;  %16845 = vmatpush3.xpose.msk.msra.mxu1 %vm5004_vm2, %v9496_v27 }
 0xf50   : > { %16849 = vmatprep.subr.mxu1 %v18253_v35 }
 0xf52   : > { %16847 = vmatmul.mubr.msk.f32.vlgmr.msra.gmra.mrb[112].mxu1 %vm5004_vm2, %v9216_v20 }
 0xf53   : > { %16851 = vmatprep.mubr.msk.f32.mxu1 %vm18252_vm1, %v18253_v35 }
 0xf56   : > { %v9286_v12 = vpop.f32.mrb[102].mxu0  ;;  %v9636_v49 = vpop.f32.mrb[106].mxu1 }
 0xf57   : > { %v16733_v26 = vpop.f32.mrb[103].mxu0  ;;  %v16788_v25 = vpop.f32.mrb[107].mxu1  ;;  %16855 = vmatpush3.xpose.msk.msra.mxu0 %vm5004_vm2, %v9636_v49 }
 0xf58   : > { %16864 = vmatprep.subr.mxu0 %v18253_v35 }
 0xf5e   : > { %v9356_v62 = vpop.f32.mrb[104].mxu0  ;;  %v9776_v53 = vpop.f32.mrb[108].mxu1 }
 0xf5f   : > { %v16744_v17 = vpop.f32.mrb[105].mxu0  ;;  %v16810_v54 = vpop.f32.mrb[109].mxu1  ;;  %16857 = vmatmul.mubr.msk.f32.vlgmr.msra.gmra.mrb[116].mxu0 %vm5004_vm2, %v9356_v62 }
 0xf60   : > { %16865 = vmatpush3.msk.msra.mxu0 %vm10347_vm9, %v9776_v53  ;;  %16866 = vmatprep.mubr.msk.f32.mxu0 %vm18252_vm1, %v18253_v35  ;;  %v9115_v54 = vld [vmem:[%s20437_s2] sm:$0xff] }
 0xf61   : > { %16874 = vmatprep.subr.mxu0 %v18253_v35 }
 0xf66   : > { %v9426_v39 = vpop.f32.mrb[106].mxu0  ;;  %v19795_v29 = vpop.f32.mrb[110].mxu1 }
 0xf67   : > { %v16755_v28 = vpop.f32.mrb[107].mxu0  ;;  %v16832_v40 = vpop.f32.mrb[111].mxu1 }
 0xf6e   : > { %v9566_v58 = vpop.f32.mrb[108].mxu0 }
 0xf6f   : > { %v16777_v57 = vpop.f32.mrb[109].mxu0  ;;  %16850 = vmatpush3.xpose.msk.msra.mxu1 %vm5004_vm2, %v9566_v58 }
 0xf70   : > { %16859 = vmatprep.subr.mxu1 %v18253_v35 }
 0xf72   : > { %16852 = vmatmul.mubr.msk.f32.vlgmr.msra.gmra.mrb[114].mxu1 %vm5004_vm2, %v9286_v12 }
 0xf73   : > { %16861 = vmatprep.mubr.msk.f32.mxu1 %vm18252_vm1, %v18253_v35 }
 0xf76   : > { %v9706_v61 = vpop.f32.mrb[110].mxu0 }
 0xf77   : > { %v16799_v23 = vpop.f32.mrb[111].mxu0  ;;  %16860 = vmatpush3.xpose.msk.msra.mxu1 %vm5004_vm2, %v9706_v61  ;;  %v9118_v61 = vld [vmem:[%s20437_s2 + $0x18] sm:$0xff] }
 0xf78   : > { %16869 = vmatprep.subr.mxu1 %v18253_v35 }
 0xf7a   : > { %16862 = vmatmul.mubr.msk.f32.vlgmr.msra.gmra.mrb[116].mxu1 %vm5004_vm2, %v9426_v39  ;;  %v9116_v39 = vld [vmem:[%s20437_s2 + $0x8] sm:$0xff] }
 0xf7b   : > { %16871 = vmatprep.mubr.msk.f32.mxu1 %vm18252_vm1, %v18253_v35 }
 0xf7e   : > { %v9846_v30 = vpop.f32.mrb[112].mxu0 }
 0xf7f   : > { %v16821_v63 = vpop.f32.mrb[113].mxu0  ;;  %16870 = vmatpush3.msk.msra.mxu1 %vm10347_vm9, %v9846_v30 }
 0xf80   : > { %16879 = vmatprep.subr.mxu1 %v18253_v35 }
 0xf86   : > { %v19809_v43 = vpop.f32.mrb[114].mxu0 }
 0xf87   : > { %v16843_v44 = vpop.f32.mrb[115].mxu0 }
0x1025   : > { %v10062_v7 = vpop.f32.mrb[112].mxu1 }
0x1026   : > { %v10294_v8 = vmul.f32 0.35355338, %v10062_v7  ;;  %v16848_v3 = vpop.f32.mrb[113].mxu1 }
0x1028   : > { %v10299_v2 = vsel %vm10298_vm10, %v10294_v8, -inf }
0x1029   : > { %10300 = vmax.xlane.f32.xlu0 %v10299_v2 }
0x1032   : > { %v10214_v51 = vpop.f32.mrb[116].mxu0 }
0x1033   : > { %v10296_v52 = vmul.f32 0.35355338, %v10214_v51  ;;  %v16858_v56 = vpop.f32.mrb[117].mxu0 }
0x1035   : > { %v10305_v18 = vsel %vm10298_vm10, %v10296_v52, -inf }
0x1036   : > { %10306 = vmax.xlane.f32.xlu0 %v10305_v18 }
0x1045   : > { %v10138_v60 = vpop.f32.mrb[114].mxu1 }
0x1046   : > { %v10295_v33 = vmul.f32 0.35355338, %v10138_v60  ;;  %v16853_v14 = vpop.f32.mrb[115].mxu1 }
0x1048   : > { %v10302_v55 = vsel %vm10298_vm10, %v10295_v33, -inf }
0x1049   : > { %10303 = vmax.xlane.f32.xlu1 %v10302_v55  ;;  %v15006_v55 = vld [vmem:[%s20438_s18] ss:$0 sm:$0xff]  ;;  %s20440_s18 = sld [smem:[#allocation29_spill]] }
0x104d   : > { %v10290_v22 = vpop.f32.mrb[116].mxu1 }
0x104e   : > { %v10297_v13 = vmul.f32 0.35355338, %v10290_v22  ;;  %v16863_v1 = vpop.f32.mrb[117].mxu1 }
0x1050   : > { %v10308_v37 = vsel %vm10298_vm10, %v10297_v13, -inf }
0x1051   : > { %10309 = vmax.xlane.f32.xlu1 %v10308_v37 }
0x10b6   : > { %v10301_v38 = vpop.xlane.xlu0 %10300 }
0x10b7   : > { %v10311_v6 = vsub.f32 %v10294_v8, %v10301_v38 }
0x10b9   : > { %v10315_v4 = vmul.f32 1.442695, %v10311_v6 }
0x10bb   : > { %18089 = vpow2.f32 %v10315_v4 }
0x10c3   : > { %v10307_v50 = vpop.xlane.xlu0 %10306 }
0x10c4   : > { %v10313_v32 = vsub.f32 %v10296_v52, %v10307_v50 }
0x10c5   : > { %v18090_v24 = vpop.eup %18089 }
0x10c6   : > { %v10319_v34 = vmul.f32 1.442695, %v10313_v32  ;;  %v10323_v36 = vsel %vm10298_vm10, %v18090_v24, 0.0 }
0x10c7   : > { %10324 = vadd.xlane.f32.xlu0 %v10323_v36  ;;  %v15025_v36 = vld [vmem:[%s18318_s24 + $0x80] sm:$0xff] }
0x10c8   : > { %18091 = vpow2.f32 %v10319_v34 }
0x10d2   : > { %v18092_v11 = vpop.eup %18091 }
0x10d3   : > { %v10329_v10 = vsel %vm10298_vm10, %v18092_v11, 0.0 }
0x10d4   : > { %10330 = vadd.xlane.f32.xlu0 %v10329_v10 }
0x10d6   : > { %v10304_v41 = vpop.xlane.xlu1 %10303 }
0x10d7   : > { %v10312_v42 = vsub.f32 %v10295_v33, %v10304_v41  ;;  %v15030_v41 = vld [vmem:[%s18318_s24 + $0xa8] sm:$0xff] }
0x10d9   : > { %v10317_v47 = vmul.f32 1.442695, %v10312_v42 }
0x10db   : > { %18093 = vpow2.f32 %v10317_v47  ;;  %v15027_v47 = vld [vmem:[%s18318_s24 + $0x90] sm:$0xff] }
0x10de   : > { %v10310_v48 = vpop.xlane.xlu1 %10309 }
0x10df   : > { %v10314_v16 = vsub.f32 %v10297_v13, %v10310_v48  ;;  %v15028_v48 = vld [vmem:[%s18318_s24 + $0x98] sm:$0xff] }
0x10e1   : > { %v10321_v15 = vmul.f32 1.442695, %v10314_v16  ;;  %v15031_v16 = vld [vmem:[%s18318_s24 + $0xb0] sm:$0xff] }
0x10e3   : > { %18095 = vpow2.f32 %v10321_v15  ;;  %v17743_v15 = vpack.c.bf16 %v15028_v48, %v15027_v47 }
0x10e5   : > { %v18094_v45 = vpop.eup %18093 }
0x10e6   : > { %v10326_v46 = vsel %vm10298_vm10, %v18094_v45, 0.0 }
0x10e7   : > { %10327 = vadd.xlane.f32.xlu1 %v10326_v46 }
0x10ed   : > { %v18096_v59 = vpop.eup %18095 }
0x10ee   : > { %v10332_v19 = vsel %vm10298_vm10, %v18096_v59, 0.0 }
0x10ef   : > { %10333 = vadd.xlane.f32.xlu1 %v10332_v19 }
0x1154   : > { %v10325_v21 = vpop.xlane.xlu0 %10324 }
0x1155   : > { %18097 = vrcp.f32 %v10325_v21 }
0x115f   : > { %v18098_v20 = vpop.eup %18097 }
0x1160   : > { %v10339_v27 = vmul.f32 %v18098_v20, %v18090_v24 }
0x1161   : > { %v10331_v9 = vpop.xlane.xlu0 %10330 }
0x1162   : > { %18099 = vrcp.f32 %v10331_v9  ;;  %16867 = vmatmul.mubr.msk.f32.vlgmr.msra.gmra.mrb[118].mxu0 %vm10343_vm11, %v10339_v27  ;;  %v15062_v27 = vld [vmem:[%s20410_s8 + $0x1] ss:$0 sm:$0xff] }
0x1163   : > { %16875 = vmatpush3.msk.msra.mxu0 %vm10347_vm9, %v19795_v29  ;;  %16876 = vmatprep.mubr.msk.f32.mxu0 %vm18252_vm1, %v18253_v35  ;;  %v9117_v29 = vld [vmem:[%s20437_s2 + $0x10] sm:$0xff]  ;;  %v15033_v9 = vld [vmem:[%s18318_s24 + $0xc0] sm:$0xff] }
0x1164   : > { %16884 = vmatprep.subr.mxu0 %v18253_v35 }
0x116c   : > { %v18100_v5 = vpop.eup %18099 }
0x116d   : > { %v10341_v12 = vmul.f32 %v18100_v5, %v18092_v11  ;;  %v15026_v11 = vld [vmem:[%s18318_s24 + $0x88] sm:$0xff] }
0x116e   : > { %v17740_v10 = vpack.c.bf16 %v15026_v11, %v15025_v36 }
0x116f   : > { %16877 = vmatmul.mubr.msk.f32.vlgmr.msra.gmra.mrb[120].mxu0 %vm10343_vm11, %v10341_v12  ;;  %v15034_v12 = vld [vmem:[%s18318_s24 + $0xc8] sm:$0xff] }
0x1170   : > { %16886 = vmatprep.mubr.msk.f32.mxu0 %vm18252_vm1, %v18253_v35  ;;  %16885 = vmatpush3.msra.mxu0 %v9115_v54  ;;  %v15035_v54 = vld [vmem:[%s18318_s24 + $0xd0] sm:$0xff] }
0x1171   : > { %16894 = vmatprep.subr.mxu0 %v18253_v35 }
0x1174   : > { %v10328_v49 = vpop.xlane.xlu1 %10327 }
0x1175   : > { %18101 = vrcp.f32 %v10328_v49  ;;  %v15037_v49 = vld [vmem:[%s18318_s24 + $0xe0] sm:$0xff] }
0x117c   : > { %v10334_v26 = vpop.xlane.xlu1 %10333 }
0x117d   : > { %18103 = vrcp.f32 %v10334_v26  ;;  %v15038_v26 = vld [vmem:[%s18318_s24 + $0xe8] sm:$0xff] }
0x117f   : > { %v18102_v25 = vpop.eup %18101 }
0x1180   : > { %v10340_v62 = vmul.f32 %v18102_v25, %v18094_v45  ;;  %v15032_v45 = vld [vmem:[%s18318_s24 + $0xb8] sm:$0xff]  ;;  %v15063_v25 = vld [vmem:[%s18308_s14 + $0x1] ss:$0 sm:$0xff] }
0x1181   : > { %v17749_v46 = vpack.c.bf16 %v15032_v45, %v15031_v16  ;;  %v15017_v16 = vld [vmem:[%s18313_s19 + $0xc0] sm:$0xff] }
0x1182   : > { %16872 = vmatmul.mubr.msk.f32.vlgmr.msra.gmra.mrb[118].mxu1 %vm10343_vm11, %v10340_v62  ;;  %v15021_v45 = vld [vmem:[%s18313_s19 + $0xe0] sm:$0xff] }
0x1183   : > { %16880 = vmatpush3.msk.msra.mxu1 %vm10347_vm9, %v19809_v43  ;;  %16881 = vmatprep.mubr.msk.f32.mxu1 %vm18252_vm1, %v18253_v35 }
0x1184   : > { %16889 = vmatprep.subr.mxu1 %v18253_v35 }
0x1187   : > { %v18104_v53 = vpop.eup %18103 }
0x1188   : > { %v10342_v17 = vmul.f32 %v18104_v53, %v18096_v59  ;;  %v17752_v53 = vpack.c.bf16 %v15034_v12, %v15033_v9  ;;  %v15024_v9 = vld [vmem:[%s18313_s19 + $0xf8] sm:$0xff] }
0x118a   : > { %16882 = vmatmul.mubr.msk.f32.vlgmr.msra.gmra.mrb[120].mxu1 %vm10343_vm11, %v10342_v17  ;;  %v17758_v17 = vpack.c.bf16 %v15038_v26, %v15037_v49 }
0x118b   : > { %16891 = vmatprep.mubr.msk.f32.mxu1 %vm18252_vm1, %v18253_v35  ;;  %16890 = vmatpush3.msra.mxu1 %v9116_v39 }
0x118c   : > { %16899 = vmatprep.subr.mxu1 %v18253_v35 }
0x1235   : > { %v10417_v28 = vpop.f32.mrb[118].mxu0 }
0x1236   : > { %v16868_v40 = vpop.f32.mrb[119].mxu0  ;;  %16887 = vmatmul.mubr.msk.f32.vlgmr.msra.gmra.mrb[122].mxu0 %vm5004_vm2, %v10417_v28  ;;  %v15039_v28 = vld [vmem:[%s18318_s24 + $0xf0] sm:$0xff] }
0x1237   : > { %16895 = vmatpush3.msra.mxu0 %v9117_v29  ;;  %16896 = vmatprep.mubr.msk.f32.mxu0 %vm18252_vm1, %v18253_v35  ;;  %v15036_v29 = vld [vmem:[%s18318_s24 + $0xd8] sm:$0xff] }
0x1238   : > { %17739 = vmatprep.subr.bf16.mxu0 %v18251_v31  ;;  %v15040_v40 = vld [vmem:[%s18318_s24 + $0xf8] sm:$0xff] }
0x1242   : > { %v10569_v58 = vpop.f32.mrb[120].mxu0 }
0x1243   : > { %v16878_v57 = vpop.f32.mrb[121].mxu0  ;;  %16897 = vmatmul.mubr.msk.f32.vlgmr.msra.gmra.mrb[124].mxu0 %vm5004_vm2, %v10569_v58  ;;  %v17755_v58 = vpack.c.bf16 %v15036_v29, %v15035_v54 }
0x1244   : > { %16912 = vmatprep.mubr.msk.f32.mxu0 %vm18252_vm1, %v18253_v35  ;;  %17741 = vmatpush3.bf16.msra.mxu0 %v17740_v10  ;;  %v17761_v57 = vpack.c.bf16 %v15040_v40, %v15039_v28  ;;  %v15012_v10 = vld [vmem:[%s18313_s19 + $0x98] sm:$0xff] }
0x1245   : > { %17742 = vmatprep.subr.bf16.mxu0 %v18251_v31 }
0x1248   : > { %17744 = vmatpush3.bf16.msra.mxu0 %v17743_v15  ;;  %v15018_v15 = vld [vmem:[%s18313_s19 + $0xc8] sm:$0xff] }
0x1249   : > { %17751 = vmatprep.subr.bf16.mxu0 %v18251_v31 }
0x1255   : > { %v10493_v23 = vpop.f32.mrb[118].mxu1 }
0x1256   : > { %v16873_v30 = vpop.f32.mrb[119].mxu1  ;;  %16892 = vmatmul.mubr.msk.f32.vlgmr.msra.gmra.mrb[122].mxu1 %vm5004_vm2, %v10493_v23  ;;  %v15042_v23 = vld [vmem:[%s18323_s30 + $0x88] sm:$0xff] }
0x1257   : > { %16900 = vmatpush3.msra.mxu1 %v9118_v61  ;;  %16901 = vmatprep.mubr.msk.f32.mxu1 %vm18252_vm1, %v18253_v35  ;;  %v15041_v61 = vld [vmem:[%s18323_s30 + $0x80] sm:$0xff] }
0x1258   : > { %17745 = vmatprep.subr.bf16.mxu1 %v18251_v31  ;;  %v15045_v30 = vld [vmem:[%s18323_s30 + $0xa0] sm:$0xff] }
0x125d   : > { %v10645_v63 = vpop.f32.mrb[120].mxu1 }
0x125e   : > { %v16883_v43 = vpop.f32.mrb[121].mxu1  ;;  %16902 = vmatmul.mubr.msk.f32.vlgmr.msra.gmra.mrb[124].mxu1 %vm5004_vm2, %v10645_v63  ;;  %v15046_v63 = vld [vmem:[%s18323_s30 + $0xa8] sm:$0xff] }
0x125f   : > { %16923 = vmatprep.mubr.msk.f32.mxu1 %vm18252_vm1, %v18253_v35  ;;  %v17764_v43 = vpack.c.bf16 %v15042_v23, %v15041_v61 }
0x1309   : > { %v10718_v44 = vpop.f32.mrb[122].mxu0 }
0x130a   : > { %v16888_v7 = vpop.f32.mrb[123].mxu0  ;;  %v10941_v51 = vsel %vm8825_vm8, %v10718_v44, 0.0  ;;  %v17770_v44 = vpack.c.bf16 %v15046_v63, %v15045_v30 }
0x130b   : > { %v15043_v7 = vld [vmem:[%s18323_s30 + $0x90] sm:$0xff] }
0x1316   : > { %v10864_v8 = vpop.f32.mrb[124].mxu0 }
0x1317   : > { %v16898_v3 = vpop.f32.mrb[125].mxu0  ;;  %v10944_v60 = vsel %vm8825_vm8, %v10864_v8, 0.0  ;;  %v15044_v8 = vld [vmem:[%s18323_s30 + $0x98] sm:$0xff] }
0x1318   : > { %v15047_v3 = vld [vmem:[%s18323_s30 + $0xb0] sm:$0xff] }
0x1329   : > { %v10791_v2 = vpop.f32.mrb[122].mxu1 }
0x132a   : > { %v10942_v52 = vsel %vm8825_vm8, %v10791_v2, 0.0  ;;  %v16893_v56 = vpop.f32.mrb[123].mxu1  ;;  %v15048_v2 = vld [vmem:[%s18323_s30 + $0xb8] sm:$0xff] }
0x132b   : > { %v10943_v18 = vadd.f32 %v10942_v52, %v10941_v51  ;;  %v17767_v51 = vpack.c.bf16 %v15044_v8, %v15043_v7  ;;  %v17773_v52 = vpack.c.bf16 %v15048_v2, %v15047_v3  ;;  %v15049_v56 = vld [vmem:[%s18323_s30 + $0xc0] sm:$0xff] }
0x132d   : > { %v10945_v33 = vadd.f32 %v10944_v60, %v10943_v18  ;;  %v15050_v18 = vld [vmem:[%s18323_s30 + $0xc8] sm:$0xff]  ;;  %v15053_v60 = vld [vmem:[%s18323_s30 + $0xe0] sm:$0xff] }
0x1331   : > { %v10937_v14 = vpop.f32.mrb[124].mxu1 }
0x1332   : > { %v10946_v22 = vsel %vm8825_vm8, %v10937_v14, 0.0  ;;  %v16903_v13 = vpop.f32.mrb[125].mxu1  ;;  %v17776_v14 = vpack.c.bf16 %v15050_v18, %v15049_v56 }
0x1333   : > { %v10947_v1 = vadd.f32 %v10946_v22, %v10945_v33  ;;  %v15054_v33 = vld [vmem:[%s18323_s30 + $0xe8] sm:$0xff]  ;;  %v15051_v22 = vld [vmem:[%s18323_s30 + $0xd0] sm:$0xff]  ;;  %v15052_v13 = vld [vmem:[%s18323_s30 + $0xd8] sm:$0xff] }
0x1335   : > { %v10954_v37 = vadd.f32 %v15006_v55, %v10947_v1  ;;  %v17782_v55 = vpack.c.bf16 %v15054_v33, %v15053_v60  ;;  %v15055_v1 = vld [vmem:[%s18323_s30 + $0xf0] sm:$0xff] }
0x1337   : > { %v19863_v38 = vadd.f32 %v10954_v37, %v19653_v0  ;;  %v15029_v0 = vld [vmem:[%s18318_s24 + $0xa0] sm:$0xff]  ;;  %v15056_v37 = vld [vmem:[%s18323_s30 + $0xf8] sm:$0xff] }
0x1338   : > { %v17746_v42 = vpack.c.bf16 %v15030_v41, %v15029_v0  ;;  %v15011_v0 = vld [vmem:[%s18313_s19 + $0x90] sm:$0xff] }
0x1339   : > { %v11018_v6 = vsel %vm8825_vm8, %v19863_v38, 0.0  ;;  %v15015_v41 = vld [vmem:[%s18313_s19 + $0xb0] sm:$0xff]  ;;  %v17791_v47 = vpack.c.bf16 %v15012_v10, %v15011_v0 }
0x133a   : > { %11019 = vadd.xlane.f32.xlu0 %v11018_v6  ;;  %17747 = vmatpush3.bf16.msra.mxu1 %v17746_v42  ;;  %v17779_v6 = vpack.c.bf16 %v15052_v13, %v15051_v22  ;;  %v15016_v42 = vld [vmem:[%s18313_s19 + $0xb8] sm:$0xff] }
0x133b   : > { %17748 = vmatprep.subr.bf16.mxu1 %v18251_v31  ;;  %v17797_v48 = vpack.c.bf16 %v15016_v42, %v15015_v41 }
0x133e   : > { %17750 = vmatpush3.bf16.msra.mxu1 %v17749_v46  ;;  %v15022_v46 = vld [vmem:[%s18313_s19 + $0xe8] sm:$0xff] }
0x133f   : > { %17757 = vmatprep.subr.bf16.mxu1 %v18251_v31 }
0x13c7   : > { %v11020_v4 = vpop.xlane.xlu0 %11019 }
0x13c8   : > { %v11021_v50 = vmul.f32 0.03125, %v11020_v4  ;;  %v17785_v4 = vpack.c.bf16 %v15056_v37, %v15055_v1 }
0x13ca   : > { %v11022_v32 = vsub.f32 %v19863_v38, %v11021_v50  ;;  %v15009_v50 = vld [vmem:[%s18313_s19 + $0x80] sm:$0xff] }
0x13cc   : > { %v11023_v24 = vmul.f32 %v11022_v32, %v11022_v32 }
0x13ce   : > { %v11024_v34 = vsel %vm8825_vm8, %v11023_v24, 0.0  ;;  %v15013_v24 = vld [vmem:[%s18313_s19 + $0xa0] sm:$0xff] }
0x13cf   : > { %11025 = vadd.xlane.f32.xlu1 %v11024_v34  ;;  %v15014_v34 = vld [vmem:[%s18313_s19 + $0xa8] sm:$0xff] }
0x13d0   : > { %v17794_v11 = vpack.c.bf16 %v15014_v34, %v15013_v24 }
0x145c   : > { %v11026_v59 = vpop.xlane.xlu1 %11025 }
0x145d   : > { %v11027_v19 = vmul.f32 0.03125, %v11026_v59  ;;  %v17800_v59 = vpack.c.bf16 %v15018_v15, %v15017_v16 }
0x145f   : > { %v11028_v21 = vadd.f32 1e-05, %v11027_v19  ;;  %v17806_v19 = vpack.c.bf16 %v15022_v46, %v15021_v45 }
0x1461   : > { %18105 = vrsqrt.f32 %v11028_v21  ;;  %v15019_v21 = vld [vmem:[%s18313_s19 + $0xd0] sm:$0xff] }
0x146b   : > { %v18106_v20 = vpop.eup %18105 }
0x146c   : > { %v11030_v5 = vmul.f32 %v18106_v20, %v11022_v32  ;;  %v15010_v32 = vld [vmem:[%s18313_s19 + $0x88] sm:$0xff]  ;;  %v15020_v20 = vld [vmem:[%s18313_s19 + $0xd8] sm:$0xff] }
0x146d   : > { %v17788_v36 = vpack.c.bf16 %v15010_v32, %v15009_v50 }
0x146e   : > { %v11037_v62 = vmul.f32 %v15062_v27, %v11030_v5  ;;  %v15023_v27 = vld [vmem:[%s18313_s19 + $0xf0] sm:$0xff]  ;;  %v17803_v5 = vpack.c.bf16 %v15020_v20, %v15019_v21 }
0x146f   : > { %v17809_v12 = vpack.c.bf16 %v15024_v9, %v15023_v27 }
0x1470   : > { %v19888_v39 = vadd.f32 %v15063_v25, %v11037_v62 }
0x1472   : > { %16913 = vmatmul.mubr.msk.f32.vlgmr.msra.gmra.mrb[126].mxu0 %vm1050_vm0, %v19888_v39  ;;  %16924 = vmatmul.mubr.msk.f32.vlgmr.msra.gmra.mrb[126].mxu1 %vm1050_vm0, %v19888_v39 }
0x1473   : > { %17753 = vmatpush3.bf16.msra.mxu0 %v17752_v53  ;;  %17759 = vmatpush3.bf16.msra.mxu1 %v17758_v17 }
0x1474   : > { %17754 = vmatprep.subr.bf16.mxu0 %v18251_v31  ;;  %17760 = vmatprep.subr.bf16.mxu1 %v18251_v31 }
0x1475   : > { %16934 = vmatprep.mubr.msk.f32.mxu0 %vm18252_vm1, %v18253_v35  ;;  %16945 = vmatprep.mubr.msk.f32.mxu1 %vm18252_vm1, %v18253_v35 }
0x1477   : > { %17756 = vmatpush3.bf16.msra.mxu0 %v17755_v58  ;;  %17762 = vmatpush3.bf16.msra.mxu1 %v17761_v57 }
0x1478   : > { %17763 = vmatprep.subr.bf16.mxu0 %v18251_v31  ;;  %17769 = vmatprep.subr.bf16.mxu1 %v18251_v31 }
0x147a   : > { %16935 = vmatmul.mubr.msk.f32.vlgmr.msra.gmra.mrb[128].mxu0 %vm1050_vm0, %v19888_v39  ;;  %16946 = vmatmul.mubr.msk.f32.vlgmr.msra.gmra.mrb[128].mxu1 %vm1050_vm0, %v19888_v39 }
0x147b   : > { %17765 = vmatpush3.bf16.msra.mxu0 %v17764_v43  ;;  %17771 = vmatpush3.bf16.msra.mxu1 %v17770_v44 }
0x147c   : > { %17766 = vmatprep.subr.bf16.mxu0 %v18251_v31  ;;  %17772 = vmatprep.subr.bf16.mxu1 %v18251_v31 }
0x147d   : > { %16956 = vmatprep.mubr.msk.f32.mxu0 %vm18252_vm1, %v18253_v35  ;;  %16967 = vmatprep.mubr.msk.f32.mxu1 %vm18252_vm1, %v18253_v35 }
0x147f   : > { %17768 = vmatpush3.bf16.msra.mxu0 %v17767_v51  ;;  %17774 = vmatpush3.bf16.msra.mxu1 %v17773_v52 }
0x1480   : > { %17775 = vmatprep.subr.bf16.mxu0 %v18251_v31  ;;  %17781 = vmatprep.subr.bf16.mxu1 %v18251_v31 }
0x1482   : > { %16957 = vmatmul.mubr.msk.f32.vlgmr.msra.gmra.mrb[130].mxu0 %vm1050_vm0, %v19888_v39  ;;  %16968 = vmatmul.mubr.msk.f32.vlgmr.msra.gmra.mrb[130].mxu1 %vm1050_vm0, %v19888_v39 }
0x1483   : > { %17777 = vmatpush3.bf16.msra.mxu0 %v17776_v14  ;;  %17783 = vmatpush3.bf16.msra.mxu1 %v17782_v55 }
0x1484   : > { %17778 = vmatprep.subr.bf16.mxu0 %v18251_v31  ;;  %17784 = vmatprep.subr.bf16.mxu1 %v18251_v31 }
0x1485   : > { %16978 = vmatprep.mubr.msk.f32.mxu0 %vm18252_vm1, %v18253_v35  ;;  %16989 = vmatprep.mubr.msk.f32.mxu1 %vm18252_vm1, %v18253_v35 }
0x1487   : > { %17780 = vmatpush3.bf16.msra.mxu0 %v17779_v6  ;;  %17786 = vmatpush3.bf16.msra.mxu1 %v17785_v4 }
0x1488   : > { %17787 = vmatprep.subr.bf16.mxu0 %v18251_v31  ;;  %17793 = vmatprep.subr.bf16.mxu1 %v18251_v31 }
0x148a   : > { %16979 = vmatmul.mubr.msk.f32.vlgmr.msra.gmra.mrb[132].mxu0 %vm1050_vm0, %v19888_v39  ;;  %16990 = vmatmul.mubr.msk.f32.vlgmr.msra.gmra.mrb[132].mxu1 %vm1050_vm0, %v19888_v39 }
0x148b   : > { %17789 = vmatpush3.bf16.msra.mxu0 %v17788_v36  ;;  %17795 = vmatpush3.bf16.msra.mxu1 %v17794_v11 }
0x148c   : > { %17790 = vmatprep.subr.bf16.mxu0 %v18251_v31  ;;  %17796 = vmatprep.subr.bf16.mxu1 %v18251_v31 }
0x148d   : > { %17000 = vmatprep.mubr.msk.f32.mxu0 %vm18252_vm1, %v18253_v35  ;;  %17011 = vmatprep.mubr.msk.f32.mxu1 %vm18252_vm1, %v18253_v35 }
0x148f   : > { %17792 = vmatpush3.bf16.msra.mxu0 %v17791_v47  ;;  %17798 = vmatpush3.bf16.msra.mxu1 %v17797_v48 }
0x1490   : > { %17799 = vmatprep.subr.bf16.mxu0 %v18251_v31  ;;  %17805 = vmatprep.subr.bf16.mxu1 %v18251_v31 }
0x1492   : > { %17001 = vmatmul.mubr.msk.f32.vlgmr.msra.gmra.mrb[134].mxu0 %vm1050_vm0, %v19888_v39  ;;  %17012 = vmatmul.mubr.msk.f32.vlgmr.msra.gmra.mrb[134].mxu1 %vm1050_vm0, %v19888_v39 }
0x1493   : > { %17801 = vmatpush3.bf16.msra.mxu0 %v17800_v59  ;;  %17807 = vmatpush3.bf16.msra.mxu1 %v17806_v19 }
0x1494   : > { %17802 = vmatprep.subr.bf16.mxu0 %v18251_v31  ;;  %17808 = vmatprep.subr.bf16.mxu1 %v18251_v31 }
0x1495   : > { %17022 = vmatprep.mubr.msk.f32.mxu0 %vm18252_vm1, %v18253_v35  ;;  %17033 = vmatprep.mubr.msk.f32.mxu1 %vm18252_vm1, %v18253_v35 }
0x1497   : > { %17804 = vmatpush3.bf16.msra.mxu0 %v17803_v5  ;;  %17810 = vmatpush3.bf16.msra.mxu1 %v17809_v12 }
0x1498   : > { %17036 = vmatprep.subr.mxu0 %v18253_v35  ;;  %17041 = vmatprep.subr.mxu1 %v18253_v35 }
0x149a   : > { %17023 = vmatmul.mubr.msk.f32.vlgmr.msra.gmra.mrb[136].mxu0 %vm1050_vm0, %v19888_v39  ;;  %17034 = vmatmul.mubr.msk.f32.vlgmr.msra.gmra.mrb[136].mxu1 %vm1050_vm0, %v19888_v39 }
0x149b   : > { %17038 = vmatprep.mubr.msk.f32.mxu0 %vm18252_vm1, %v18253_v35  ;;  %17043 = vmatprep.mubr.msk.f32.mxu1 %vm18252_vm1, %v18253_v35 }
0x1545   : > { %v11114_v49 = vpop.f32.mrb[126].mxu0  ;;  %v11184_v26 = vpop.f32.mrb[126].mxu1 }
0x1546   : > { %v16914_v25 = vpop.f32.mrb[127].mxu0  ;;  %v16925_v62 = vpop.f32.mrb[127].mxu1  ;;  %17037 = vmatpush3.xpose.msk.msra.mxu0 %vm5004_vm2, %v11114_v49  ;;  %17042 = vmatpush3.xpose.msk.msra.mxu1 %vm5004_vm2, %v11184_v26 }
0x1547   : > { %17046 = vmatprep.subr.mxu0 %v18253_v35  ;;  %17051 = vmatprep.subr.mxu1 %v18253_v35 }
0x154d   : > { %v11254_v53 = vpop.f32.mrb[128].mxu0  ;;  %v11324_v17 = vpop.f32.mrb[128].mxu1 }
0x154e   : > { %v16936_v54 = vpop.f32.mrb[129].mxu0  ;;  %v16947_v39 = vpop.f32.mrb[129].mxu1 }
0x1555   : > { %v11394_v29 = vpop.f32.mrb[130].mxu0  ;;  %v11464_v28 = vpop.f32.mrb[130].mxu1 }
0x1556   : > { %v16958_v40 = vpop.f32.mrb[131].mxu0  ;;  %v16969_v58 = vpop.f32.mrb[131].mxu1 }
0x1557   : > { %v15057_v58 = vld [vmem:[%s20411_s6 + $0x20] sm:$0xff] }
0x155d   : > { %v19997_v57 = vpop.f32.mrb[132].mxu0  ;;  %v19999_v61 = vpop.f32.mrb[132].mxu1 }
0x155e   : > { %v16980_v23 = vpop.f32.mrb[133].mxu0  ;;  %v16991_v30 = vpop.f32.mrb[133].mxu1 }
0x155f   : > { %v15059_v30 = vld [vmem:[%s20411_s6 + $0x30] sm:$0xff] }
0x1565   : > { %v11674_v63 = vpop.f32.mrb[134].mxu0  ;;  %v11744_v43 = vpop.f32.mrb[134].mxu1 }
0x1566   : > { %v17002_v44 = vpop.f32.mrb[135].mxu0  ;;  %v17013_v7 = vpop.f32.mrb[135].mxu1  ;;  %17039 = vmatmul.mubr.msk.f32.vlgmr.msra.gmra.mrb[138].mxu0 %vm5004_vm2, %v11674_v63  ;;  %17044 = vmatmul.mubr.msk.f32.vlgmr.msra.gmra.mrb[138].mxu1 %vm5004_vm2, %v11744_v43 }
0x1567   : > { %17047 = vmatpush3.xpose.msk.msra.mxu0 %vm5004_vm2, %v11254_v53  ;;  %17052 = vmatpush3.xpose.msk.msra.mxu1 %vm5004_vm2, %v11324_v17 }
0x1568   : > { %17048 = vmatprep.mubr.msk.f32.mxu0 %vm18252_vm1, %v18253_v35  ;;  %17053 = vmatprep.mubr.msk.f32.mxu1 %vm18252_vm1, %v18253_v35 }
0x1569   : > { %17056 = vmatprep.subr.mxu0 %v18253_v35  ;;  %17061 = vmatprep.subr.mxu1 %v18253_v35 }
0x156d   : > { %v11814_v8 = vpop.f32.mrb[136].mxu0  ;;  %v11884_v3 = vpop.f32.mrb[136].mxu1 }
0x156e   : > { %v17024_v2 = vpop.f32.mrb[137].mxu0  ;;  %v17035_v51 = vpop.f32.mrb[137].mxu1  ;;  %17049 = vmatmul.mubr.msk.f32.vlgmr.msra.gmra.mrb[140].mxu0 %vm5004_vm2, %v11814_v8  ;;  %17054 = vmatmul.mubr.msk.f32.vlgmr.msra.gmra.mrb[140].mxu1 %vm5004_vm2, %v11884_v3 }
0x156f   : > { %17057 = vmatpush3.msk.msra.mxu0 %vm10347_vm9, %v11394_v29  ;;  %17062 = vmatpush3.msk.msra.mxu1 %vm10347_vm9, %v11464_v28 }
0x1570   : > { %17058 = vmatprep.mubr.msk.f32.mxu0 %vm18252_vm1, %v18253_v35  ;;  %17063 = vmatprep.mubr.msk.f32.mxu1 %vm18252_vm1, %v18253_v35 }
0x1571   : > { %17066 = vmatprep.subr.mxu0 %v18253_v35  ;;  %17071 = vmatprep.subr.mxu1 %v18253_v35 }
0x1639   : > { %v11960_v52 = vpop.f32.mrb[138].mxu0  ;;  %v12036_v56 = vpop.f32.mrb[138].mxu1 }
0x163a   : > { %v12192_v18 = vmul.f32 0.35355338, %v11960_v52  ;;  %v12193_v60 = vmul.f32 0.35355338, %v12036_v56  ;;  %v17040_v33 = vpop.f32.mrb[139].mxu0  ;;  %v17045_v14 = vpop.f32.mrb[139].mxu1 }
0x163c   : > { %v12200_v55 = vsel %vm12196_vm12, %v12193_v60, -inf  ;;  %v12197_v22 = vsel %vm12196_vm12, %v12192_v18, -inf }
0x163d   : > { %12201 = vmax.xlane.f32.xlu1 %v12200_v55  ;;  %12198 = vmax.xlane.f32.xlu0 %v12197_v22 }
0x1641   : > { %v12112_v13 = vpop.f32.mrb[140].mxu0  ;;  %v12188_v1 = vpop.f32.mrb[140].mxu1 }
0x1642   : > { %v12194_v37 = vmul.f32 0.35355338, %v12112_v13  ;;  %v12195_v6 = vmul.f32 0.35355338, %v12188_v1  ;;  %v17050_v4 = vpop.f32.mrb[141].mxu0  ;;  %v17055_v50 = vpop.f32.mrb[141].mxu1 }
0x1643   : > { %v15061_v4 = vld [vmem:[%s20425_s1 + $0x1] sm:$0x1]  ;;  %s20441_s1 = sld [smem:[#allocation30_spill]] }
0x1644   : > { %v12206_v32 = vsel %vm12196_vm12, %v12195_v6, -inf  ;;  %v12203_v24 = vsel %vm12196_vm12, %v12194_v37, -inf }
0x1645   : > { %12207 = vmax.xlane.f32.xlu1 %v12206_v32  ;;  %12204 = vmax.xlane.f32.xlu0 %v12203_v24 }
0x16ca   : > { %v12202_v34 = vpop.xlane.xlu1 %12201  ;;  %v12199_v36 = vpop.xlane.xlu0 %12198 }
0x16cb   : > { %v12210_v11 = vsub.f32 %v12193_v60, %v12202_v34  ;;  %v12209_v0 = vsub.f32 %v12192_v18, %v12199_v36 }
0x16cd   : > { %v12215_v10 = vmul.f32 1.442695, %v12210_v11  ;;  %v12213_v41 = vmul.f32 1.442695, %v12209_v0 }
0x16cf   : > { %18107 = vpow2.f32 %v12215_v10 }
0x16d0   : > { %18109 = vpow2.f32 %v12213_v41 }
0x16d2   : > { %v12208_v42 = vpop.xlane.xlu1 %12207  ;;  %v12205_v47 = vpop.xlane.xlu0 %12204 }
0x16d3   : > { %v12212_v48 = vsub.f32 %v12195_v6, %v12208_v42  ;;  %v12211_v16 = vsub.f32 %v12194_v37, %v12205_v47  ;;  %v15098_v47 = vld [vmem:[%s20426_s11 + $0x20] sm:$0xff] }
0x16d5   : > { %v12219_v15 = vmul.f32 1.442695, %v12212_v48  ;;  %v12217_v45 = vmul.f32 1.442695, %v12211_v16  ;;  %v15099_v48 = vld [vmem:[%s20426_s11 + $0x28] sm:$0xff]  ;;  %v15100_v16 = vld [vmem:[%s20426_s11 + $0x30] sm:$0xff] }
0x16d7   : > { %18111 = vpow2.f32 %v12219_v15  ;;  %v15101_v15 = vld [vmem:[%s20426_s11 + $0x38] sm:$0xff] }
0x16d8   : > { %18113 = vpow2.f32 %v12217_v45  ;;  %v17815_v45 = vpack.c.bf16 %v15101_v15, %v15100_v16  ;;  %v15125_v16 = vld [vmem:[%s20432_s13 + $0x90] sm:$0xff]  ;;  %v15126_v15 = vld [vmem:[%s20432_s13 + $0x98] sm:$0xff] }
0x16d9   : > { %v18108_v46 = vpop.eup %18107 }
0x16da   : > { %v18110_v59 = vpop.eup %18109  ;;  %v12224_v19 = vsel %vm12196_vm12, %v18108_v46, 0.0 }
0x16db   : > { %12225 = vadd.xlane.f32.xlu1 %v12224_v19  ;;  %v12221_v21 = vsel %vm12196_vm12, %v18110_v59, 0.0  ;;  %v15105_v19 = vld [vmem:[%s20427_s23 + $0x90] sm:$0xff] }
0x16dc   : > { %12222 = vadd.xlane.f32.xlu0 %v12221_v21 }
0x16e1   : > { %v18112_v20 = vpop.eup %18111 }
0x16e2   : > { %v18114_v27 = vpop.eup %18113  ;;  %v12230_v9 = vsel %vm12196_vm12, %v18112_v20, 0.0 }
0x16e3   : > { %12231 = vadd.xlane.f32.xlu1 %v12230_v9  ;;  %v12227_v5 = vsel %vm12196_vm12, %v18114_v27, 0.0  ;;  %v15107_v9 = vld [vmem:[%s20427_s23 + $0xa0] sm:$0xff] }
0x16e4   : > { %12228 = vadd.xlane.f32.xlu0 %v12227_v5  ;;  %v15108_v5 = vld [vmem:[%s20427_s23 + $0xa8] sm:$0xff] }
0x1768   : > { %v12226_v12 = vpop.xlane.xlu1 %12225 }
0x1769   : > { %18115 = vrcp.f32 %v12226_v12  ;;  %v12223_v49 = vpop.xlane.xlu0 %12222  ;;  %v17824_v12 = vpack.c.bf16 %v15108_v5, %v15107_v9  ;;  %v15121_v5 = vld [vmem:[%s20434_s21 + $0x1] sm:$0x1] }
0x176a   : > { %18117 = vrcp.f32 %v12223_v49 }
0x1770   : > { %v12232_v26 = vpop.xlane.xlu1 %12231 }
0x1771   : > { %18119 = vrcp.f32 %v12232_v26  ;;  %v12229_v25 = vpop.xlane.xlu0 %12228 }
0x1772   : > { %18121 = vrcp.f32 %v12229_v25 }
0x1773   : > { %v18116_v62 = vpop.eup %18115 }
0x1774   : > { %v18118_v53 = vpop.eup %18117  ;;  %v12238_v17 = vmul.f32 %v18116_v62, %v18108_v46  ;;  %v15103_v46 = vld [vmem:[%s20427_s23 + $0x80] sm:$0xff] }
0x1775   : > { %v12237_v54 = vmul.f32 %v18118_v53, %v18110_v59  ;;  %v15104_v59 = vld [vmem:[%s20427_s23 + $0x88] sm:$0xff]  ;;  %v15096_v53 = vld [vmem:[%s20428_s28 + $0x1] sm:$0x1] }
0x1776   : > { %17064 = vmatmul.mubr.msk.f32.vlgmr.msra.gmra.mrb[142].mxu1 %vm10343_vm11, %v12238_v17  ;;  %v17818_v21 = vpack.c.bf16 %v15104_v59, %v15103_v46  ;;  %v17845_v46 = vpack.c.bf16 %v15126_v15, %v15125_v16  ;;  %v15142_v59 = vld [vmem:[%s20433_s17 + $0x98] sm:$0xff] }
0x1777   : > { %17059 = vmatmul.mubr.msk.f32.vlgmr.msra.gmra.mrb[142].mxu0 %vm10343_vm11, %v12237_v54  ;;  %17072 = vmatpush3.msk.msra.mxu1 %vm10347_vm9, %v19999_v61  ;;  %v15060_v61 = vld [vmem:[%s20411_s6 + $0x38] sm:$0xff]  ;;  %v15097_v54 = vld [vmem:[%s20429_s3 + $0x1] sm:$0x1] }
0x1778   : > { %17067 = vmatpush3.msk.msra.mxu0 %vm10347_vm9, %v19997_v57  ;;  %17068 = vmatprep.mubr.msk.f32.mxu0 %vm18252_vm1, %v18253_v35  ;;  %v15058_v57 = vld [vmem:[%s20411_s6 + $0x28] sm:$0xff]  ;;  %v15154_v16 = vld [vmem:[%s20433_s17 + $0xf8] sm:$0xff] }
0x1779   : > { %17073 = vmatprep.mubr.msk.f32.mxu1 %vm18252_vm1, %v18253_v35  ;;  %17076 = vmatprep.subr.mxu0 %v18253_v35 }
0x177a   : > { %17081 = vmatprep.subr.mxu1 %v18253_v35 }
0x177b   : > { %v18120_v39 = vpop.eup %18119 }
0x177c   : > { %v18122_v29 = vpop.eup %18121  ;;  %v12240_v28 = vmul.f32 %v18120_v39, %v18112_v20  ;;  %v15106_v20 = vld [vmem:[%s20427_s23 + $0x98] sm:$0xff] }
0x177d   : > { %v12239_v40 = vmul.f32 %v18122_v29, %v18114_v27  ;;  %v17821_v27 = vpack.c.bf16 %v15106_v20, %v15105_v19 }
0x177e   : > { %17074 = vmatmul.mubr.msk.f32.vlgmr.msra.gmra.mrb[144].mxu1 %vm10343_vm11, %v12240_v28  ;;  %v15109_v28 = vld [vmem:[%s20427_s23 + $0xb0] sm:$0xff] }
0x177f   : > { %17069 = vmatmul.mubr.msk.f32.vlgmr.msra.gmra.mrb[144].mxu0 %vm10343_vm11, %v12239_v40  ;;  %17083 = vmatprep.mubr.msk.f32.mxu1 %vm18252_vm1, %v18253_v35  ;;  %v15110_v40 = vld [vmem:[%s20427_s23 + $0xb8] sm:$0xff] }
0x1780   : > { %17078 = vmatprep.mubr.msk.f32.mxu0 %vm18252_vm1, %v18253_v35  ;;  %17077 = vmatpush3.msra.mxu0 %v15057_v58  ;;  %v17827_v58 = vpack.c.bf16 %v15110_v40, %v15109_v28  ;;  %v15130_v40 = vld [vmem:[%s20432_s13 + $0xb8] sm:$0xff] }
0x1781   : > { %17082 = vmatpush3.msra.mxu1 %v15058_v57  ;;  %17086 = vmatprep.subr.mxu0 %v18253_v35  ;;  %v15111_v57 = vld [vmem:[%s20427_s23 + $0xc0] sm:$0xff] }
0x1782   : > { %17091 = vmatprep.subr.mxu1 %v18253_v35 }
0x1849   : > { %v12389_v23 = vpop.f32.mrb[142].mxu1 }
0x184a   : > { %v12313_v63 = vpop.f32.mrb[142].mxu0  ;;  %v17065_v43 = vpop.f32.mrb[143].mxu1  ;;  %17084 = vmatmul.mubr.msk.f32.vlgmr.msra.gmra.mrb[146].mxu1 %vm5004_vm2, %v12389_v23 }
0x184b   : > { %v17060_v44 = vpop.f32.mrb[143].mxu0  ;;  %17079 = vmatmul.mubr.msk.f32.vlgmr.msra.gmra.mrb[146].mxu0 %vm5004_vm2, %v12313_v63  ;;  %17092 = vmatpush3.msra.mxu1 %v15060_v61  ;;  %v15112_v61 = vld [vmem:[%s20427_s23 + $0xc8] sm:$0xff]  ;;  %v15114_v63 = vld [vmem:[%s20427_s23 + $0xd8] sm:$0xff] }
0x184c   : > { %17087 = vmatpush3.msra.mxu0 %v15059_v30  ;;  %17088 = vmatprep.mubr.msk.f32.mxu0 %vm18252_vm1, %v18253_v35  ;;  %v17830_v23 = vpack.c.bf16 %v15112_v61, %v15111_v57  ;;  %v15113_v30 = vld [vmem:[%s20427_s23 + $0xd0] sm:$0xff]  ;;  %v15115_v44 = vld [vmem:[%s20427_s23 + $0xe0] sm:$0xff]  ;;  %v15150_v57 = vld [vmem:[%s20433_s17 + $0xd8] sm:$0xff] }
0x184d   : > { %17093 = vmatprep.mubr.msk.f32.mxu1 %vm18252_vm1, %v18253_v35  ;;  %17811 = vmatprep.subr.bf16.mxu0 %v18251_v31  ;;  %v17833_v43 = vpack.c.bf16 %v15114_v63, %v15113_v30  ;;  %v15131_v30 = vld [vmem:[%s20432_s13 + $0xc0] sm:$0xff]  ;;  %v15132_v63 = vld [vmem:[%s20432_s13 + $0xc8] sm:$0xff] }
0x184e   : > { %17817 = vmatprep.subr.bf16.mxu1 %v18251_v31 }
0x1851   : > { %v12541_v7 = vpop.f32.mrb[144].mxu1 }
0x1852   : > { %v12465_v8 = vpop.f32.mrb[144].mxu0  ;;  %v17075_v3 = vpop.f32.mrb[145].mxu1  ;;  %17094 = vmatmul.mubr.msk.f32.vlgmr.msra.gmra.mrb[148].mxu1 %vm5004_vm2, %v12541_v7  ;;  %v15116_v7 = vld [vmem:[%s20427_s23 + $0xe8] sm:$0xff] }
0x1853   : > { %v17070_v2 = vpop.f32.mrb[145].mxu0  ;;  %17089 = vmatmul.mubr.msk.f32.vlgmr.msra.gmra.mrb[148].mxu0 %vm5004_vm2, %v12465_v8  ;;  %17139 = vmatprep.mubr.msk.f32.mxu1 %vm18252_vm1, %v18253_v35  ;;  %v17836_v8 = vpack.c.bf16 %v15116_v7, %v15115_v44  ;;  %v15117_v3 = vld [vmem:[%s20427_s23 + $0xf0] sm:$0xff]  ;;  %v15156_v44 = vld [vmem:[%s20436_s29 + $0x88] sm:$0xff]  ;;  %v17854_v7 = vpack.c.bf16 %v15132_v63, %v15131_v30 }
0x1854   : > { %17104 = vmatprep.mubr.msk.f32.mxu0 %vm18252_vm1, %v18253_v35  ;;  %17819 = vmatpush3.bf16.msra.mxu1 %v17818_v21  ;;  %v15118_v2 = vld [vmem:[%s20427_s23 + $0xf8] sm:$0xff] }
0x1855   : > { %17820 = vmatprep.subr.bf16.mxu1 %v18251_v31 }
0x1858   : > { %17822 = vmatpush3.bf16.msra.mxu1 %v17821_v27 }
0x1859   : > { %17823 = vmatprep.subr.bf16.mxu1 %v18251_v31 }
0x185c   : > { %17825 = vmatpush3.bf16.msra.mxu1 %v17824_v12  ;;  %v15127_v12 = vld [vmem:[%s20432_s13 + $0xa0] sm:$0xff] }
0x185d   : > { %17826 = vmatprep.subr.bf16.mxu1 %v18251_v31 }
0x1860   : > { %17828 = vmatpush3.bf16.msra.mxu1 %v17827_v58  ;;  %v15149_v58 = vld [vmem:[%s20433_s17 + $0xd0] sm:$0xff] }
0x1861   : > { %17829 = vmatprep.subr.bf16.mxu1 %v18251_v31 }
0x1864   : > { %17831 = vmatpush3.bf16.msra.mxu1 %v17830_v23  ;;  %v17881_v23 = vpack.c.bf16 %v15150_v57, %v15149_v58 }
0x1865   : > { %17832 = vmatprep.subr.bf16.mxu1 %v18251_v31 }
0x1868   : > { %17834 = vmatpush3.bf16.msra.mxu1 %v17833_v43  ;;  %v15155_v43 = vld [vmem:[%s20436_s29 + $0x80] sm:$0xff] }
0x1869   : > { %17835 = vmatprep.subr.bf16.mxu1 %v18251_v31 }
0x186c   : > { %17837 = vmatpush3.bf16.msra.mxu1 %v17836_v8  ;;  %v17890_v8 = vpack.c.bf16 %v15156_v44, %v15155_v43 }
0x186d   : > { %17838 = vmatprep.subr.bf16.mxu1 %v18251_v31 }
0x191d   : > { %v12687_v51 = vpop.f32.mrb[146].mxu1 }
0x191e   : > { %v12614_v52 = vpop.f32.mrb[146].mxu0  ;;  %v12838_v56 = vsel %vm8750_vm4, %v12687_v51, 0.0  ;;  %v17085_v18 = vpop.f32.mrb[147].mxu1  ;;  %v17839_v51 = vpack.c.bf16 %v15118_v2, %v15117_v3  ;;  %v15133_v3 = vld [vmem:[%s20432_s13 + $0xd0] sm:$0xff]  ;;  %v15134_v2 = vld [vmem:[%s20432_s13 + $0xd8] sm:$0xff] }
0x191f   : > { %v12837_v60 = vsel %vm8750_vm4, %v12614_v52, 0.0  ;;  %v17080_v33 = vpop.f32.mrb[147].mxu0  ;;  %v15102_v52 = vld [vmem:[%s20430_s5 + $0x1] sm:$0x1] }
0x1920   : > { %v12839_v14 = vadd.f32 %v12838_v56, %v12837_v60  ;;  %17840 = vmatpush3.bf16.msra.mxu1 %v17839_v51  ;;  %v15157_v51 = vld [vmem:[%s20436_s29 + $0x90] sm:$0xff] }
0x1921   : > { %17865 = vmatprep.subr.bf16.mxu1 %v18251_v31 }
0x1925   : > { %v12833_v55 = vpop.f32.mrb[148].mxu1 }
0x1926   : > { %v12760_v22 = vpop.f32.mrb[148].mxu0  ;;  %v17095_v13 = vpop.f32.mrb[149].mxu1  ;;  %v12842_v50 = vsel %vm8750_vm4, %v12833_v55, 0.0 }
0x1927   : > { %v12840_v1 = vsel %vm8750_vm4, %v12760_v22, 0.0  ;;  %v17090_v37 = vpop.f32.mrb[149].mxu0 }
0x1928   : > { %v12841_v6 = vadd.f32 %v12840_v1, %v12839_v14  ;;  %v15119_v1 = vld [vmem:[%s20431_s9 + $0x1] sm:$0x1] }
0x192a   : > { %v12843_v32 = vadd.f32 %v12842_v50, %v12841_v6 }
0x192c   : > { %v12844_v24 = vadd.f32 %v15061_v4, %v12843_v32 }
0x192e   : > { %v20073_v34 = vadd.f32 %v12844_v24, %v19863_v38  ;;  %v17812_v38 = vpack.c.bf16 %v15099_v48, %v15098_v47  ;;  %v15140_v48 = vld [vmem:[%s20433_s17 + $0x88] sm:$0xff] }
0x1930   : > { %v12876_v36 = vsel %vm8750_vm4, %v20073_v34, 0.0  ;;  %17813 = vmatpush3.bf16.msra.mxu0 %v17812_v38 }
0x1931   : > { %12877 = vadd.xlane.f32.xlu0 %v12876_v36  ;;  %17814 = vmatprep.subr.bf16.mxu0 %v18251_v31 }
0x1934   : > { %17816 = vmatpush3.bf16.msra.mxu0 %v17815_v45  ;;  %v15141_v45 = vld [vmem:[%s20433_s17 + $0x90] sm:$0xff] }
0x1935   : > { %17841 = vmatprep.subr.bf16.mxu0 %v18251_v31  ;;  %v17869_v19 = vpack.c.bf16 %v15142_v59, %v15141_v45  ;;  %v15159_v45 = vld [vmem:[%s20436_s29 + $0xa0] sm:$0xff] }
0x19be   : > { %v12878_v11 = vpop.xlane.xlu0 %12877 }
0x19bf   : > { %v12879_v0 = vmul.f32 0.03125, %v12878_v11 }
0x19c1   : > { %v12880_v10 = vsub.f32 %v20073_v34, %v12879_v0 }
0x19c3   : > { %v12881_v41 = vmul.f32 %v12880_v10, %v12880_v10 }
0x19c5   : > { %v12882_v42 = vsel %vm8750_vm4, %v12881_v41, 0.0  ;;  %v15123_v41 = vld [vmem:[%s20432_s13 + $0x80] sm:$0xff] }
0x19c6   : > { %12883 = vadd.xlane.f32.xlu1 %v12882_v42  ;;  %v15124_v42 = vld [vmem:[%s20432_s13 + $0x88] sm:$0xff] }
0x19c7   : > { %v17842_v47 = vpack.c.bf16 %v15124_v42, %v15123_v41  ;;  %v15146_v41 = vld [vmem:[%s20433_s17 + $0xb8] sm:$0xff] }
0x1a53   : > { %v12884_v49 = vpop.xlane.xlu1 %12883 }
0x1a54   : > { %v12885_v26 = vmul.f32 0.03125, %v12884_v49 }
0x1a56   : > { %v12886_v25 = vadd.f32 1e-05, %v12885_v26  ;;  %v15128_v26 = vld [vmem:[%s20432_s13 + $0xa8] sm:$0xff] }
0x1a58   : > { %18123 = vrsqrt.f32 %v12886_v25  ;;  %v15147_v25 = vld [vmem:[%s20433_s17 + $0xc0] sm:$0xff] }
0x1a62   : > { %v18124_v62 = vpop.eup %18123 }
0x1a63   : > { %v12888_v17 = vmul.f32 %v18124_v62, %v12880_v10  ;;  %v15148_v62 = vld [vmem:[%s20433_s17 + $0xc8] sm:$0xff] }
0x1a65   : > { %v12889_v39 = vmul.f32 %v15096_v53, %v12888_v17  ;;  %v15122_v53 = vld [vmem:[%s20435_s25 + $0x1] sm:$0x1] }
0x1a67   : > { %v12890_v29 = vadd.f32 %v15097_v54, %v12889_v39  ;;  %v17848_v54 = vpack.c.bf16 %v15128_v26, %v15127_v12  ;;  %v17878_v39 = vpack.c.bf16 %v15148_v62, %v15147_v25  ;;  %v15169_v12 = vld [vmem:[%s20436_s29 + $0xf0] sm:$0xff] }
0x1a69   : > { %17105 = vmatmul.mubr.msk.f32.vlgmr.msra.gmra.mrb[150].mxu0 %vm1050_vm0, %v12890_v29  ;;  %v15129_v29 = vld [vmem:[%s20432_s13 + $0xb0] sm:$0xff] }
0x1a6a   : > { %17150 = vmatprep.mubr.msk.f32.mxu0 %vm18252_vm1, %v18253_v35  ;;  %17843 = vmatpush3.bf16.msra.mxu0 %v17842_v47  ;;  %v17851_v61 = vpack.c.bf16 %v15130_v40, %v15129_v29  ;;  %v15152_v47 = vld [vmem:[%s20433_s17 + $0xe8] sm:$0xff] }
0x1a6b   : > { %17844 = vmatprep.subr.bf16.mxu0 %v18251_v31 }
0x1a6e   : > { %17846 = vmatpush3.bf16.msra.mxu0 %v17845_v46  ;;  %v15160_v46 = vld [vmem:[%s20436_s29 + $0xa8] sm:$0xff] }
0x1a6f   : > { %17847 = vmatprep.subr.bf16.mxu0 %v18251_v31  ;;  %v17896_v59 = vpack.c.bf16 %v15160_v46, %v15159_v45 }
0x1b3c   : > { %v12960_v56 = vpop.f32.mrb[150].mxu0 }
0x1b3d   : > { %v12961_v18 = vadd.f32 %v15102_v52, %v12960_v56  ;;  %v17106_v60 = vpop.f32.mrb[151].mxu0  ;;  %v15158_v52 = vld [vmem:[%s20436_s29 + $0x98] sm:$0xff]  ;;  %v17857_v56 = vpack.c.bf16 %v15134_v2, %v15133_v3 }
0x1b3e   : > { %v15135_v60 = vld [vmem:[%s20432_s13 + $0xe0] sm:$0xff] }
0x1b3f   : > { %v12965_v33 = vmul.f32 0.70710677, %v12961_v18  ;;  %v12964_v55 = vmul.f32 0.5, %v12961_v18  ;;  %v17893_v18 = vpack.c.bf16 %v15158_v52, %v15157_v51 }
0x1b41   : > { %18125 = verf.f32 %v12965_v33  ;;  %v15136_v33 = vld [vmem:[%s20432_s13 + $0xe8] sm:$0xff] }
0x1b4b   : > { %v18126_v14 = vpop.eup %18125 }
0x1b4c   : > { %v12967_v22 = vadd.f32 1.0, %v18126_v14  ;;  %v15163_v14 = vld [vmem:[%s20436_s29 + $0xc0] sm:$0xff] }
0x1b4e   : > { %v12968_v13 = vmul.f32 %v12967_v22, %v12964_v55  ;;  %v15164_v55 = vld [vmem:[%s20436_s29 + $0xc8] sm:$0xff]  ;;  %v17860_v22 = vpack.c.bf16 %v15136_v33, %v15135_v60 }
0x1b50   : > { %17140 = vmatmul.mubr.f32.vlgmr.msra.gmra.mrb[150].mxu1 %v12968_v13  ;;  %v17902_v13 = vpack.c.bf16 %v15164_v55, %v15163_v14 }
0x1b51   : > { %17194 = vmatprep.mubr.msk.f32.mxu1 %vm18252_vm1, %v18253_v35 }
0x1c23   : > { %v13035_v37 = vpop.f32.mrb[150].mxu1 }
0x1c24   : > { %v13036_v6 = vadd.f32 %v15119_v1, %v13035_v37  ;;  %v17141_v4 = vpop.f32.mrb[151].mxu1  ;;  %v15137_v1 = vld [vmem:[%s20432_s13 + $0xf0] sm:$0xff]  ;;  %v15138_v37 = vld [vmem:[%s20432_s13 + $0xf8] sm:$0xff] }
0x1c25   : > { %v15166_v4 = vld [vmem:[%s20436_s29 + $0xd8] sm:$0xff] }
0x1c26   : > { %v20119_v50 = vadd.f32 %v13036_v6, %v20073_v34  ;;  %v15139_v34 = vld [vmem:[%s20433_s17 + $0x80] sm:$0xff]  ;;  %v15165_v6 = vld [vmem:[%s20436_s29 + $0xd0] sm:$0xff] }
0x1c27   : > { %v17866_v38 = vpack.c.bf16 %v15140_v48, %v15139_v34  ;;  %v15151_v34 = vld [vmem:[%s20433_s17 + $0xe0] sm:$0xff] }
0x1c28   : > { %v13102_v32 = vsel %vm8750_vm4, %v20119_v50, 0.0  ;;  %v17884_v48 = vpack.c.bf16 %v15152_v47, %v15151_v34 }
0x1c29   : > { %13103 = vadd.xlane.f32.xlu0 %v13102_v32  ;;  %17867 = vmatpush3.bf16.msra.mxu1 %v17866_v38  ;;  %v17863_v32 = vpack.c.bf16 %v15138_v37, %v15137_v1  ;;  %v15153_v38 = vld [vmem:[%s20433_s17 + $0xf0] sm:$0xff] }
0x1c2a   : > { %17868 = vmatprep.subr.bf16.mxu1 %v18251_v31  ;;  %v17887_v15 = vpack.c.bf16 %v15154_v16, %v15153_v38 }
0x1c2d   : > { %17870 = vmatpush3.bf16.msra.mxu1 %v17869_v19  ;;  %v15161_v19 = vld [vmem:[%s20436_s29 + $0xb0] sm:$0xff] }
0x1c2e   : > { %17877 = vmatprep.subr.bf16.mxu1 %v18251_v31 }
0x1cb6   : > { %v13104_v24 = vpop.xlane.xlu0 %13103 }
0x1cb7   : > { %v13105_v36 = vmul.f32 0.03125, %v13104_v24  ;;  %v17905_v24 = vpack.c.bf16 %v15166_v4, %v15165_v6 }
0x1cb9   : > { %v13106_v11 = vsub.f32 %v20119_v50, %v13105_v36  ;;  %v15143_v36 = vld [vmem:[%s20433_s17 + $0xa0] sm:$0xff] }
0x1cbb   : > { %v13107_v0 = vmul.f32 %v13106_v11, %v13106_v11 }
0x1cbd   : > { %v13108_v10 = vsel %vm8750_vm4, %v13107_v0, 0.0 }
0x1cbe   : > { %13109 = vadd.xlane.f32.xlu1 %v13108_v10  ;;  %v15145_v10 = vld [vmem:[%s20433_s17 + $0xb0] sm:$0xff] }
0x1cbf   : > { %v17875_v42 = vpack.c.bf16 %v15146_v41, %v15145_v10 }
0x1d4b   : > { %v13110_v21 = vpop.xlane.xlu1 %13109 }
0x1d4c   : > { %v13111_v20 = vmul.f32 0.03125, %v13110_v21  ;;  %v15162_v21 = vld [vmem:[%s20436_s29 + $0xb8] sm:$0xff] }
0x1d4e   : > { %v13112_v27 = vadd.f32 1e-05, %v13111_v20  ;;  %v17899_v20 = vpack.c.bf16 %v15162_v21, %v15161_v19 }
0x1d50   : > { %18127 = vrsqrt.f32 %v13112_v27  ;;  %v15167_v27 = vld [vmem:[%s20436_s29 + $0xe0] sm:$0xff] }
0x1d5a   : > { %v18128_v9 = vpop.eup %18127 }
0x1d5b   : > { %v13114_v49 = vmul.f32 %v18128_v9, %v13106_v11  ;;  %v15144_v11 = vld [vmem:[%s20433_s17 + $0xa8] sm:$0xff] }
0x1d5c   : > { %v17872_v0 = vpack.c.bf16 %v15144_v11, %v15143_v36  ;;  %v15168_v9 = vld [vmem:[%s20436_s29 + $0xe8] sm:$0xff] }
0x1d5d   : > { %v13115_v17 = vmul.f32 %v15121_v5, %v13114_v49  ;;  %v17908_v5 = vpack.c.bf16 %v15168_v9, %v15167_v27  ;;  %v15170_v49 = vld [vmem:[%s20436_s29 + $0xf8] sm:$0xff] }
0x1d5e   : > { %v17911_v26 = vpack.c.bf16 %v15170_v49, %v15169_v12 }
0x1d5f   : > { %v20144_v28 = vadd.f32 %v15122_v53, %v13115_v17 }
0x1d61   : > { %17151 = vmatmul.mubr.msk.f32.vlgmr.msra.gmra.mrb[152].mxu0 %vm1050_vm0, %v20144_v28  ;;  %17195 = vmatmul.mubr.msk.f32.vlgmr.msra.gmra.mrb[152].mxu1 %vm1050_vm0, %v20144_v28 }
0x1d62   : > { %17849 = vmatpush3.bf16.msra.mxu0 %v17848_v54  ;;  %17879 = vmatpush3.bf16.msra.mxu1 %v17878_v39 }
0x1d63   : > { %17850 = vmatprep.subr.bf16.mxu0 %v18251_v31  ;;  %17880 = vmatprep.subr.bf16.mxu1 %v18251_v31 }
0x1d64   : > { %17161 = vmatprep.mubr.msk.f32.mxu0 %vm18252_vm1, %v18253_v35  ;;  %17216 = vmatprep.mubr.msk.f32.mxu1 %vm18252_vm1, %v18253_v35 }
0x1d66   : > { %17852 = vmatpush3.bf16.msra.mxu0 %v17851_v61  ;;  %17882 = vmatpush3.bf16.msra.mxu1 %v17881_v23 }
0x1d67   : > { %17853 = vmatprep.subr.bf16.mxu0 %v18251_v31  ;;  %17889 = vmatprep.subr.bf16.mxu1 %v18251_v31 }
0x1d69   : > { %17162 = vmatmul.mubr.msk.f32.vlgmr.msra.gmra.mrb[154].mxu0 %vm1050_vm0, %v20144_v28  ;;  %17217 = vmatmul.mubr.msk.f32.vlgmr.msra.gmra.mrb[154].mxu1 %vm1050_vm0, %v20144_v28 }
0x1d6a   : > { %17855 = vmatpush3.bf16.msra.mxu0 %v17854_v7  ;;  %17891 = vmatpush3.bf16.msra.mxu1 %v17890_v8 }
0x1d6b   : > { %17856 = vmatprep.subr.bf16.mxu0 %v18251_v31  ;;  %17892 = vmatprep.subr.bf16.mxu1 %v18251_v31 }
0x1d6c   : > { %17172 = vmatprep.mubr.msk.f32.mxu0 %vm18252_vm1, %v18253_v35  ;;  %17238 = vmatprep.mubr.msk.f32.mxu1 %vm18252_vm1, %v18253_v35 }
0x1d6e   : > { %17858 = vmatpush3.bf16.msra.mxu0 %v17857_v56  ;;  %17894 = vmatpush3.bf16.msra.mxu1 %v17893_v18 }
0x1d6f   : > { %17859 = vmatprep.subr.bf16.mxu0 %v18251_v31  ;;  %17901 = vmatprep.subr.bf16.mxu1 %v18251_v31 }
0x1d71   : > { %17173 = vmatmul.mubr.msk.f32.vlgmr.msra.gmra.mrb[156].mxu0 %vm1050_vm0, %v20144_v28  ;;  %17239 = vmatmul.mubr.msk.f32.vlgmr.msra.gmra.mrb[156].mxu1 %vm1050_vm0, %v20144_v28 }
0x1d72   : > { %17861 = vmatpush3.bf16.msra.mxu0 %v17860_v22  ;;  %17903 = vmatpush3.bf16.msra.mxu1 %v17902_v13 }
0x1d73   : > { %17862 = vmatprep.subr.bf16.mxu0 %v18251_v31  ;;  %17904 = vmatprep.subr.bf16.mxu1 %v18251_v31 }
0x1d74   : > { %17183 = vmatprep.mubr.msk.f32.mxu0 %vm18252_vm1, %v18253_v35  ;;  %17260 = vmatprep.mubr.msk.f32.mxu1 %vm18252_vm1, %v18253_v35 }
0x1d76   : > { %17864 = vmatpush3.bf16.msra.mxu0 %v17863_v32  ;;  %17906 = vmatpush3.bf16.msra.mxu1 %v17905_v24 }
0x1d77   : > { %17871 = vmatprep.subr.bf16.mxu0 %v18251_v31  ;;  %17274 = vmatprep.subr.mxu1 %v18253_v35 }
0x1d79   : > { %17184 = vmatmul.mubr.msk.f32.vlgmr.msra.gmra.mrb[158].mxu0 %vm1050_vm0, %v20144_v28  ;;  %17261 = vmatmul.mubr.msk.f32.vlgmr.msra.gmra.mrb[158].mxu1 %vm1050_vm0, %v20144_v28 }
0x1d7a   : > { %17873 = vmatpush3.bf16.msra.mxu0 %v17872_v0  ;;  %17205 = vmatprep.mubr.msk.f32.mxu0 %vm18252_vm1, %v18253_v35 }
0x1d7b   : > { %17874 = vmatprep.subr.bf16.mxu0 %v18251_v31  ;;  %17276 = vmatprep.mubr.msk.f32.mxu1 %vm18252_vm1, %v18253_v35 }
0x1d7e   : > { %17876 = vmatpush3.bf16.msra.mxu0 %v17875_v42 }
0x1d7f   : > { %17883 = vmatprep.subr.bf16.mxu0 %v18251_v31 }
0x1d81   : > { %17206 = vmatmul.mubr.msk.f32.vlgmr.msra.gmra.mrb[160].mxu0 %vm1050_vm0, %v20144_v28 }
0x1d82   : > { %17885 = vmatpush3.bf16.msra.mxu0 %v17884_v48  ;;  %17227 = vmatprep.mubr.msk.f32.mxu0 %vm18252_vm1, %v18253_v35 }
0x1d83   : > { %17886 = vmatprep.subr.bf16.mxu0 %v18251_v31 }
0x1d86   : > { %17888 = vmatpush3.bf16.msra.mxu0 %v17887_v15 }
0x1d87   : > { %17895 = vmatprep.subr.bf16.mxu0 %v18251_v31 }
0x1d89   : > { %17228 = vmatmul.mubr.msk.f32.vlgmr.msra.gmra.mrb[162].mxu0 %vm1050_vm0, %v20144_v28 }
0x1d8a   : > { %17897 = vmatpush3.bf16.msra.mxu0 %v17896_v59  ;;  %17249 = vmatprep.mubr.msk.f32.mxu0 %vm18252_vm1, %v18253_v35 }
0x1d8b   : > { %17898 = vmatprep.subr.bf16.mxu0 %v18251_v31 }
0x1d8e   : > { %17900 = vmatpush3.bf16.msra.mxu0 %v17899_v20 }
0x1d8f   : > { %17907 = vmatprep.subr.bf16.mxu0 %v18251_v31 }
0x1d91   : > { %17250 = vmatmul.mubr.msk.f32.vlgmr.msra.gmra.mrb[164].mxu0 %vm1050_vm0, %v20144_v28 }
0x1d92   : > { %17909 = vmatpush3.bf16.msra.mxu0 %v17908_v5  ;;  %17271 = vmatprep.mubr.msk.f32.mxu0 %vm18252_vm1, %v18253_v35 }
0x1d93   : > { %17910 = vmatprep.subr.bf16.mxu0 %v18251_v31 }
0x1d96   : > { %17912 = vmatpush3.bf16.msra.mxu0 %v17911_v26  ;;  %v15171_v26 = vld [vmem:[%s20437_s2 + $0x20] sm:$0xff] }
0x1d97   : > { %17284 = vmatprep.subr.mxu0 %v18253_v35 }
0x1d99   : > { %17272 = vmatmul.mubr.msk.f32.vlgmr.msra.gmra.mrb[166].mxu0 %vm1050_vm0, %v20144_v28 }
0x1d9a   : > { %17286 = vmatprep.mubr.msk.f32.mxu0 %vm18252_vm1, %v18253_v35 }
0x1e34   : > { %v13186_v25 = vpop.f32.mrb[152].mxu0  ;;  %v13466_v62 = vpop.f32.mrb[152].mxu1 }
0x1e35   : > { %v13960_v53 = vmul.f32 %v13466_v62, %v13186_v25  ;;  %v17152_v17 = vpop.f32.mrb[153].mxu0  ;;  %v17196_v54 = vpop.f32.mrb[153].mxu1  ;;  %v15172_v25 = vld [vmem:[%s20437_s2 + $0x28] sm:$0xff]  ;;  %v15173_v62 = vld [vmem:[%s20437_s2 + $0x30] sm:$0xff] }
0x1e37   : > { %v13961_v39 = vsel %vm6237_vm3, %v13960_v53, 0.0 }
0x1e38   : > { %13962 = vadd.xlane.f32.xlu0 %v13961_v39 }
0x1e3c   : > { %v13256_v29 = vpop.f32.mrb[154].mxu0  ;;  %v13606_v40 = vpop.f32.mrb[154].mxu1 }
0x1e3d   : > { %v17163_v58 = vpop.f32.mrb[155].mxu0  ;;  %v17218_v57 = vpop.f32.mrb[155].mxu1 }
0x1e44   : > { %v13326_v61 = vpop.f32.mrb[156].mxu0  ;;  %v13746_v23 = vpop.f32.mrb[156].mxu1 }
0x1e45   : > { %v13968_v30 = vmul.f32 %v13606_v40, %v13326_v61  ;;  %v17174_v28 = vpop.f32.mrb[157].mxu0  ;;  %v17240_v63 = vpop.f32.mrb[157].mxu1  ;;  %17275 = vmatpush3.msk.msra.mxu1 %vm14008_vm13, %v13746_v23 }
0x1e46   : > { %17279 = vmatprep.subr.mxu1 %v18253_v35 }
0x1e47   : > { %v13969_v43 = vsel %vm6237_vm3, %v13968_v30, 0.0 }
0x1e48   : > { %13970 = vadd.xlane.f32.xlu0 %v13969_v43 }
0x1e4c   : > { %v13396_v44 = vpop.f32.mrb[158].mxu0  ;;  %v13886_v7 = vpop.f32.mrb[158].mxu1 }
0x1e4d   : > { %v17185_v8 = vpop.f32.mrb[159].mxu0  ;;  %v17262_v3 = vpop.f32.mrb[159].mxu1  ;;  %17285 = vmatpush3.msk.msra.mxu0 %vm14008_vm13, %v13886_v7 }
0x1e4e   : > { %17294 = vmatprep.subr.mxu0 %v18253_v35 }
0x1e54   : > { %v13536_v2 = vpop.f32.mrb[160].mxu0 }
0x1e55   : > { %v13964_v51 = vmul.f32 %v13536_v2, %v13256_v29  ;;  %v17207_v52 = vpop.f32.mrb[161].mxu0  ;;  %v15174_v29 = vld [vmem:[%s20437_s2 + $0x38] sm:$0xff]  ;;  %s20442_s2 = sld [smem:[#allocation31_spill]] }
0x1e56   : > { %v15175_v52 = vld [vmem:[%s20439_s26 + $0x1] sm:$0x1] }
0x1e57   : > { %v13965_v56 = vsel %vm6237_vm3, %v13964_v51, 0.0 }
0x1e58   : > { %13966 = vadd.xlane.f32.xlu1 %v13965_v56 }
0x1e5c   : > { %v13676_v18 = vpop.f32.mrb[162].mxu0 }
0x1e5d   : > { %v13972_v60 = vmul.f32 %v13676_v18, %v13396_v44  ;;  %v17229_v33 = vpop.f32.mrb[163].mxu0 }
0x1e5f   : > { %v13973_v14 = vsel %vm6237_vm3, %v13972_v60, 0.0 }
0x1e60   : > { %13974 = vadd.xlane.f32.xlu1 %v13973_v14 }
0x1e64   : > { %v13816_v55 = vpop.f32.mrb[164].mxu0 }
0x1e65   : > { %v17251_v22 = vpop.f32.mrb[165].mxu0 }
0x1e6c   : > { %v13956_v13 = vpop.f32.mrb[166].mxu0 }
0x1e6d   : > { %v17273_v1 = vpop.f32.mrb[167].mxu0 }
0x1ec5   : > { %v13963_v37 = vpop.xlane.xlu0 %13962 }
0x1ec6   : > { %v13976_v6 = vmul.f32 0.35355338, %v13963_v37 }
0x1ec8   : > { %v13980_v4 = vsub.f32 %v13976_v6, %v13976_v6 }
0x1eca   : > { %v13984_v32 = vmul.f32 1.442695, %v13980_v4 }
0x1ecc   : > { %18129 = vpow2.f32 %v13984_v32 }
0x1ed5   : > { %v13971_v24 = vpop.xlane.xlu0 %13970 }
0x1ed6   : > { %v18130_v36 = vpop.eup %18129  ;;  %v13978_v11 = vmul.f32 0.35355338, %v13971_v24 }
0x1ed7   : > { %18131 = vrcp.f32 %v18130_v36 }
0x1ed8   : > { %v13982_v0 = vsub.f32 %v13978_v11, %v13978_v11  ;;  %v14611_v11 = vld [vmem:[%s20440_s18] sm:$0x1] }
0x1eda   : > { %v13988_v10 = vmul.f32 1.442695, %v13982_v0  ;;  %v14612_v0 = vld [vmem:[%s20441_s1] sm:$0x1]  ;;  %s15201_s1 = sshll.u32 %s18456_s0, 4  ;;  %s18254_s0 = smov [#allocation2]  }
0x1edb   : > { %s18157_s8 = sshll.u32 %s18254_s0, 4  ;;  %s18158_s8 = int_to_ptr.vmem [resolvable:$false] %s18157_s8 }
0x1edc   : > { %18133 = vpow2.f32 %v13988_v10  ;;  %s18159_s9 = scalar_lea.vmem %s18158_s8, 32 }
0x1ee1   : > { %v18132_v41 = vpop.eup %18131 }
0x1ee2   : > { %v14000_v42 = vmul.f32 %v18132_v41, %v18130_v36 }
0x1ee4   : > { %17277 = vmatmul.mubr.msk.f32.vlgmr.msra.gmra.mrb[160].mxu1 %vm14004_vm14, %v14000_v42 }
0x1ee5   : > { %v13967_v34 = vpop.xlane.xlu1 %13966  ;;  %17280 = vmatpush3.msk.msra.mxu1 %vm14008_vm13, %v13816_v55  ;;  %17281 = vmatprep.mubr.msk.f32.mxu1 %vm18252_vm1, %v18253_v35 }
0x1ee6   : > { %v18134_v47 = vpop.eup %18133  ;;  %v13977_v48 = vmul.f32 0.35355338, %v13967_v34  ;;  %17289 = vmatprep.subr.mxu1 %v18253_v35 }
0x1ee7   : > { %18135 = vrcp.f32 %v18134_v47 }
0x1ee8   : > { %v13981_v38 = vsub.f32 %v13977_v48, %v13977_v48 }
0x1eea   : > { %v13986_v16 = vmul.f32 1.442695, %v13981_v38 }
0x1eec   : > { %18137 = vpow2.f32 %v13986_v16 }
0x1eed   : > { %v13975_v15 = vpop.xlane.xlu1 %13974 }
0x1eee   : > { %v13979_v45 = vmul.f32 0.35355338, %v13975_v15  ;;  %v14645_v15 = vld [vmem:[%s18423_s27] sm:$0xff] }
0x1ef0   : > { %v13983_v46 = vsub.f32 %v13979_v45, %v13979_v45  ;;  %v14646_v45 = vld [vmem:[%s18423_s27 + $0x8] sm:$0xff] }
0x1ef1   : > { %v18136_v59 = vpop.eup %18135 }
0x1ef2   : > { %v13990_v19 = vmul.f32 1.442695, %v13983_v46  ;;  %v14002_v21 = vmul.f32 %v18136_v59, %v18134_v47  ;;  %v17914_v46 = vpack.c.bf16 %v14646_v45, %v14645_v15  ;;  %v14647_v59 = vld [vmem:[%s18423_s27 + $0x10] sm:$0xff] }
0x1ef4   : > { %18139 = vpow2.f32 %v13990_v19  ;;  %17287 = vmatmul.mubr.msk.f32.vlgmr.msra.gmra.mrb[168].mxu0 %vm14004_vm14, %v14002_v21  ;;  %v14648_v19 = vld [vmem:[%s18423_s27 + $0x18] sm:$0xff] }
0x1ef5   : > { %17296 = vmatprep.mubr.msk.f32.mxu0 %vm18252_vm1, %v18253_v35  ;;  %17295 = vmatpush3.msra.mxu0 %v15171_v26  ;;  %v17917_v21 = vpack.c.bf16 %v14648_v19, %v14647_v59  ;;  %v14629_v26 = vld [vmem:[%s18418_s20] sm:$0x1] }
0x1ef6   : > { %v18138_v20 = vpop.eup %18137  ;;  %17304 = vmatprep.subr.mxu0 %v18253_v35 }
0x1ef7   : > { %18141 = vrcp.f32 %v18138_v20 }
0x1efe   : > { %v18140_v27 = vpop.eup %18139 }
0x1eff   : > { %18143 = vrcp.f32 %v18140_v27 }
0x1f01   : > { %v18142_v9 = vpop.eup %18141 }
0x1f02   : > { %v14001_v5 = vmul.f32 %v18142_v9, %v18138_v20 }
0x1f04   : > { %17282 = vmatmul.mubr.msk.f32.vlgmr.msra.gmra.mrb[162].mxu1 %vm14004_vm14, %v14001_v5 }
0x1f05   : > { %17290 = vmatpush3.msk.msra.mxu1 %vm14008_vm13, %v13956_v13  ;;  %17291 = vmatprep.mubr.msk.f32.mxu1 %vm18252_vm1, %v18253_v35 }
0x1f06   : > { %17299 = vmatprep.subr.mxu1 %v18253_v35 }
0x1f09   : > { %v18144_v12 = vpop.eup %18143 }
0x1f0a   : > { %v14003_v49 = vmul.f32 %v18144_v12, %v18140_v27  ;;  %v14628_v12 = vld [vmem:[%s20442_s2] sm:$0x1]  ;;  %s1033_s2 = sand.u32 1, %s18207_s16  }
0x1f0b   : > { %s1034_s18 = scalar_lea.vmem [#allocation2], %s1033_s2  ;;  %s14737_s5 = scalar_lea.sflag [#allocation3], %s1033_s2 }
0x1f0c   : > { %17292 = vmatmul.mubr.msk.f32.vlgmr.msra.gmra.mrb[164].mxu1 %vm14004_vm14, %v14003_v49  ;;  %s14749_s3 = sshll.u32 %s1034_s18, 4  ;;  %s20318_s3 = int_to_ptr.vmem [resolvable:$true] %s14749_s3 }
0x1f0d   : > { %17301 = vmatprep.mubr.msk.f32.mxu1 %vm18252_vm1, %v18253_v35  ;;  %17300 = vmatpush3.msra.mxu1 %v15172_v25  ;;  %s18153_s6 = scalar_lea.vmem %s20318_s3, 16  ;;  %p18160_p0 = scmp.lt.s32.totalorder %s20318_s3, %s18158_s8 }
0x1f0e   : > { %17309 = vmatprep.subr.mxu1 %v18253_v35  ;;  %p18154_p11 = scmp.ne.s32.totalorder %s20318_s3, %s18153_s6  ;;  %p18161_p1 = scmp.lt.s32.totalorder %s18159_s9, %s18153_s6 }
0x1f10   : > { %p18155_p12 = pnand %p18154_p11, %p18473_p5  ;;  %p18162_p2 = por %p18161_p1, %p18160_p0 }
0x1f12   : > { %p18156_p13 = pneg %p18155_p12 }
0x1f14   : > { %p18163_p3 = pnand %p18162_p2, %p18156_p13 }
0x1fb7   : > { %v14078_v53 = vpop.f32.mrb[160].mxu1 }
0x1fb8   : > { %v17278_v17 = vpop.f32.mrb[161].mxu1  ;;  %17297 = vmatmul.mubr.msk.f32.vlgmr.msra.gmra.mrb[170].mxu0 %vm5004_vm2, %v14078_v53  ;;  %v14649_v53 = vld [vmem:[%s20443_s4] sm:$0x1]  ;;  %s20316_s4 = scalar_lea.hbm %s18433_s12, %s15201_s1 }
0x1fb9   : > { %17305 = vmatpush3.msra.mxu0 %v15173_v62  ;;  %17306 = vmatprep.mubr.msk.f32.mxu0 %vm18252_vm1, %v18253_v35 }
0x1fba   : > { %17913 = vmatprep.subr.bf16.mxu0 %v18251_v31 }
0x1fc7   : > { %v14230_v54 = vpop.f32.mrb[168].mxu0 }
0x1fc8   : > { %v17288_v39 = vpop.f32.mrb[169].mxu0  ;;  %17307 = vmatmul.mubr.msk.f32.vlgmr.msra.gmra.mrb[172].mxu0 %vm5004_vm2, %v14230_v54 }
0x1fc9   : > { %17322 = vmatprep.mubr.msk.f32.mxu0 %vm18252_vm1, %v18253_v35  ;;  %17915 = vmatpush3.bf16.msra.mxu0 %v17914_v46 }
0x1fca   : > { %17916 = vmatprep.subr.bf16.mxu0 %v18251_v31 }
0x1fcd   : > { %17918 = vmatpush3.bf16.msra.mxu0 %v17917_v21 }
0x1fd7   : > { %v14154_v40 = vpop.f32.mrb[162].mxu1 }
0x1fd8   : > { %v17283_v58 = vpop.f32.mrb[163].mxu1  ;;  %17302 = vmatmul.mubr.msk.f32.vlgmr.msra.gmra.mrb[166].mxu1 %vm5004_vm2, %v14154_v40 }
0x1fd9   : > { %17310 = vmatpush3.msra.mxu1 %v15174_v29  ;;  %17311 = vmatprep.mubr.msk.f32.mxu1 %vm18252_vm1, %v18253_v35 }
0x1fdf   : > { %v14306_v57 = vpop.f32.mrb[164].mxu1 }
0x1fe0   : > { %v17293_v61 = vpop.f32.mrb[165].mxu1  ;;  %17312 = vmatmul.mubr.msk.f32.vlgmr.msra.gmra.mrb[168].mxu1 %vm5004_vm2, %v14306_v57 }
0x208b   : > { %v14379_v23 = vpop.f32.mrb[170].mxu0 }
0x208c   : > { %v17298_v30 = vpop.f32.mrb[171].mxu0  ;;  %v14602_v44 = vsel %vm8750_vm4, %v14379_v23, 0.0 }
0x209b   : > { %v14525_v28 = vpop.f32.mrb[172].mxu0 }
0x209c   : > { %v17308_v63 = vpop.f32.mrb[173].mxu0  ;;  %v14605_v2 = vsel %vm8750_vm4, %v14525_v28, 0.0 }
0x20ab   : > { %v14452_v43 = vpop.f32.mrb[166].mxu1 }
0x20ac   : > { %v14603_v7 = vsel %vm8750_vm4, %v14452_v43, 0.0  ;;  %v17303_v8 = vpop.f32.mrb[167].mxu1 }
0x20ad   : > { %v14604_v3 = vadd.f32 %v14603_v7, %v14602_v44 }
0x20af   : > { %v14606_v51 = vadd.f32 %v14605_v2, %v14604_v3 }
0x20b3   : > { %v14598_v35 = vpop.f32.mrb[168].mxu1 }
0x20b4   : > { %v14607_v56 = vsel %vm8750_vm4, %v14598_v35, 0.0  ;;  %v17313_v18 = vpop.f32.mrb[169].mxu1 }
0x20b5   : > { %v14608_v60 = vadd.f32 %v14607_v56, %v14606_v51 }
0x20b7   : > { %v14609_v33 = vadd.f32 %v15175_v52, %v14608_v60 }
0x20b9   : > { %v14610_v14 = vadd.f32 %v14609_v33, %v20119_v50 }
0x20bb   : > { %v14613_v55 = vsel %vm8750_vm4, %v14610_v14, 0.0 }
0x20bc   : > { %14614 = vadd.xlane.f32.xlu0 %v14613_v55 }
0x2149   : > { %v14615_v22 = vpop.xlane.xlu0 %14614 }
0x214a   : > { %v14616_v13 = vmul.f32 0.03125, %v14615_v22 }
0x214c   : > { %v14617_v1 = vsub.f32 %v14610_v14, %v14616_v13 }
0x214e   : > { %v14618_v37 = vmul.f32 %v14617_v1, %v14617_v1 }
0x2150   : > { %v14619_v6 = vsel %vm8750_vm4, %v14618_v37, 0.0 }
0x2151   : > { %14620 = vadd.xlane.f32.xlu1 %v14619_v6 }
0x21de   : > { %v14621_v4 = vpop.xlane.xlu1 %14620 }
0x21df   : > { %v14622_v32 = vmul.f32 0.03125, %v14621_v4 }
0x21e1   : > { %v14623_v24 = vadd.f32 1e-05, %v14622_v32 }
0x21e3   : > { %18145 = vrsqrt.f32 %v14623_v24 }
0x21ed   : > { %v18146_v36 = vpop.eup %18145 }
0x21ee   : > { %v14625_v50 = vmul.f32 %v18146_v36, %v14617_v1 }
0x21f0   : > { %v14626_v10 = vmul.f32 %v14625_v50, %v14611_v11 }
0x21f2   : > { %v14627_v41 = vadd.f32 %v14626_v10, %v14612_v0 }
0x21f4   : > { %v14630_v42 = vsel %vm8750_vm4, %v14627_v41, 0.0 }
0x21f5   : > { %14631 = vadd.xlane.f32.xlu0 %v14630_v42 }
0x2282   : > { %v14632_v34 = vpop.xlane.xlu0 %14631 }
0x2283   : > { %v14633_v47 = vmul.f32 0.03125, %v14632_v34 }
0x2285   : > { %v14634_v48 = vsub.f32 %v14627_v41, %v14633_v47 }
0x2287   : > { %v14635_v38 = vmul.f32 %v14634_v48, %v14634_v48 }
0x2289   : > { %v14636_v16 = vsel %vm8750_vm4, %v14635_v38, 0.0 }
0x228a   : > { %14637 = vadd.xlane.f32.xlu1 %v14636_v16 }
0x2317   : > { %v14638_v20 = vpop.xlane.xlu1 %14637 }
0x2318   : > { %v14639_v27 = vmul.f32 0.03125, %v14638_v20 }
0x231a   : > { %v14640_v9 = vadd.f32 1e-05, %v14639_v27 }
0x231c   : > { %18147 = vrsqrt.f32 %v14640_v9 }
0x2326   : > { %v18148_v5 = vpop.eup %18147 }
0x2327   : > { %v14642_v49 = vmul.f32 %v18148_v5, %v14634_v48 }
0x2329   : > { %v14643_v25 = vmul.f32 %v14642_v49, %v14628_v12 }
0x232b   : > { %v14644_v62 = vadd.f32 %v14643_v25, %v14629_v26 }
0x232d   : > { %17323 = vmatmul.mubr.msk.f32.vlgmr.msra.gmra.mrb[174].mxu0 %vm1050_vm0, %v14644_v62 }
0x2400   : > { %v14719_v17 = vpop.f32.mrb[174].mxu0 }
0x2401   : > { %v14720_v31 = vadd.f32 %v14719_v17, %v14649_v53  ;;  %v17324_v54 = vpop.f32.mrb[175].mxu0 }
0x2403   : > { %v14724_v39 = vsel %vm14723_vm15, %v14720_v31, -inf }
0x2404   : > { %14725 = vmax.xlane.f32.xlu0 %v14724_v39 }
0x2491   : > { %v14726_v29 = vpop.xlane.xlu0 %14725 }
0x2492   : > { %v14727_v40 = vsub.f32 %v14720_v31, %v14726_v29 }
0x2494   : > { %v14728_v58 = vmul.f32 1.442695, %v14727_v40 }
0x2496   : > { %18149 = vpow2.f32 %v14728_v58 }
0x24a0   : > { %v18150_v57 = vpop.eup %18149 }
0x24a1   : > { %v14730_v61 = vsel %vm14723_vm15, %v18150_v57, 0.0 }
0x24a2   : > { %14731 = vadd.xlane.f32.xlu1 %v14730_v61 }
0x252f   : > { %v14732_v23 = vpop.xlane.xlu1 %14731 }
0x2530   : > { %18151 = vrcp.f32 %v14732_v23 }
0x253a   : > { %v18152_v30 = vpop.eup %18151 }
0x253b   : > { %v14734_v28 = vmul.f32 %v18152_v30, %v18150_v57 }
0x253d   : > { %14735 = vst.msk [vmem:[%s1034_s18] sm:$0x1] %vm14723_vm15, %v14734_v28 }
0x253e   : > { %18166 = shalt.err (!%p18163_p3)
}
0x253f   : > { %s18167_s2 = scalar_lea.hbm %s20316_s4, 16  ;;  %s18171_s1 = scalar_lea.hbm %s18433_s12, 32 }
0x2540   : > { %p18168_p4 = scmp.ne.s32.totalorder %s20316_s4, %s18167_s2  ;;  %p18172_p9 = scmp.lt.u32.totalorder %s20316_s4, %s18433_s12 }
0x2541   : > { %p18173_p10 = scmp.lt.u32.totalorder %s18171_s1, %s18167_s2  ;;  %p18175_p12 = scmp.lt.u32.totalorder %s18167_s2, %s20316_s4 }
0x2542   : > { %p18169_p7 = pnand %p18168_p4, %p18473_p5 }
0x2543   : > { %p18174_p11 = por %p18173_p10, %p18172_p9 }
0x2544   : > { %p18170_p8 = pneg %p18169_p7 }
0x2545   : > { %p18176_p0 = por %p18175_p12, %p18174_p11 }
0x2547   : > { %p18177_p13 = pnand %p18176_p0, %p18170_p8 }
0x2549   : > { %18180 = shalt.err (!%p18177_p13)
}
0x254a   : > { %17919 = dma.vmem_to_hbm [thread:$0]  (%p18473_p5), %s20318_s3, 16, %s20316_s4, %s14737_s5  }
0x254b PF: > { %p17925_p1 = scmp.ge.s32.totalorder %s18215_s22, 2  ;;  %s14761_s9 = sand.u32 1, %s18203_s15  }
0x254c   : > { %s14762_s8 = scalar_lea.sflag [#allocation3], %s14761_s9 }
0x254d   : > { %p17922_p2 = pnand %p17925_p1, %p18477_p6 }
0x254f   : > { %18198 = dma.done.wait (!%p17922_p2), %s14762_s8, 16  }
0x2550   : > { %18200 = vsyncadd (!%p17922_p2), %s14762_s8, 4294967280  ;;  %s20444_s22 = sld [smem:[#allocation34_spill]]  ;;  %s20445_s6 = sld [smem:[#allocation33_spill]] }
0x2551   : > { %s20446_s18 = sld [smem:[#allocation35_spill]]  ;;  %s20447_s15 = smov %s18207_s16 }
0x2556   : > { %p79_p3 = scmp.ge.s32.totalorder %s20444_s22, 4   ;;  %s20448_s16 = smov %s20445_s6 }
0x2558   :  { %81 = sbr.rel (!%p79_p3) target bundleno = 77 (0x4d), region = 245 }
0x255f   :  { %14766 = vsyncpa [#allocation3], 1 }
0x2560   :  { %14768 = vsyncpa [#allocation3 + $0x1], 1 }

</bundles_post_ra>
